<compile_context>
chip_gen: v5e
topology: v5e:2x2
jax: 0.10.0
libtpu: 0.0.40
codegen_flags: <defaults>
</compile_context>

<pallas_src>
import jax
import jax.numpy as jnp
from jax import lax
from jax.experimental import pallas as pl
from jax.experimental.pallas import tpu as pltpu

EPS = 1e-5                      # nn.BatchNorm2d default eps
LANE = 128                      # TPU lane width
VMEM_LIMIT = 32 * 1024 * 1024   # fits the scoped-VMEM default on v5e/v6e/v7x


def _round_up(x, m):
    return (x + m - 1) // m * m


# ---------------------------------------------------------------------------
# Pass A: 3x3 conv (9 shifted MXU dots) + bias; writes Cout-wide pre-BN
#         activations and per-tile [sum; sumsq] partial BN statistics.
# ---------------------------------------------------------------------------
def conv_bias_stats_kernel(x0_ref, x1_ref, x2_ref, w_ref, b_ref,
                           y_ref, stats_ref):
    # x{0,1,2}_ref : (1, TH, W+2, Cin)  bf16  ky-shifted row slabs (with halo)
    # w_ref        : (9, Cin, Cp)       bf16  resident taps, row = ky*3 + kx
    # b_ref        : (1, Cout)          f32   resident conv bias
    # y_ref        : (1, TB, Cout)      f32   pre-BN activations for this tile
    # stats_ref    : (1, 2, Cout)       f32   per-tile [sum; sumsq]
    th, wp2, cin = x0_ref.shape[1], x0_ref.shape[2], x0_ref.shape[3]
    w_out = wp2 - 2
    cp = w_ref.shape[-1]
    cout = y_ref.shape[-1]

    slabs = (x0_ref[0], x1_ref[0], x2_ref[0])       # each (TH, W+2, Cin), bf16
    acc = jnp.zeros((th * w_out, cp), jnp.float32)
    for ky in range(3):
        for kx in range(3):
            xk = slabs[ky][:, kx:kx + w_out, :].reshape(th * w_out, cin)
            acc = acc + jnp.dot(xk, w_ref[ky * 3 + kx],
                                preferred_element_type=jnp.float32)

    y = acc[:, :cout] + b_ref[...]                  # (TB, Cout) f32
    y_ref[...] = y[None]
    stats_ref[...] = jnp.concatenate(
        [jnp.sum(y, axis=0, keepdims=True),
         jnp.sum(y * y, axis=0, keepdims=True)], axis=0)[None]


# ---------------------------------------------------------------------------
# Pass B: per-channel affine (folded BatchNorm) + ELU on a lane-dense view
# ---------------------------------------------------------------------------
def bn_elu_kernel(y_ref, scale_ref, shift_ref, o_ref):
    yn = y_ref[...] * scale_ref[...] + shift_ref[...]
    # TODO(synk): switch to jnp.expm1 once verified on the target Mosaic build
    # (minor precision gain near 0); exp(min(x,0))-1 is the known-good EUP path.
    o_ref[...] = jnp.where(yn > 0.0, yn, jnp.exp(jnp.minimum(yn, 0.0)) - 1.0)


# ---------------------------------------------------------------------------
# One conv3x3('SAME') -> BatchNorm2d(batch stats) -> ELU stage, NHWC in/out
# ---------------------------------------------------------------------------
def conv_bn_elu_stage(x_nhwc, w, b, gamma, beta, *, tile_rows=512):
    N, H, W, Cin = x_nhwc.shape
    Cout = w.shape[-1]
    Cp = _round_up(Cout, LANE)                      # MXU RHS lane padding only
    M = N * H * W

    # Image-row tile: TH rows per grid step (~tile_rows output rows per tile).
    TH = max(1, min(H, tile_rows // max(W, 1)))
    while H % TH:
        TH -= 1
    nH = H // TH
    TB = TH * W                                     # output rows per tile

    # Lane-pad only the (VMEM-resident) weights; bias stays Cout-wide.
    w_p = jnp.zeros((3, 3, Cin, Cp), jnp.float32).at[..., :Cout].set(w)
    w_p = w_p.reshape(9, Cin, Cp).astype(jnp.bfloat16)
    b_p = b.reshape(1, Cout).astype(jnp.float32)

    # 'SAME' spatial pad + three ky-shifted row views (bf16).  The kernel does
    # the kx shifts in-register, so the input is read 3x in bf16 (~1.5x the f32
    # input bytes) instead of materialising a 9x f32 im2col matrix in HBM.
    xp = jnp.pad(x_nhwc, ((0, 0), (1, 1), (1, 1), (0, 0))).astype(jnp.bfloat16)
    x_views = [xp[:, ky:ky + H, :, :] for ky in range(3)]

    slab_spec = pl.BlockSpec((1, TH, W + 2, Cin), lambda n, h: (n, h, 0, 0))
    w_spec = pl.BlockSpec((9, Cin, Cp), lambda n, h: (0, 0, 0))     # resident
    b_spec = pl.BlockSpec((1, Cout), lambda n, h: (0, 0))           # resident

    # Pass A: fully parallel grid; per-tile outputs (no serialized accumulator).
    y3, stats = pl.pallas_call(
        conv_bias_stats_kernel,
        out_shape=(jax.ShapeDtypeStruct((N * nH, TB, Cout), jnp.float32),
                   jax.ShapeDtypeStruct((N * nH, 2, Cout), jnp.float32)),
        grid_spec=pltpu.PrefetchScalarGridSpec(
            num_scalar_prefetch=0,
            grid=(N, nH),
            in_specs=[slab_spec, slab_spec, slab_spec, w_spec, b_spec],
            out_specs=[
                pl.BlockSpec((1, TB, Cout), lambda n, h: (n * nH + h, 0, 0)),
                pl.BlockSpec((1, 2, Cout), lambda n, h: (n * nH + h, 0, 0))]),
        compiler_params=pltpu.CompilerParams(
            dimension_semantics=("parallel", "parallel"),
            vmem_limit_bytes=VMEM_LIMIT),
    )(x_views[0], x_views[1], x_views[2], w_p, b_p)

    # Tiny finalize: reduce per-tile partial stats, fold BN into scale/shift.
    stat_sum = jnp.sum(stats, axis=0)               # (2, Cout) f32
    mean = stat_sum[0] / M
    var = jnp.maximum(stat_sum[1] / M - mean * mean, 0.0)   # biased (training)
    scale = gamma * lax.rsqrt(var + EPS)
    shift = beta - mean * scale

    # Fold Cout channels into the 128-lane width (free contiguous reshape) so
    # pass B is fully lane-dense.  Falls back to Cout-wide blocks otherwise.
    fold = 1
    if Cout <= LANE and LANE % Cout == 0 and M % (LANE // Cout) == 0:
        fold = LANE // Cout
    Cw = Cout * fold
    Mf = M // fold
    y_flat = y3.reshape(M, Cout).reshape(Mf, Cw)
    scale_w = jnp.tile(scale, fold).reshape(1, Cw)
    shift_w = jnp.tile(shift, fold).reshape(1, Cw)

    # Row block for pass B: largest divisor of Mf <= 1024 that is sublane-legal.
    RB = Mf
    for d in range(min(Mf, 1024), 0, -1):
        if Mf % d == 0 and d % 8 == 0:
            RB = d
            break

    act = pl.pallas_call(
        bn_elu_kernel,
        out_shape=jax.ShapeDtypeStruct((Mf, Cw), jnp.float32),
        grid_spec=pltpu.PrefetchScalarGridSpec(
            num_scalar_prefetch=0,
            grid=(Mf // RB,),
            in_specs=[pl.BlockSpec((RB, Cw), lambda i: (i, 0)),
                      pl.BlockSpec((1, Cw), lambda i: (0, 0)),
                      pl.BlockSpec((1, Cw), lambda i: (0, 0))],
            out_specs=pl.BlockSpec((RB, Cw), lambda i: (i, 0))),
        compiler_params=pltpu.CompilerParams(
            dimension_semantics=("parallel",),      # shards over v7x's 2 TCs
            vmem_limit_bytes=VMEM_LIMIT),
    )(y_flat, scale_w, shift_w)

    return act.reshape(N, H, W, Cout)


def in_conv_forward(x_nchw, params, *, tile_rows=512):
    """InConv.forward: (conv3x3 pad=1 -> BN -> ELU) * 2.  NCHW in / NCHW out."""
    x = jnp.transpose(x_nchw, (0, 2, 3, 1)).astype(jnp.float32)    # NHWC
    # TODO(synk): fuse stage-1 BN+ELU with stage-2 conv (needs a haloed read of
    # the stage-1 pre-BN activations plus border masking) to drop one HBM trip.
    for (w, b, g, bt) in params:
        x = conv_bn_elu_stage(x, w, b, g, bt, tile_rows=tile_rows)
    return jnp.transpose(x, (0, 3, 1, 2))                          # NCHW


def reference_forward(x_nchw, params):
    # Pure-JAX reference (PyTorch training-mode semantics).  Conv inputs are
    # rounded to bf16 to mirror the kernel's bf16 MXU operands; accumulation
    # and the BN / ELU epilogue stay f32.
    x = jnp.transpose(x_nchw, (0, 2, 3, 1)).astype(jnp.float32)
    for (w, b, g, bt) in params:
        xq = x.astype(jnp.bfloat16).astype(jnp.float32)
        wq = w.astype(jnp.bfloat16).astype(jnp.float32)
        y = lax.conv_general_dilated(
            xq, wq, (1, 1), "SAME",
            dimension_numbers=("NHWC", "HWIO", "NHWC"),
            precision=lax.Precision.HIGHEST) + b
        mean = y.mean(axis=(0, 1, 2))
        var = ((y - mean) ** 2).mean(axis=(0, 1, 2))
        yn = (y - mean) * lax.rsqrt(var + EPS) * g + bt
        x = jnp.where(yn > 0.0, yn, jnp.exp(jnp.minimum(yn, 0.0)) - 1.0)
    return jnp.transpose(x, (0, 3, 1, 2))


if __name__ == "__main__":
    # InConv(in_ch=4, out_ch=8, no_padding=False) on a small NCHW input.
    N, Cin, Cout, H, W = 2, 4, 8, 16, 16
    ks = jax.random.split(jax.random.PRNGKey(0), 9)

    x = jax.random.normal(ks[0], (N, Cin, H, W), jnp.float32)

    w1 = 0.1 * jax.random.normal(ks[1], (3, 3, Cin, Cout), jnp.float32)
    b1 = 0.05 * jax.random.normal(ks[2], (Cout,), jnp.float32)
    g1 = 1.0 + 0.1 * jax.random.normal(ks[3], (Cout,), jnp.float32)
    bt1 = 0.05 * jax.random.normal(ks[4], (Cout,), jnp.float32)

    w2 = 0.1 * jax.random.normal(ks[5], (3, 3, Cout, Cout), jnp.float32)
    b2 = 0.05 * jax.random.normal(ks[6], (Cout,), jnp.float32)
    g2 = 1.0 + 0.1 * jax.random.normal(ks[7], (Cout,), jnp.float32)
    bt2 = 0.05 * jax.random.normal(ks[8], (Cout,), jnp.float32)

    params = [(w1, b1, g1, bt1), (w2, b2, g2, bt2)]

    # tile_rows=128 -> TH=8, a (2, 2) pass-A grid and multiple BN-stat tiles,
    # so the tiled partial-stat path is actually exercised at this toy size.
    fwd = jax.jit(lambda xx, pp: in_conv_forward(xx, pp, tile_rows=128))
    out = jax.block_until_ready(fwd(x, params))

    ref = reference_forward(x, params)
    assert out.shape == (N, Cout, H, W)
    # bf16 MXU operands (matched in the reference) -> 5e-3 tolerance.
    assert jnp.allclose(out, ref, atol=5e-3, rtol=5e-3), "mismatch vs reference"

    print("KERNEL_OK")
</pallas_src>

<mosaic_0001>
module attributes {stable_mosaic.version = 11 : i64} {
  func.func @bn_elu_kernel(%arg0: i32, %arg1: memref<32x128xf32, #tpu.memory_space<vmem>>, %arg2: memref<1x128xf32, #tpu.memory_space<vmem>>, %arg3: memref<1x128xf32, #tpu.memory_space<vmem>>, %arg4: memref<32x128xf32, #tpu.memory_space<vmem>>) attributes {dimension_semantics = [#tpu.dimension_semantics<parallel>], iteration_bounds = array<i64: 1>, scalar_prefetch = 0 : i64, scratch_operands = 0 : i64, tpu.core_type = #tpu.core_type<tc>, window_params = [{transform_indices = @transform_0, window_bounds = array<i64: 32, 128>}, {pipeline_mode = #tpu.pipeline_mode<synchronous>, transform_indices = @transform_1, window_bounds = array<i64: 1, 128>}, {pipeline_mode = #tpu.pipeline_mode<synchronous>, transform_indices = @transform_2, window_bounds = array<i64: 1, 128>}, {transform_indices = @transform_3, window_bounds = array<i64: 32, 128>}]} {
    %c0 = arith.constant 0 : index
    %c0_0 = arith.constant 0 : index
    %0 = vector.load %arg1[%c0, %c0_0] : memref<32x128xf32, #tpu.memory_space<vmem>>, vector<32x128xf32>
    %c0_1 = arith.constant 0 : index
    %c0_2 = arith.constant 0 : index
    %1 = vector.load %arg2[%c0_1, %c0_2] : memref<1x128xf32, #tpu.memory_space<vmem>>, vector<1x128xf32>
    %2 = vector.broadcast %1 : vector<1x128xf32> to vector<32x128xf32>
    %3 = arith.mulf %0, %2 : vector<32x128xf32>
    %c0_3 = arith.constant 0 : index
    %c0_4 = arith.constant 0 : index
    %4 = vector.load %arg3[%c0_3, %c0_4] : memref<1x128xf32, #tpu.memory_space<vmem>>, vector<1x128xf32>
    %5 = vector.broadcast %4 : vector<1x128xf32> to vector<32x128xf32>
    %6 = arith.addf %3, %5 : vector<32x128xf32>
    %cst = arith.constant 0.000000e+00 : f32
    %7 = vector.broadcast %cst : f32 to vector<32x128xf32>
    %8 = arith.cmpf ogt, %6, %7 : vector<32x128xf32>
    %cst_5 = arith.constant 0.000000e+00 : f32
    %9 = vector.broadcast %cst_5 : f32 to vector<32x128xf32>
    %10 = arith.minimumf %6, %9 : vector<32x128xf32>
    %11 = math.exp %10 : vector<32x128xf32>
    %cst_6 = arith.constant 1.000000e+00 : f32
    %12 = vector.broadcast %cst_6 : f32 to vector<32x128xf32>
    %13 = arith.subf %11, %12 : vector<32x128xf32>
    %14 = arith.select %8, %6, %13 : vector<32x128xi1>, vector<32x128xf32>
    %c0_7 = arith.constant 0 : index
    %c0_8 = arith.constant 0 : index
    %15 = vector.load %arg4[%c0_7, %c0_8] : memref<32x128xf32, #tpu.memory_space<vmem>>, vector<32x128xf32>
    tpu.vector_store %arg4[%c0_7, %c0_8], %14 {strides = array<i32>} : memref<32x128xf32, #tpu.memory_space<vmem>>, vector<32x128xf32>,
    return
  }
  func.func @transform_0(%arg0: i32) -> (i32, i32) {
    %c0_i32 = arith.constant 0 : i32
    %c0_i32_0 = arith.constant 0 : i32
    return %arg0, %c0_i32 : i32, i32
  }
  func.func @transform_1(%arg0: i32) -> (i32, i32) {
    %c0_i32 = arith.constant 0 : i32
    %c0_i32_0 = arith.constant 0 : i32
    %c0_i32_1 = arith.constant 0 : i32
    return %c0_i32, %c0_i32_0 : i32, i32
  }
  func.func @transform_2(%arg0: i32) -> (i32, i32) {
    %c0_i32 = arith.constant 0 : i32
    %c0_i32_0 = arith.constant 0 : i32
    %c0_i32_1 = arith.constant 0 : i32
    return %c0_i32, %c0_i32_0 : i32, i32
  }
  func.func @transform_3(%arg0: i32) -> (i32, i32) {
    %c0_i32 = arith.constant 0 : i32
    %c0_i32_0 = arith.constant 0 : i32
    return %arg0, %c0_i32 : i32, i32
  }
}

module attributes {stable_mosaic.version = 11 : i64} {
  func.func @conv_bias_stats_kernel(%arg0: i32, %arg1: i32, %arg2: memref<1x8x18x4xbf16, #tpu.memory_space<vmem>>, %arg3: memref<1x8x18x4xbf16, #tpu.memory_space<vmem>>, %arg4: memref<1x8x18x4xbf16, #tpu.memory_space<vmem>>, %arg5: memref<9x4x128xbf16, #tpu.memory_space<vmem>>, %arg6: memref<1x8xf32, #tpu.memory_space<vmem>>, %arg7: memref<1x128x8xf32, #tpu.memory_space<vmem>>, %arg8: memref<1x2x8xf32, #tpu.memory_space<vmem>>) attributes {dimension_semantics = [#tpu.dimension_semantics<parallel>, #tpu.dimension_semantics<parallel>], iteration_bounds = array<i64: 2, 2>, scalar_prefetch = 0 : i64, scratch_operands = 0 : i64, tpu.core_type = #tpu.core_type<tc>, window_params = [{transform_indices = @transform_0, window_bounds = array<i64: 1, 8, 18, 4>}, {transform_indices = @transform_1, window_bounds = array<i64: 1, 8, 18, 4>}, {transform_indices = @transform_2, window_bounds = array<i64: 1, 8, 18, 4>}, {pipeline_mode = #tpu.pipeline_mode<synchronous>, transform_indices = @transform_3, window_bounds = array<i64: 9, 4, 128>}, {pipeline_mode = #tpu.pipeline_mode<synchronous>, transform_indices = @transform_4, window_bounds = array<i64: 1, 8>}, {transform_indices = @transform_5, window_bounds = array<i64: 1, 128, 8>}, {transform_indices = @transform_6, window_bounds = array<i64: 1, 2, 8>}]} {
    %c0 = arith.constant 0 : index
    %c0_0 = arith.constant 0 : index
    %c0_1 = arith.constant 0 : index
    %c0_2 = arith.constant 0 : index
    %0 = vector.load %arg2[%c0, %c0_0, %c0_1, %c0_2] : memref<1x8x18x4xbf16, #tpu.memory_space<vmem>>, vector<1x8x18x4xbf16>
    %1 = vector.shape_cast %0 : vector<1x8x18x4xbf16> to vector<8x18x4xbf16>
    %c0_3 = arith.constant 0 : index
    %c0_4 = arith.constant 0 : index
    %c0_5 = arith.constant 0 : index
    %c0_6 = arith.constant 0 : index
    %2 = vector.load %arg3[%c0_3, %c0_4, %c0_5, %c0_6] : memref<1x8x18x4xbf16, #tpu.memory_space<vmem>>, vector<1x8x18x4xbf16>
    %3 = vector.shape_cast %2 : vector<1x8x18x4xbf16> to vector<8x18x4xbf16>
    %c0_7 = arith.constant 0 : index
    %c0_8 = arith.constant 0 : index
    %c0_9 = arith.constant 0 : index
    %c0_10 = arith.constant 0 : index
    %4 = vector.load %arg4[%c0_7, %c0_8, %c0_9, %c0_10] : memref<1x8x18x4xbf16, #tpu.memory_space<vmem>>, vector<1x8x18x4xbf16>
    %5 = vector.shape_cast %4 : vector<1x8x18x4xbf16> to vector<8x18x4xbf16>
    %cst = arith.constant 0.000000e+00 : f32
    %6 = vector.broadcast %cst : f32 to vector<128x128xf32>
    %7 = vector.extract_strided_slice %1 {offsets = [0, 0, 0], sizes = [8, 16, 4], strides = [1, 1, 1]} : vector<8x18x4xbf16> to vector<8x16x4xbf16>
    %8 = vector.shape_cast %7 : vector<8x16x4xbf16> to vector<128x4xbf16>
    %c0_11 = arith.constant 0 : index
    %c0_12 = arith.constant 0 : index
    %c0_13 = arith.constant 0 : index
    %9 = vector.load %arg5[%c0_11, %c0_12, %c0_13] : memref<9x4x128xbf16, #tpu.memory_space<vmem>>, vector<1x4x128xbf16>
    %10 = vector.shape_cast %9 : vector<1x4x128xbf16> to vector<4x128xbf16>
    %cst_14 = arith.constant dense<0.000000e+00> : vector<128x128xf32>
    %11 = tpu.matmul %8, %10, %cst_14 {dimension_numbers = #tpu.dot_dimension_numbers<[1], [0], [0], [1], [0, 0, 1, 1], [], []>} : vector<128x4xbf16>, vector<4x128xbf16>, vector<128x128xf32> -> vector<128x128xf32>
    %12 = arith.addf %6, %11 : vector<128x128xf32>
    %13 = vector.extract_strided_slice %1 {offsets = [0, 1, 0], sizes = [8, 16, 4], strides = [1, 1, 1]} : vector<8x18x4xbf16> to vector<8x16x4xbf16>
    %14 = vector.shape_cast %13 : vector<8x16x4xbf16> to vector<128x4xbf16>
    %c1 = arith.constant 1 : index
    %c0_15 = arith.constant 0 : index
    %c0_16 = arith.constant 0 : index
    %15 = vector.load %arg5[%c1, %c0_15, %c0_16] : memref<9x4x128xbf16, #tpu.memory_space<vmem>>, vector<1x4x128xbf16>
    %16 = vector.shape_cast %15 : vector<1x4x128xbf16> to vector<4x128xbf16>
    %cst_17 = arith.constant dense<0.000000e+00> : vector<128x128xf32>
    %17 = tpu.matmul %14, %16, %cst_17 {dimension_numbers = #tpu.dot_dimension_numbers<[1], [0], [0], [1], [0, 0, 1, 1], [], []>} : vector<128x4xbf16>, vector<4x128xbf16>, vector<128x128xf32> -> vector<128x128xf32>
    %18 = arith.addf %12, %17 : vector<128x128xf32>
    %19 = vector.extract_strided_slice %1 {offsets = [0, 2, 0], sizes = [8, 16, 4], strides = [1, 1, 1]} : vector<8x18x4xbf16> to vector<8x16x4xbf16>
    %20 = vector.shape_cast %19 : vector<8x16x4xbf16> to vector<128x4xbf16>
    %c2 = arith.constant 2 : index
    %c0_18 = arith.constant 0 : index
    %c0_19 = arith.constant 0 : index
    %21 = vector.load %arg5[%c2, %c0_18, %c0_19] : memref<9x4x128xbf16, #tpu.memory_space<vmem>>, vector<1x4x128xbf16>
    %22 = vector.shape_cast %21 : vector<1x4x128xbf16> to vector<4x128xbf16>
    %cst_20 = arith.constant dense<0.000000e+00> : vector<128x128xf32>
    %23 = tpu.matmul %20, %22, %cst_20 {dimension_numbers = #tpu.dot_dimension_numbers<[1], [0], [0], [1], [0, 0, 1, 1], [], []>} : vector<128x4xbf16>, vector<4x128xbf16>, vector<128x128xf32> -> vector<128x128xf32>
    %24 = arith.addf %18, %23 : vector<128x128xf32>
    %25 = vector.extract_strided_slice %3 {offsets = [0, 0, 0], sizes = [8, 16, 4], strides = [1, 1, 1]} : vector<8x18x4xbf16> to vector<8x16x4xbf16>
    %26 = vector.shape_cast %25 : vector<8x16x4xbf16> to vector<128x4xbf16>
    %c3 = arith.constant 3 : index
    %c0_21 = arith.constant 0 : index
    %c0_22 = arith.constant 0 : index
    %27 = vector.load %arg5[%c3, %c0_21, %c0_22] : memref<9x4x128xbf16, #tpu.memory_space<vmem>>, vector<1x4x128xbf16>
    %28 = vector.shape_cast %27 : vector<1x4x128xbf16> to vector<4x128xbf16>
    %cst_23 = arith.constant dense<0.000000e+00> : vector<128x128xf32>
    %29 = tpu.matmul %26, %28, %cst_23 {dimension_numbers = #tpu.dot_dimension_numbers<[1], [0], [0], [1], [0, 0, 1, 1], [], []>} : vector<128x4xbf16>, vector<4x128xbf16>, vector<128x128xf32> -> vector<128x128xf32>
    %30 = arith.addf %24, %29 : vector<128x128xf32>
    %31 = vector.extract_strided_slice %3 {offsets = [0, 1, 0], sizes = [8, 16, 4], strides = [1, 1, 1]} : vector<8x18x4xbf16> to vector<8x16x4xbf16>
    %32 = vector.shape_cast %31 : vector<8x16x4xbf16> to vector<128x4xbf16>
    %c4 = arith.constant 4 : index
    %c0_24 = arith.constant 0 : index
    %c0_25 = arith.constant 0 : index
    %33 = vector.load %arg5[%c4, %c0_24, %c0_25] : memref<9x4x128xbf16, #tpu.memory_space<vmem>>, vector<1x4x128xbf16>
    %34 = vector.shape_cast %33 : vector<1x4x128xbf16> to vector<4x128xbf16>
    %cst_26 = arith.constant dense<0.000000e+00> : vector<128x128xf32>
    %35 = tpu.matmul %32, %34, %cst_26 {dimension_numbers = #tpu.dot_dimension_numbers<[1], [0], [0], [1], [0, 0, 1, 1], [], []>} : vector<128x4xbf16>, vector<4x128xbf16>, vector<128x128xf32> -> vector<128x128xf32>
    %36 = arith.addf %30, %35 : vector<128x128xf32>
    %37 = vector.extract_strided_slice %3 {offsets = [0, 2, 0], sizes = [8, 16, 4], strides = [1, 1, 1]} : vector<8x18x4xbf16> to vector<8x16x4xbf16>
    %38 = vector.shape_cast %37 : vector<8x16x4xbf16> to vector<128x4xbf16>
    %c5 = arith.constant 5 : index
    %c0_27 = arith.constant 0 : index
    %c0_28 = arith.constant 0 : index
    %39 = vector.load %arg5[%c5, %c0_27, %c0_28] : memref<9x4x128xbf16, #tpu.memory_space<vmem>>, vector<1x4x128xbf16>
    %40 = vector.shape_cast %39 : vector<1x4x128xbf16> to vector<4x128xbf16>
    %cst_29 = arith.constant dense<0.000000e+00> : vector<128x128xf32>
    %41 = tpu.matmul %38, %40, %cst_29 {dimension_numbers = #tpu.dot_dimension_numbers<[1], [0], [0], [1], [0, 0, 1, 1], [], []>} : vector<128x4xbf16>, vector<4x128xbf16>, vector<128x128xf32> -> vector<128x128xf32>
    %42 = arith.addf %36, %41 : vector<128x128xf32>
    %43 = vector.extract_strided_slice %5 {offsets = [0, 0, 0], sizes = [8, 16, 4], strides = [1, 1, 1]} : vector<8x18x4xbf16> to vector<8x16x4xbf16>
    %44 = vector.shape_cast %43 : vector<8x16x4xbf16> to vector<128x4xbf16>
    %c6 = arith.constant 6 : index
    %c0_30 = arith.constant 0 : index
    %c0_31 = arith.constant 0 : index
    %45 = vector.load %arg5[%c6, %c0_30, %c0_31] : memref<9x4x128xbf16, #tpu.memory_space<vmem>>, vector<1x4x128xbf16>
    %46 = vector.shape_cast %45 : vector<1x4x128xbf16> to vector<4x128xbf16>
    %cst_32 = arith.constant dense<0.000000e+00> : vector<128x128xf32>
    %47 = tpu.matmul %44, %46, %cst_32 {dimension_numbers = #tpu.dot_dimension_numbers<[1], [0], [0], [1], [0, 0, 1, 1], [], []>} : vector<128x4xbf16>, vector<4x128xbf16>, vector<128x128xf32> -> vector<128x128xf32>
    %48 = arith.addf %42, %47 : vector<128x128xf32>
    %49 = vector.extract_strided_slice %5 {offsets = [0, 1, 0], sizes = [8, 16, 4], strides = [1, 1, 1]} : vector<8x18x4xbf16> to vector<8x16x4xbf16>
    %50 = vector.shape_cast %49 : vector<8x16x4xbf16> to vector<128x4xbf16>
    %c7 = arith.constant 7 : index
    %c0_33 = arith.constant 0 : index
    %c0_34 = arith.constant 0 : index
    %51 = vector.load %arg5[%c7, %c0_33, %c0_34] : memref<9x4x128xbf16, #tpu.memory_space<vmem>>, vector<1x4x128xbf16>
    %52 = vector.shape_cast %51 : vector<1x4x128xbf16> to vector<4x128xbf16>
    %cst_35 = arith.constant dense<0.000000e+00> : vector<128x128xf32>
    %53 = tpu.matmul %50, %52, %cst_35 {dimension_numbers = #tpu.dot_dimension_numbers<[1], [0], [0], [1], [0, 0, 1, 1], [], []>} : vector<128x4xbf16>, vector<4x128xbf16>, vector<128x128xf32> -> vector<128x128xf32>
    %54 = arith.addf %48, %53 : vector<128x128xf32>
    %55 = vector.extract_strided_slice %5 {offsets = [0, 2, 0], sizes = [8, 16, 4], strides = [1, 1, 1]} : vector<8x18x4xbf16> to vector<8x16x4xbf16>
    %56 = vector.shape_cast %55 : vector<8x16x4xbf16> to vector<128x4xbf16>
    %c8 = arith.constant 8 : index
    %c0_36 = arith.constant 0 : index
    %c0_37 = arith.constant 0 : index
    %57 = vector.load %arg5[%c8, %c0_36, %c0_37] : memref<9x4x128xbf16, #tpu.memory_space<vmem>>, vector<1x4x128xbf16>
    %58 = vector.shape_cast %57 : vector<1x4x128xbf16> to vector<4x128xbf16>
    %cst_38 = arith.constant dense<0.000000e+00> : vector<128x128xf32>
    %59 = tpu.matmul %56, %58, %cst_38 {dimension_numbers = #tpu.dot_dimension_numbers<[1], [0], [0], [1], [0, 0, 1, 1], [], []>} : vector<128x4xbf16>, vector<4x128xbf16>, vector<128x128xf32> -> vector<128x128xf32>
    %60 = arith.addf %54, %59 : vector<128x128xf32>
    %61 = vector.extract_strided_slice %60 {offsets = [0, 0], sizes = [128, 8], strides = [1, 1]} : vector<128x128xf32> to vector<128x8xf32>
    %c0_39 = arith.constant 0 : index
    %c0_40 = arith.constant 0 : index
    %62 = vector.load %arg6[%c0_39, %c0_40] : memref<1x8xf32, #tpu.memory_space<vmem>>, vector<1x8xf32>
    %63 = vector.broadcast %62 : vector<1x8xf32> to vector<128x8xf32>
    %64 = arith.addf %61, %63 : vector<128x8xf32>
    %65 = vector.shape_cast %64 : vector<128x8xf32> to vector<1x128x8xf32>
    %c0_41 = arith.constant 0 : index
    %c0_42 = arith.constant 0 : index
    %c0_43 = arith.constant 0 : index
    %66 = vector.load %arg7[%c0_41, %c0_42, %c0_43] : memref<1x128x8xf32, #tpu.memory_space<vmem>>, vector<1x128x8xf32>
    tpu.vector_store %arg7[%c0_41, %c0_42, %c0_43], %65 {strides = array<i32>} : memref<1x128x8xf32, #tpu.memory_space<vmem>>, vector<1x128x8xf32>,
    %cst_44 = arith.constant dense<0.000000e+00> : vector<8xf32>
    %67 = vector.multi_reduction <add>, %64, %cst_44 [0] : vector<128x8xf32> to vector<8xf32>
    %68 = vector.shape_cast %67 : vector<8xf32> to vector<1x8xf32>
    %69 = arith.mulf %64, %64 : vector<128x8xf32>
    %cst_45 = arith.constant dense<0.000000e+00> : vector<8xf32>
    %70 = vector.multi_reduction <add>, %69, %cst_45 [0] : vector<128x8xf32> to vector<8xf32>
    %71 = vector.shape_cast %70 : vector<8xf32> to vector<1x8xf32>
    %72 = tpu.concatenate %68, %71 in 0 : vector<1x8xf32>, vector<1x8xf32> -> vector<2x8xf32>
    %73 = vector.shape_cast %72 : vector<2x8xf32> to vector<1x2x8xf32>
    %c0_46 = arith.constant 0 : index
    %c0_47 = arith.constant 0 : index
    %c0_48 = arith.constant 0 : index
    %74 = vector.load %arg8[%c0_46, %c0_47, %c0_48] : memref<1x2x8xf32, #tpu.memory_space<vmem>>, vector<1x2x8xf32>
    tpu.vector_store %arg8[%c0_46, %c0_47, %c0_48], %73 {strides = array<i32>} : memref<1x2x8xf32, #tpu.memory_space<vmem>>, vector<1x2x8xf32>,
    return
  }
  func.func @transform_0(%arg0: i32, %arg1: i32) -> (i32, i32, i32, i32) {
    %c0_i32 = arith.constant 0 : i32
    %c0_i32_0 = arith.constant 0 : i32
    %c0_i32_1 = arith.constant 0 : i32
    return %arg0, %arg1, %c0_i32, %c0_i32_0 : i32, i32, i32, i32
  }
  func.func @transform_1(%arg0: i32, %arg1: i32) -> (i32, i32, i32, i32) {
    %c0_i32 = arith.constant 0 : i32
    %c0_i32_0 = arith.constant 0 : i32
    %c0_i32_1 = arith.constant 0 : i32
    return %arg0, %arg1, %c0_i32, %c0_i32_0 : i32, i32, i32, i32
  }
  func.func @transform_2(%arg0: i32, %arg1: i32) -> (i32, i32, i32, i32) {
    %c0_i32 = arith.constant 0 : i32
    %c0_i32_0 = arith.constant 0 : i32
    %c0_i32_1 = arith.constant 0 : i32
    return %arg0, %arg1, %c0_i32, %c0_i32_0 : i32, i32, i32, i32
  }
  func.func @transform_3(%arg0: i32, %arg1: i32) -> (i32, i32, i32) {
    %c0_i32 = arith.constant 0 : i32
    %c0_i32_0 = arith.constant 0 : i32
    %c0_i32_1 = arith.constant 0 : i32
    %c0_i32_2 = arith.constant 0 : i32
    return %c0_i32, %c0_i32_0, %c0_i32_1 : i32, i32, i32
  }
  func.func @transform_4(%arg0: i32, %arg1: i32) -> (i32, i32) {
    %c0_i32 = arith.constant 0 : i32
    %c0_i32_0 = arith.constant 0 : i32
    %c0_i32_1 = arith.constant 0 : i32
    return %c0_i32, %c0_i32_0 : i32, i32
  }
  func.func @transform_5(%arg0: i32, %arg1: i32) -> (i32, i32, i32) {
    %c2_i32 = arith.constant 2 : i32
    %0 = arith.muli %arg0, %c2_i32 : i32
    %1 = arith.addi %0, %arg1 : i32
    %c0_i32 = arith.constant 0 : i32
    %c0_i32_0 = arith.constant 0 : i32
    %c0_i32_1 = arith.constant 0 : i32
    return %1, %c0_i32, %c0_i32_0 : i32, i32, i32
  }
  func.func @transform_6(%arg0: i32, %arg1: i32) -> (i32, i32, i32) {
    %c2_i32 = arith.constant 2 : i32
    %0 = arith.muli %arg0, %c2_i32 : i32
    %1 = arith.addi %0, %arg1 : i32
    %c0_i32 = arith.constant 0 : i32
    %c0_i32_0 = arith.constant 0 : i32
    %c0_i32_1 = arith.constant 0 : i32
    return %1, %c0_i32, %c0_i32_0 : i32, i32, i32
  }
}

module attributes {stable_mosaic.version = 11 : i64} {
  func.func @conv_bias_stats_kernel(%arg0: i32, %arg1: i32, %arg2: memref<1x8x18x8xbf16, #tpu.memory_space<vmem>>, %arg3: memref<1x8x18x8xbf16, #tpu.memory_space<vmem>>, %arg4: memref<1x8x18x8xbf16, #tpu.memory_space<vmem>>, %arg5: memref<9x8x128xbf16, #tpu.memory_space<vmem>>, %arg6: memref<1x8xf32, #tpu.memory_space<vmem>>, %arg7: memref<1x128x8xf32, #tpu.memory_space<vmem>>, %arg8: memref<1x2x8xf32, #tpu.memory_space<vmem>>) attributes {dimension_semantics = [#tpu.dimension_semantics<parallel>, #tpu.dimension_semantics<parallel>], iteration_bounds = array<i64: 2, 2>, scalar_prefetch = 0 : i64, scratch_operands = 0 : i64, tpu.core_type = #tpu.core_type<tc>, window_params = [{transform_indices = @transform_0, window_bounds = array<i64: 1, 8, 18, 8>}, {transform_indices = @transform_1, window_bounds = array<i64: 1, 8, 18, 8>}, {transform_indices = @transform_2, window_bounds = array<i64: 1, 8, 18, 8>}, {pipeline_mode = #tpu.pipeline_mode<synchronous>, transform_indices = @transform_3, window_bounds = array<i64: 9, 8, 128>}, {pipeline_mode = #tpu.pipeline_mode<synchronous>, transform_indices = @transform_4, window_bounds = array<i64: 1, 8>}, {transform_indices = @transform_5, window_bounds = array<i64: 1, 128, 8>}, {transform_indices = @transform_6, window_bounds = array<i64: 1, 2, 8>}]} {
    %c0 = arith.constant 0 : index
    %c0_0 = arith.constant 0 : index
    %c0_1 = arith.constant 0 : index
    %c0_2 = arith.constant 0 : index
    %0 = vector.load %arg2[%c0, %c0_0, %c0_1, %c0_2] : memref<1x8x18x8xbf16, #tpu.memory_space<vmem>>, vector<1x8x18x8xbf16>
    %1 = vector.shape_cast %0 : vector<1x8x18x8xbf16> to vector<8x18x8xbf16>
    %c0_3 = arith.constant 0 : index
    %c0_4 = arith.constant 0 : index
    %c0_5 = arith.constant 0 : index
    %c0_6 = arith.constant 0 : index
    %2 = vector.load %arg3[%c0_3, %c0_4, %c0_5, %c0_6] : memref<1x8x18x8xbf16, #tpu.memory_space<vmem>>, vector<1x8x18x8xbf16>
    %3 = vector.shape_cast %2 : vector<1x8x18x8xbf16> to vector<8x18x8xbf16>
    %c0_7 = arith.constant 0 : index
    %c0_8 = arith.constant 0 : index
    %c0_9 = arith.constant 0 : index
    %c0_10 = arith.constant 0 : index
    %4 = vector.load %arg4[%c0_7, %c0_8, %c0_9, %c0_10] : memref<1x8x18x8xbf16, #tpu.memory_space<vmem>>, vector<1x8x18x8xbf16>
    %5 = vector.shape_cast %4 : vector<1x8x18x8xbf16> to vector<8x18x8xbf16>
    %cst = arith.constant 0.000000e+00 : f32
    %6 = vector.broadcast %cst : f32 to vector<128x128xf32>
    %7 = vector.extract_strided_slice %1 {offsets = [0, 0, 0], sizes = [8, 16, 8], strides = [1, 1, 1]} : vector<8x18x8xbf16> to vector<8x16x8xbf16>
    %8 = vector.shape_cast %7 : vector<8x16x8xbf16> to vector<128x8xbf16>
    %c0_11 = arith.constant 0 : index
    %c0_12 = arith.constant 0 : index
    %c0_13 = arith.constant 0 : index
    %9 = vector.load %arg5[%c0_11, %c0_12, %c0_13] : memref<9x8x128xbf16, #tpu.memory_space<vmem>>, vector<1x8x128xbf16>
    %10 = vector.shape_cast %9 : vector<1x8x128xbf16> to vector<8x128xbf16>
    %cst_14 = arith.constant dense<0.000000e+00> : vector<128x128xf32>
    %11 = tpu.matmul %8, %10, %cst_14 {dimension_numbers = #tpu.dot_dimension_numbers<[1], [0], [0], [1], [0, 0, 1, 1], [], []>} : vector<128x8xbf16>, vector<8x128xbf16>, vector<128x128xf32> -> vector<128x128xf32>
    %12 = arith.addf %6, %11 : vector<128x128xf32>
    %13 = vector.extract_strided_slice %1 {offsets = [0, 1, 0], sizes = [8, 16, 8], strides = [1, 1, 1]} : vector<8x18x8xbf16> to vector<8x16x8xbf16>
    %14 = vector.shape_cast %13 : vector<8x16x8xbf16> to vector<128x8xbf16>
    %c1 = arith.constant 1 : index
    %c0_15 = arith.constant 0 : index
    %c0_16 = arith.constant 0 : index
    %15 = vector.load %arg5[%c1, %c0_15, %c0_16] : memref<9x8x128xbf16, #tpu.memory_space<vmem>>, vector<1x8x128xbf16>
    %16 = vector.shape_cast %15 : vector<1x8x128xbf16> to vector<8x128xbf16>
    %cst_17 = arith.constant dense<0.000000e+00> : vector<128x128xf32>
    %17 = tpu.matmul %14, %16, %cst_17 {dimension_numbers = #tpu.dot_dimension_numbers<[1], [0], [0], [1], [0, 0, 1, 1], [], []>} : vector<128x8xbf16>, vector<8x128xbf16>, vector<128x128xf32> -> vector<128x128xf32>
    %18 = arith.addf %12, %17 : vector<128x128xf32>
    %19 = vector.extract_strided_slice %1 {offsets = [0, 2, 0], sizes = [8, 16, 8], strides = [1, 1, 1]} : vector<8x18x8xbf16> to vector<8x16x8xbf16>
    %20 = vector.shape_cast %19 : vector<8x16x8xbf16> to vector<128x8xbf16>
    %c2 = arith.constant 2 : index
    %c0_18 = arith.constant 0 : index
    %c0_19 = arith.constant 0 : index
    %21 = vector.load %arg5[%c2, %c0_18, %c0_19] : memref<9x8x128xbf16, #tpu.memory_space<vmem>>, vector<1x8x128xbf16>
    %22 = vector.shape_cast %21 : vector<1x8x128xbf16> to vector<8x128xbf16>
    %cst_20 = arith.constant dense<0.000000e+00> : vector<128x128xf32>
    %23 = tpu.matmul %20, %22, %cst_20 {dimension_numbers = #tpu.dot_dimension_numbers<[1], [0], [0], [1], [0, 0, 1, 1], [], []>} : vector<128x8xbf16>, vector<8x128xbf16>, vector<128x128xf32> -> vector<128x128xf32>
    %24 = arith.addf %18, %23 : vector<128x128xf32>
    %25 = vector.extract_strided_slice %3 {offsets = [0, 0, 0], sizes = [8, 16, 8], strides = [1, 1, 1]} : vector<8x18x8xbf16> to vector<8x16x8xbf16>
    %26 = vector.shape_cast %25 : vector<8x16x8xbf16> to vector<128x8xbf16>
    %c3 = arith.constant 3 : index
    %c0_21 = arith.constant 0 : index
    %c0_22 = arith.constant 0 : index
    %27 = vector.load %arg5[%c3, %c0_21, %c0_22] : memref<9x8x128xbf16, #tpu.memory_space<vmem>>, vector<1x8x128xbf16>
    %28 = vector.shape_cast %27 : vector<1x8x128xbf16> to vector<8x128xbf16>
    %cst_23 = arith.constant dense<0.000000e+00> : vector<128x128xf32>
    %29 = tpu.matmul %26, %28, %cst_23 {dimension_numbers = #tpu.dot_dimension_numbers<[1], [0], [0], [1], [0, 0, 1, 1], [], []>} : vector<128x8xbf16>, vector<8x128xbf16>, vector<128x128xf32> -> vector<128x128xf32>
    %30 = arith.addf %24, %29 : vector<128x128xf32>
    %31 = vector.extract_strided_slice %3 {offsets = [0, 1, 0], sizes = [8, 16, 8], strides = [1, 1, 1]} : vector<8x18x8xbf16> to vector<8x16x8xbf16>
    %32 = vector.shape_cast %31 : vector<8x16x8xbf16> to vector<128x8xbf16>
    %c4 = arith.constant 4 : index
    %c0_24 = arith.constant 0 : index
    %c0_25 = arith.constant 0 : index
    %33 = vector.load %arg5[%c4, %c0_24, %c0_25] : memref<9x8x128xbf16, #tpu.memory_space<vmem>>, vector<1x8x128xbf16>
    %34 = vector.shape_cast %33 : vector<1x8x128xbf16> to vector<8x128xbf16>
    %cst_26 = arith.constant dense<0.000000e+00> : vector<128x128xf32>
    %35 = tpu.matmul %32, %34, %cst_26 {dimension_numbers = #tpu.dot_dimension_numbers<[1], [0], [0], [1], [0, 0, 1, 1], [], []>} : vector<128x8xbf16>, vector<8x128xbf16>, vector<128x128xf32> -> vector<128x128xf32>
    %36 = arith.addf %30, %35 : vector<128x128xf32>
    %37 = vector.extract_strided_slice %3 {offsets = [0, 2, 0], sizes = [8, 16, 8], strides = [1, 1, 1]} : vector<8x18x8xbf16> to vector<8x16x8xbf16>
    %38 = vector.shape_cast %37 : vector<8x16x8xbf16> to vector<128x8xbf16>
    %c5 = arith.constant 5 : index
    %c0_27 = arith.constant 0 : index
    %c0_28 = arith.constant 0 : index
    %39 = vector.load %arg5[%c5, %c0_27, %c0_28] : memref<9x8x128xbf16, #tpu.memory_space<vmem>>, vector<1x8x128xbf16>
    %40 = vector.shape_cast %39 : vector<1x8x128xbf16> to vector<8x128xbf16>
    %cst_29 = arith.constant dense<0.000000e+00> : vector<128x128xf32>
    %41 = tpu.matmul %38, %40, %cst_29 {dimension_numbers = #tpu.dot_dimension_numbers<[1], [0], [0], [1], [0, 0, 1, 1], [], []>} : vector<128x8xbf16>, vector<8x128xbf16>, vector<128x128xf32> -> vector<128x128xf32>
    %42 = arith.addf %36, %41 : vector<128x128xf32>
    %43 = vector.extract_strided_slice %5 {offsets = [0, 0, 0], sizes = [8, 16, 8], strides = [1, 1, 1]} : vector<8x18x8xbf16> to vector<8x16x8xbf16>
    %44 = vector.shape_cast %43 : vector<8x16x8xbf16> to vector<128x8xbf16>
    %c6 = arith.constant 6 : index
    %c0_30 = arith.constant 0 : index
    %c0_31 = arith.constant 0 : index
    %45 = vector.load %arg5[%c6, %c0_30, %c0_31] : memref<9x8x128xbf16, #tpu.memory_space<vmem>>, vector<1x8x128xbf16>
    %46 = vector.shape_cast %45 : vector<1x8x128xbf16> to vector<8x128xbf16>
    %cst_32 = arith.constant dense<0.000000e+00> : vector<128x128xf32>
    %47 = tpu.matmul %44, %46, %cst_32 {dimension_numbers = #tpu.dot_dimension_numbers<[1], [0], [0], [1], [0, 0, 1, 1], [], []>} : vector<128x8xbf16>, vector<8x128xbf16>, vector<128x128xf32> -> vector<128x128xf32>
    %48 = arith.addf %42, %47 : vector<128x128xf32>
    %49 = vector.extract_strided_slice %5 {offsets = [0, 1, 0], sizes = [8, 16, 8], strides = [1, 1, 1]} : vector<8x18x8xbf16> to vector<8x16x8xbf16>
    %50 = vector.shape_cast %49 : vector<8x16x8xbf16> to vector<128x8xbf16>
    %c7 = arith.constant 7 : index
    %c0_33 = arith.constant 0 : index
    %c0_34 = arith.constant 0 : index
    %51 = vector.load %arg5[%c7, %c0_33, %c0_34] : memref<9x8x128xbf16, #tpu.memory_space<vmem>>, vector<1x8x128xbf16>
    %52 = vector.shape_cast %51 : vector<1x8x128xbf16> to vector<8x128xbf16>
    %cst_35 = arith.constant dense<0.000000e+00> : vector<128x128xf32>
    %53 = tpu.matmul %50, %52, %cst_35 {dimension_numbers = #tpu.dot_dimension_numbers<[1], [0], [0], [1], [0, 0, 1, 1], [], []>} : vector<128x8xbf16>, vector<8x128xbf16>, vector<128x128xf32> -> vector<128x128xf32>
    %54 = arith.addf %48, %53 : vector<128x128xf32>
    %55 = vector.extract_strided_slice %5 {offsets = [0, 2, 0], sizes = [8, 16, 8], strides = [1, 1, 1]} : vector<8x18x8xbf16> to vector<8x16x8xbf16>
    %56 = vector.shape_cast %55 : vector<8x16x8xbf16> to vector<128x8xbf16>
    %c8 = arith.constant 8 : index
    %c0_36 = arith.constant 0 : index
    %c0_37 = arith.constant 0 : index
    %57 = vector.load %arg5[%c8, %c0_36, %c0_37] : memref<9x8x128xbf16, #tpu.memory_space<vmem>>, vector<1x8x128xbf16>
    %58 = vector.shape_cast %57 : vector<1x8x128xbf16> to vector<8x128xbf16>
    %cst_38 = arith.constant dense<0.000000e+00> : vector<128x128xf32>
    %59 = tpu.matmul %56, %58, %cst_38 {dimension_numbers = #tpu.dot_dimension_numbers<[1], [0], [0], [1], [0, 0, 1, 1], [], []>} : vector<128x8xbf16>, vector<8x128xbf16>, vector<128x128xf32> -> vector<128x128xf32>
    %60 = arith.addf %54, %59 : vector<128x128xf32>
    %61 = vector.extract_strided_slice %60 {offsets = [0, 0], sizes = [128, 8], strides = [1, 1]} : vector<128x128xf32> to vector<128x8xf32>
    %c0_39 = arith.constant 0 : index
    %c0_40 = arith.constant 0 : index
    %62 = vector.load %arg6[%c0_39, %c0_40] : memref<1x8xf32, #tpu.memory_space<vmem>>, vector<1x8xf32>
    %63 = vector.broadcast %62 : vector<1x8xf32> to vector<128x8xf32>
    %64 = arith.addf %61, %63 : vector<128x8xf32>
    %65 = vector.shape_cast %64 : vector<128x8xf32> to vector<1x128x8xf32>
    %c0_41 = arith.constant 0 : index
    %c0_42 = arith.constant 0 : index
    %c0_43 = arith.constant 0 : index
    %66 = vector.load %arg7[%c0_41, %c0_42, %c0_43] : memref<1x128x8xf32, #tpu.memory_space<vmem>>, vector<1x128x8xf32>
    tpu.vector_store %arg7[%c0_41, %c0_42, %c0_43], %65 {strides = array<i32>} : memref<1x128x8xf32, #tpu.memory_space<vmem>>, vector<1x128x8xf32>,
    %cst_44 = arith.constant dense<0.000000e+00> : vector<8xf32>
    %67 = vector.multi_reduction <add>, %64, %cst_44 [0] : vector<128x8xf32> to vector<8xf32>
    %68 = vector.shape_cast %67 : vector<8xf32> to vector<1x8xf32>
    %69 = arith.mulf %64, %64 : vector<128x8xf32>
    %cst_45 = arith.constant dense<0.000000e+00> : vector<8xf32>
    %70 = vector.multi_reduction <add>, %69, %cst_45 [0] : vector<128x8xf32> to vector<8xf32>
    %71 = vector.shape_cast %70 : vector<8xf32> to vector<1x8xf32>
    %72 = tpu.concatenate %68, %71 in 0 : vector<1x8xf32>, vector<1x8xf32> -> vector<2x8xf32>
    %73 = vector.shape_cast %72 : vector<2x8xf32> to vector<1x2x8xf32>
    %c0_46 = arith.constant 0 : index
    %c0_47 = arith.constant 0 : index
    %c0_48 = arith.constant 0 : index
    %74 = vector.load %arg8[%c0_46, %c0_47, %c0_48] : memref<1x2x8xf32, #tpu.memory_space<vmem>>, vector<1x2x8xf32>
    tpu.vector_store %arg8[%c0_46, %c0_47, %c0_48], %73 {strides = array<i32>} : memref<1x2x8xf32, #tpu.memory_space<vmem>>, vector<1x2x8xf32>,
    return
  }
  func.func @transform_0(%arg0: i32, %arg1: i32) -> (i32, i32, i32, i32) {
    %c0_i32 = arith.constant 0 : i32
    %c0_i32_0 = arith.constant 0 : i32
    %c0_i32_1 = arith.constant 0 : i32
    return %arg0, %arg1, %c0_i32, %c0_i32_0 : i32, i32, i32, i32
  }
  func.func @transform_1(%arg0: i32, %arg1: i32) -> (i32, i32, i32, i32) {
    %c0_i32 = arith.constant 0 : i32
    %c0_i32_0 = arith.constant 0 : i32
    %c0_i32_1 = arith.constant 0 : i32
    return %arg0, %arg1, %c0_i32, %c0_i32_0 : i32, i32, i32, i32
  }
  func.func @transform_2(%arg0: i32, %arg1: i32) -> (i32, i32, i32, i32) {
    %c0_i32 = arith.constant 0 : i32
    %c0_i32_0 = arith.constant 0 : i32
    %c0_i32_1 = arith.constant 0 : i32
    return %arg0, %arg1, %c0_i32, %c0_i32_0 : i32, i32, i32, i32
  }
  func.func @transform_3(%arg0: i32, %arg1: i32) -> (i32, i32, i32) {
    %c0_i32 = arith.constant 0 : i32
    %c0_i32_0 = arith.constant 0 : i32
    %c0_i32_1 = arith.constant 0 : i32
    %c0_i32_2 = arith.constant 0 : i32
    return %c0_i32, %c0_i32_0, %c0_i32_1 : i32, i32, i32
  }
  func.func @transform_4(%arg0: i32, %arg1: i32) -> (i32, i32) {
    %c0_i32 = arith.constant 0 : i32
    %c0_i32_0 = arith.constant 0 : i32
    %c0_i32_1 = arith.constant 0 : i32
    return %c0_i32, %c0_i32_0 : i32, i32
  }
  func.func @transform_5(%arg0: i32, %arg1: i32) -> (i32, i32, i32) {
    %c2_i32 = arith.constant 2 : i32
    %0 = arith.muli %arg0, %c2_i32 : i32
    %1 = arith.addi %0, %arg1 : i32
    %c0_i32 = arith.constant 0 : i32
    %c0_i32_0 = arith.constant 0 : i32
    %c0_i32_1 = arith.constant 0 : i32
    return %1, %c0_i32, %c0_i32_0 : i32, i32, i32
  }
  func.func @transform_6(%arg0: i32, %arg1: i32) -> (i32, i32, i32) {
    %c2_i32 = arith.constant 2 : i32
    %0 = arith.muli %arg0, %c2_i32 : i32
    %1 = arith.addi %0, %arg1 : i32
    %c0_i32 = arith.constant 0 : i32
    %c0_i32_0 = arith.constant 0 : i32
    %c0_i32_1 = arith.constant 0 : i32
    return %1, %c0_i32, %c0_i32_0 : i32, i32, i32
  }
}

</mosaic_0001>

<bundles_post_ra>
// kernel: tile.23
= control target key start
LH: loop header
LB: loop body
LE: loop exit
PB: predicated region body
PF: predicated region fallthrough
CT: control target
= control target key end

     0   :  { %s28_s0 = inlined_call_operand.vmem [shape: f32[8], index: 0, kind: input, shape index: {}]   ;;  %s29_s1 = inlined_call_operand.vmem [shape: f32[16,8], index: 1, kind: output, shape index: {}]  }
   0x1   :  { %v4_v0 = vld [vmem:[%s28_s0] ss:$0 sm:$0xff] }
   0x2   :  { %5 = vst [vmem:[%s29_s1] sm:$0xff] %v4_v0 }
   0x3   :  { %8 = vst [vmem:[%s29_s1 + $0x8] sm:$0xff] %v4_v0 }

// kernel: tile.24
= control target key start
LH: loop header
LB: loop body
LE: loop exit
PB: predicated region body
PF: predicated region fallthrough
CT: control target
= control target key end

     0   :  { %s131_s10 = smov 120   ;;  %s132_s11 = smov 104   ;;  %vm3_vm0 = vcmask 64512   ;;  %vm9_vm1 = vcmask 1048512   ;;  %vm15_vm2 = vcmask 982912   ;;  %vm21_vm3 = vcmask 917312   ;;  %s207_s0 = inlined_call_operand.vmem [shape: f32[16,8], index: 0, kind: input, shape index: {}]   ;;  %s208_s1 = inlined_call_operand.vmem [shape: f32[1,128], index: 1, kind: output, shape index: {}]  }
   0x1   :  { %v101_v0 = vld [vmem:[%s207_s0 + $0xf] sm:$0x1]   ;;  %v103_v1 = vld [vmem:[%s207_s0 + $0xd] sm:$0x1]   ;;  %v105_v2 = vld [vmem:[%s207_s0 + $0xb] sm:$0x1]  }
   0x2   :  { %7 = vrot.lane.b32.xlu0 %v101_v0, %s131_s10  ;;  %19 = vrot.lane.b32.xlu1 %v103_v1, %s132_s11  ;;  %s133_s14 = smov 88   ;;  %v102_v3 = vld [vmem:[%s207_s0 + $0xe] sm:$0x1]   ;;  %v104_v4 = vld [vmem:[%s207_s0 + $0xc] sm:$0x1]   ;;  %s134_s19 = smov 112  }
   0x3   :  { %31 = vrot.lane.b32.xlu2 %v105_v2, %s133_s14  ;;  %s135_s20 = smov 96   ;;  %v106_v5 = vld [vmem:[%s207_s0 + $0xa] sm:$0x1]   ;;  %s136_s23 = smov 80   ;;  %v107_v6 = vld [vmem:[%s207_s0 + $0x9] sm:$0x1]  }
   0x4   :  { %v108_v7 = vld [vmem:[%s207_s0 + $0x8] sm:$0x1]   ;;  %s137_s28 = smov 72   ;;  %s138_s29 = smov 64   ;;  %v109_v8 = vld [vmem:[%s207_s0 + $0x7] sm:$0x1]  }
   0x5   :  { %s139_s3 = smov 56   ;;  %v110_v9 = vld [vmem:[%s207_s0 + $0x6] sm:$0x1]   ;;  %v111_v10 = vld [vmem:[%s207_s0 + $0x5] sm:$0x1]   ;;  %s140_s8 = smov 48  }
   0x6   :  { %s141_s9 = smov 40   ;;  %v112_v11 = vld [vmem:[%s207_s0 + $0x4] sm:$0x1]   ;;  %s142_s12 = smov 32   ;;  %v113_v12 = vld [vmem:[%s207_s0 + $0x3] sm:$0x1]  }
   0x7   :  { %v114_v13 = vld [vmem:[%s207_s0 + $0x2] sm:$0x1]   ;;  %s143_s17 = smov 24   ;;  %s144_s18 = smov 16   ;;  %v115_v14 = vld [vmem:[%s207_s0 + $0x1] sm:$0x1]  }
   0x8   :  { %s145_s21 = smov 8   ;;  %v2_v15 = vld [vmem:[%s207_s0] sm:$0x1]   ;;  %vm27_vm4 = vcmask 851712   ;;  %vm33_vm5 = vcmask 786112   ;;  %vm39_vm6 = vcmask 720512  }
   0x9   :  { %4 = vst.msk [vmem:[#allocation0] sm:$0x1] %vm3_vm0, %v2_v15   ;;  %vm45_vm7 = vcmask 654912   ;;  %vm51_vm8 = vcmask 589312   ;;  %vm57_vm9 = vcmask 523712   ;;  %vm63_vm10 = vcmask 458112  }
   0xa   :  { %13 = vrot.lane.b32.xlu0 %v102_v3, %s134_s19  ;;  %25 = vrot.lane.b32.xlu1 %v104_v4, %s135_s20  ;;  %vm69_vm11 = vcmask 392512   ;;  %vm75_vm12 = vcmask 326912   ;;  %vm81_vm13 = vcmask 261312   ;;  %vm87_vm14 = vcmask 195712  }
   0xb   :  { %37 = vrot.lane.b32.xlu2 %v106_v5, %s136_s23  ;;  %vm93_vm15 = vcmask 130112  }
  0x12   :  { %43 = vrot.lane.b32.xlu0 %v107_v6, %s137_s28  ;;  %49 = vrot.lane.b32.xlu1 %v108_v7, %s138_s29 }
  0x13   :  { %55 = vrot.lane.b32.xlu2 %v109_v8, %s139_s3 }
  0x1a   :  { %61 = vrot.lane.b32.xlu0 %v110_v9, %s140_s8  ;;  %67 = vrot.lane.b32.xlu1 %v111_v10, %s141_s9 }
  0x1b   :  { %73 = vrot.lane.b32.xlu2 %v112_v11, %s142_s12 }
  0x22   :  { %79 = vrot.lane.b32.xlu0 %v113_v12, %s143_s17  ;;  %85 = vrot.lane.b32.xlu1 %v114_v13, %s144_s18 }
  0x23   :  { %91 = vrot.lane.b32.xlu2 %v115_v14, %s145_s21 }
  0x5d   :  { %v32_v16 = vpop.permute.xlu2 %31  }
  0x65   :  { %v38_v17 = vpop.permute.xlu2 %37  }
  0x6d   :  { %v56_v18 = vpop.permute.xlu2 %55  }
  0x74   :  { %v8_v19 = vpop.permute.xlu0 %7   ;;  %v20_v20 = vpop.permute.xlu1 %19  }
  0x75   :  { %10 = vst.msk [vmem:[#allocation0] sm:$0x1] %vm9_vm1, %v8_v19   ;;  %v74_v21 = vpop.permute.xlu2 %73  }
  0x7c   :  { %v14_v22 = vpop.permute.xlu0 %13   ;;  %v26_v23 = vpop.permute.xlu1 %25  }
  0x7d   :  { %16 = vst.msk [vmem:[#allocation0] sm:$0x1] %vm15_vm2, %v14_v22   ;;  %v92_v24 = vpop.permute.xlu2 %91  }
  0x7e   :  { %22 = vst.msk [vmem:[#allocation0] sm:$0x1] %vm21_vm3, %v20_v20  }
  0x7f   :  { %28 = vst.msk [vmem:[#allocation0] sm:$0x1] %vm27_vm4, %v26_v23  }
  0x80   :  { %34 = vst.msk [vmem:[#allocation0] sm:$0x1] %vm33_vm5, %v32_v16  }
  0x81   :  { %40 = vst.msk [vmem:[#allocation0] sm:$0x1] %vm39_vm6, %v38_v17  }
  0x84   :  { %v44_v25 = vpop.permute.xlu0 %43   ;;  %v50_v26 = vpop.permute.xlu1 %49  }
  0x85   :  { %46 = vst.msk [vmem:[#allocation0] sm:$0x1] %vm45_vm7, %v44_v25  }
  0x86   :  { %52 = vst.msk [vmem:[#allocation0] sm:$0x1] %vm51_vm8, %v50_v26  }
  0x87   :  { %58 = vst.msk [vmem:[#allocation0] sm:$0x1] %vm57_vm9, %v56_v18  }
  0x8c   :  { %v62_v27 = vpop.permute.xlu0 %61   ;;  %v68_v28 = vpop.permute.xlu1 %67  }
  0x8d   :  { %64 = vst.msk [vmem:[#allocation0] sm:$0x1] %vm63_vm10, %v62_v27  }
  0x8e   :  { %70 = vst.msk [vmem:[#allocation0] sm:$0x1] %vm69_vm11, %v68_v28  }
  0x8f   :  { %76 = vst.msk [vmem:[#allocation0] sm:$0x1] %vm75_vm12, %v74_v21  }
  0x94   :  { %v80_v29 = vpop.permute.xlu0 %79   ;;  %v86_v30 = vpop.permute.xlu1 %85  }
  0x95   :  { %82 = vst.msk [vmem:[#allocation0] sm:$0x1] %vm81_vm13, %v80_v29  }
  0x96   :  { %88 = vst.msk [vmem:[#allocation0] sm:$0x1] %vm87_vm14, %v86_v30  }
  0x97   :  { %94 = vst.msk [vmem:[#allocation0] sm:$0x1] %vm93_vm15, %v92_v24  }
  0x9e   :  { %v97_v31 = vld [vmem:[#allocation0] sm:$0x1] }
  0x9f   :  { %100 = vst [vmem:[%s208_s1] sm:$0x1] %v97_v31 }

// kernel: _lambda_.5
= control target key start
LH: loop header
LB: loop body
LE: loop exit
PB: predicated region body
PF: predicated region fallthrough
CT: control target
= control target key end

     0   :  { %s130_s0 = inlined_call_operand.vmem [shape: f32[32,128], index: 0, kind: input, shape index: {}]   ;;  %s131_s1 = inlined_call_operand.vmem [shape: f32[1,128], index: 1, kind: input, shape index: {}]   ;;  %s132_s2 = inlined_call_operand.vmem [shape: f32[1,128], index: 2, kind: input, shape index: {}]   ;;  %s133_s3 = inlined_call_operand.vmem [shape: f32[32,128], index: 3, kind: output, shape index: {}]  }
   0x1   :  { %v14_v0 = vld [vmem:[%s130_s0] sm:$0xff]  ;;  %v15_v3 = vld [vmem:[%s130_s0 + $0x8] sm:$0xff]  ;;  %v16_v6 = vld [vmem:[%s130_s0 + $0x10] sm:$0xff] }
   0x2   :  { %v70_v1 = vld [vmem:[%s131_s1] ss:$0 sm:$0xff]  ;;  %v17_v7 = vld [vmem:[%s130_s0 + $0x18] sm:$0xff] }
   0x3   :  { %v71_v2 = vld [vmem:[%s132_s2] ss:$0 sm:$0xff]  ;;  %v22_v4 = vmul.f32 %v70_v1, %v14_v0  ;;  %v23_v5 = vmul.f32 %v70_v1, %v15_v3  ;;  %v24_v8 = vmul.f32 %v70_v1, %v16_v6  ;;  %v25_v9 = vmul.f32 %v70_v1, %v17_v7 }
   0x5   :  { %v30_v10 = vadd.f32 %v71_v2, %v22_v4  ;;  %v31_v11 = vadd.f32 %v71_v2, %v23_v5  ;;  %v32_v12 = vadd.f32 %v71_v2, %v24_v8  ;;  %v33_v13 = vadd.f32 %v71_v2, %v25_v9 }
   0x7   :  { %v38_v14 = vmin.f32 %v30_v10, 0.0  ;;  %v39_v15 = vmin.f32 %v31_v11, 0.0  ;;  %v40_v16 = vmin.f32 %v32_v12, 0.0  ;;  %v41_v17 = vmin.f32 %v33_v13, 0.0 }
   0x8   :  { %vm34_vm0 = vcmp.gt.f32.partialorder %v30_v10, 0.0  ;;  %vm35_vm1 = vcmp.gt.f32.partialorder %v31_v11, 0.0  ;;  %vm36_vm2 = vcmp.gt.f32.partialorder %v32_v12, 0.0  ;;  %vm37_vm3 = vcmp.gt.f32.partialorder %v33_v13, 0.0 }
   0x9   :  { %v42_v18 = vmul.f32 1.442695, %v38_v14  ;;  %v44_v19 = vmul.f32 1.442695, %v39_v15  ;;  %v46_v20 = vmul.f32 1.442695, %v40_v16 }
   0xa   :  { %v48_v21 = vmul.f32 1.442695, %v41_v17 }
   0xb   :  { %72 = vpow2.f32 %v42_v18 }
   0xc   :  { %74 = vpow2.f32 %v44_v19 }
   0xd   :  { %76 = vpow2.f32 %v46_v20 }
   0xe   :  { %78 = vpow2.f32 %v48_v21 }
  0x11   :  { %v73_v22 = vpop.eup %72 }
  0x12   :  { %v75_v23 = vpop.eup %74  ;;  %v66_v24 = vadd.f32 -1.0, %v73_v22 }
  0x13   :  { %v77_v25 = vpop.eup %76  ;;  %v67_v26 = vadd.f32 -1.0, %v75_v23 }
  0x14   :  { %v79_v27 = vpop.eup %78  ;;  %v54_v28 = vsel %vm34_vm0, %v30_v10, %v66_v24  ;;  %v68_v29 = vadd.f32 -1.0, %v77_v25 }
  0x15   :  { %58 = vst [vmem:[%s133_s3] sm:$0xff] %v54_v28  ;;  %v55_v30 = vsel %vm35_vm1, %v31_v11, %v67_v26  ;;  %v69_v31 = vadd.f32 -1.0, %v79_v27 }
  0x16   :  { %59 = vst [vmem:[%s133_s3 + $0x8] sm:$0xff] %v55_v30  ;;  %v56_v32 = vsel %vm36_vm2, %v32_v12, %v68_v29 }
  0x17   :  { %60 = vst [vmem:[%s133_s3 + $0x10] sm:$0xff] %v56_v32  ;;  %v57_v33 = vsel %vm37_vm3, %v33_v13, %v69_v31 }
  0x18   :  { %61 = vst [vmem:[%s133_s3 + $0x18] sm:$0xff] %v57_v33 }

// kernel: _lambda_.4
= control target key start
LH: loop header
LB: loop body
LE: loop exit
PB: predicated region body
PF: predicated region fallthrough
CT: control target
= control target key end

     0   :  { %s2978_s21 = smov 0   ;;  %s2980_s22 = smov 0   ;;  %s3966_s0 = inlined_call_operand.vmem [shape: bf16[2,16,18,4], index: 0, kind: input, shape index: {}]   ;;  %s3967_s1 = inlined_call_operand.vmem [shape: bf16[2,16,18,4], index: 1, kind: input, shape index: {}]   ;;  %s3968_s2 = inlined_call_operand.vmem [shape: bf16[2,16,18,4], index: 2, kind: input, shape index: {}]   ;;  %s3969_s3 = inlined_call_operand.vmem [shape: bf16[9,4,128], index: 3, kind: input, shape index: {}]   ;;  %s3970_s4 = inlined_call_operand.vmem [shape: f32[1,8], index: 4, kind: input, shape index: {}]   ;;  %s3971_s5 = inlined_call_operand.vmem [shape: f32[4,128,8], index: 5, kind: output, shape index: {0}]   ;;  %s3972_s6 = inlined_call_operand.vmem [shape: f32[4,2,8], index: 6, kind: output, shape index: {1}]  }
   0x1   :  { %s2982_s23 = smov 0   ;;  %s2984_s24 = smov 0  }
   0x2   :  { %s2986_s25 = smov 0  }
   0x3 LB: > { %s26_s26 = sadd.s32 1, %s2933_s23  ;;  %s29_s27 = sadd.s32 1, %s2937_s24  ;;  %s2941_s25 = sphi %s2986_s25, %s17_s25   ;;  %s2937_s24 = sphi %s2984_s24, %s3984_s24   ;;  %s2933_s23 = sphi %s2982_s23, %s3983_s23   ;;  %s2929_s22 = sphi %s2980_s22, %s3982_s22   ;;  %s2925_s21 = sphi %s2978_s21, %s3981_s21  }
   0x4   : > { %p27_p0 = scmp.ge.s32.totalorder %s26_s26, 2  ;;  %p2618_p1 = scmp.ge.s32.totalorder %s2941_s25, 1 }
   0x5   : > { %p279_p2 = scmp.lt.s32.totalorder %s2941_s25, 5 }
   0x6   : > { %s3986_s26 = smov (%p27_p0, %s26_s26), 0  ;;  %s3988_s27 = smov (!%p27_p0, %s29_s27), %s2937_s24 }
   0x7   : > { %p280_p3 = pnand %p2618_p1, %p279_p2  ;;  %p31_p4 = scmp.ge.s32.totalorder %s3988_s27, 2 }
   0x9   : > { %s3990_s27 = smov (%p31_p4, %s3988_s27), 0  ;;  %283 = sbr.rel (%p280_p3) target bundleno = 487 (0x1e7), region = 40 }
   0xe   : > { %v2630_v0 = vld [vmem:[%s3969_s3 + $0x2] sm:$0x3]  ;;  %vm712_vm0 = vcmask 1041408   ;;  %s2619_s30 = sshll.u32 %s2925_s21, 3  ;;  %p343_p5 = scmp.lt.s32.totalorder %s2929_s22, 1  ;;  %vm687_vm3 = vcmask 31744  }
   0xf   : > { %v714_v1 = vsel %vm712_vm0, %v2630_v0, 0  ;;  %p345_p6 = scmp.lt.s32.totalorder %s2619_s30, 15  ;;  %v2687_v2 = vld [vmem:[%s3969_s3 + $0x4] sm:$0x3]  ;;  %v2696_v4 = vld [vmem:[%s3969_s3 + $0x6] sm:$0x3] }
  0x10   : > { %2857 = vmatpush.bf16.msra.mxu1 %v714_v1  ;;  %2858 = vmatpush.bf16.msra.mxu2 %v714_v1  ;;  %s344_s7 = scalar_select %p343_p5, %s2929_s22, 1  ;;  %v999_v3 = vsel %vm712_vm0, %v2687_v2, 0  ;;  %v465_v5 = vld [vmem:[%s3969_s3] sm:$0x3]  ;;  %v2737_v6 = vld [vmem:[%s3969_s3 + $0x8] sm:$0x3] }
  0x11   : > { %2859 = vmatpush.bf16.msra.mxu3 %v714_v1  ;;  %723 = vmatpush.bf16.msra.mxu0 %v714_v1  ;;  %s3992_s30 = smov (!%p345_p6, %s2619_s30), 15  ;;  %v1133_v7 = vsel %vm712_vm0, %v2696_v4, 0  ;;  %v830_v8 = vsel %vm712_vm0, %v465_v5, 0  ;;  %v1443_v9 = vsel %vm712_vm0, %v2737_v6, 0  ;;  %vm466_vm1 = vsmask.f32 3328 }
  0x12   : > { %s2861_s10 = smul.u32 48, %s344_s7  ;;  %vm467_vm2 = vsmask.f32 7440  ;;  %vm889_vm5 = vcmask 1042432   ;;  %vm890_vm6 = vcmask 1046532   ;;  %vm2338_vm8 = vcmask 64512  }
  0x13   : > { %s2860_s11 = smul.u32 3, %s3992_s30  ;;  %vm3079_vm4 = vmor %vm466_vm1, %vm467_vm2  ;;  %vm2445_vm9 = vcmask 1040384   ;;  %vm2447_vm10 = vcmask 58368  }
  0x14   : > { %1008 = vmatpush.bf16.msrb.mxu2 %v999_v3  ;;  %839 = vmatpush.bf16.msrb.mxu1 %v830_v8  ;;  %vm3219_vm7 = vmor %vm889_vm5, %vm890_vm6 }
  0x15   : > { %s349_s18 = sadd.s32 %s2861_s10, %s2860_s11  ;;  %1142 = vmatpush.bf16.msrb.mxu3 %v1133_v7  ;;  %1452 = vmatpush.bf16.msrb.mxu0 %v1443_v9 }
  0x16   : > { %s3035_s19 = sshll.u32 %s349_s18, 2 }
  0x17   : > { %s3041_s29 = scalar_lea.vmem %s3966_s0, %s3035_s19  ;;  %s3194_s8 = scalar_lea.vmem %s3967_s1, %s3035_s19 }
  0x18   : > { %v3044_v10 = vld [vmem:[%s3041_s29 + $0x18] sm:$0xf]  ;;  %v3047_v11 = vld [vmem:[%s3041_s29 + $0x1c] sm:$0xf]  ;;  %v3050_v12 = vld [vmem:[%s3041_s29 + $0x20] sm:$0x1]  ;;  %s3468_s20 = scalar_lea.vmem %s3968_s2, %s3035_s19 }
  0x19   : > { %v518_v13 = vshrl.u32 %v3044_v10, 16  ;;  %v521_v14 = vshll.u32 %v3044_v10, 16  ;;  %v527_v15 = vshll.u32 %v3047_v11, 16  ;;  %v531_v16 = vshrl.u32 %v3047_v11, 16  ;;  %v3057_v17 = vld [vmem:[%s3041_s29 + $0x30] sm:$0xf] }
  0x1a   : > { %v537_v18 = vshll.u32 %v3050_v12, 16  ;;  %v3061_v19 = vld [vmem:[%s3041_s29 + $0x34] sm:$0xf]  ;;  %v3064_v20 = vld [vmem:[%s3041_s29 + $0x38] sm:$0x1]  ;;  %v566_v21 = vshrl.u32 %v3057_v17, 16 }
  0x1b   : > { %v520_v22 = vrot.slane %v518_v13, 4  ;;  %v523_v23 = vrot.slane %v521_v14, 5  ;;  %v529_v24 = vrot.slane %v527_v15, 5  ;;  %v533_v25 = vrot.slane %v531_v16, 4  ;;  %v3068_v26 = vld [vmem:[%s3041_s29 + $0x48] sm:$0xf] }
  0x1c   : > { %v539_v27 = vrot.slane %v537_v18, 5  ;;  %v568_v28 = vrot.slane %v566_v21, 4  ;;  %v569_v29 = vshll.u32 %v3057_v17, 16  ;;  %v575_v30 = vshll.u32 %v3061_v19, 16  ;;  %v3075_v35 = vld [vmem:[%s3041_s29 + $0x4c] sm:$0xf] }
  0x1d   : > { %v524_v31 = vor.u32 %v523_v23, %v520_v22  ;;  %v534_v32 = vor.u32 %v533_v25, %v529_v24  ;;  %v579_v33 = vshrl.u32 %v3061_v19, 16  ;;  %v585_v34 = vshll.u32 %v3064_v20, 16  ;;  %v3086_v46 = vld [vmem:[%s3041_s29 + $0x50] sm:$0x1]  ;;  %v3095_v54 = vld [vmem:[%s3041_s29] sm:$0xf] }
  0x1e   : > { %v571_v37 = vrot.slane %v569_v29, 5  ;;  %v577_v38 = vrot.slane %v575_v30, 5  ;;  %v614_v39 = vshrl.u32 %v3068_v26, 16  ;;  %v617_v40 = vshll.u32 %v3068_v26, 16  ;;  %v3101_v2 = vld [vmem:[%s3041_s29 + $0x4] sm:$0xf] }
  0x1f   : > { %v525_v41 = vrot.slane %v524_v31, 4  ;;  %v535_v42 = vrot.slane %v534_v32, 4  ;;  %v581_v43 = vrot.slane %v579_v33, 4  ;;  %v587_v44 = vrot.slane %v585_v34, 5  ;;  %v3107_v8 = vld [vmem:[%s3041_s29 + $0x8] sm:$0x1] }
  0x20   : > { %v572_v45 = vor.u32 %v571_v37, %v568_v28  ;;  %v616_v47 = vrot.slane %v614_v39, 4  ;;  %v619_v48 = vrot.slane %v617_v40, 5  ;;  %v623_v49 = vshll.u32 %v3075_v35, 16  ;;  %v3114_v16 = vld [vmem:[%s3041_s29 + $0x24] sm:$0xf]  ;;  %s2625_s19 = sshll.u32 %s2929_s22, 1 }
  0x21   : > { %v530_v50 = vsel %vm3079_vm4, %v525_v41, %v529_v24  ;;  %v540_v51 = vsel %vm3079_vm4, %v535_v42, %v539_v27  ;;  %v582_v52 = vor.u32 %v581_v43, %v577_v38  ;;  %v627_v53 = vshrl.u32 %v3075_v35, 16  ;;  %v3121_v29 = vld [vmem:[%s3041_s29 + $0x28] sm:$0xf]  ;;  %v3126_v33 = vld [vmem:[%s3041_s29 + $0x2c] sm:$0x1]  ;;  %s376_s28 = sadd.s32 %s2925_s21, %s2625_s19 }
  0x22   : > { %v667_v55 = vunpack.c.l.b16 %v530_v50  ;;  %v668_v56 = vunpack.c.l.b16 %v540_v51  ;;  %v573_v57 = vrot.slane %v572_v45, 4  ;;  %v620_v58 = vor.u32 %v619_v48, %v616_v47  ;;  %v3132_v41 = vld [vmem:[%s3041_s29 + $0x3c] sm:$0xf]  ;;  %p377_p7 = scmp.lt.s32.totalorder %s376_s28, 3 }
  0x23   : > { %v583_v59 = vrot.slane %v582_v52, 4  ;;  %v625_v60 = vrot.slane %v623_v49, 5  ;;  %v629_v61 = vrot.slane %v627_v53, 4  ;;  %v633_v62 = vshll.u32 %v3086_v46, 16 }
  0x24   : > { %v681_v63 = vpack.c.b16 %v668_v56, %v667_v55  ;;  %v578_v0 = vsel %vm3079_vm4, %v573_v57, %v577_v38  ;;  %v621_v1 = vrot.slane %v620_v58, 4  ;;  %v470_v3 = vshrl.u32 %v3095_v54, 16  ;;  %v3138_v55 = vld [vmem:[%s3041_s29 + $0x40] sm:$0xf]  ;;  %s3994_s28 = smov (!%p377_p7, %s376_s28), 3 }
  0x25   : > { %v588_v4 = vsel %vm3079_vm4, %v583_v59, %v587_v44  ;;  %v671_v5 = vunpack.c.l.b16 %v578_v0  ;;  %v630_v6 = vor.u32 %v629_v61, %v625_v60  ;;  %v635_v7 = vrot.slane %v633_v62, 5  ;;  %v3149_v62 = vld [vmem:[%s3041_s29 + $0x54] sm:$0xf]  ;;  %s2832_s22 = sshll.u32 %s3994_s28, 7  ;;  %s2629_s9 = sshll.u32 %s3994_s28, 1 }
  0x26   : > { %2633 = vmatmul.msk.bf16.vlgmr.msra.gmra.mxu1 %vm687_vm3, %v681_v63  ;;  %v672_v9 = vunpack.c.l.b16 %v588_v4  ;;  %v626_v13 = vsel %vm3079_vm4, %v621_v1, %v625_v60  ;;  %v472_v14 = vrot.slane %v470_v3, 4  ;;  %v473_v15 = vshll.u32 %v3095_v54, 16  ;;  %v3145_v60 = vld [vmem:[%s3041_s29 + $0x44] sm:$0x1]  ;;  %s389_s12 = scalar_lea.vmem %s3972_s6, %s2629_s9 }
  0x27   : > { %v631_v18 = vrot.slane %v630_v6, 4  ;;  %v675_v21 = vunpack.c.l.b16 %v626_v13  ;;  %v479_v22 = vshll.u32 %v3101_v2, 16  ;;  %v483_v23 = vshrl.u32 %v3101_v2, 16 }
  0x28   : > { %v683_v24 = vpack.c.b16 %v672_v9, %v671_v5  ;;  %v475_v25 = vrot.slane %v473_v15, 5  ;;  %v489_v27 = vshll.u32 %v3107_v8, 16  ;;  %v897_v28 = vrot.slane %v3107_v8, 5 }
  0x29   : > { %v636_v30 = vsel %vm3079_vm4, %v631_v18, %v635_v7  ;;  %v481_v31 = vrot.slane %v479_v22, 5  ;;  %v485_v32 = vrot.slane %v483_v23, 4  ;;  %v542_v34 = vshrl.u32 %v3114_v16, 16 }
  0x2a   : > { %2635 = vmatmul.msk.bf16.vlgmr.msra.gmra.mxu2 %vm687_vm3, %v683_v24  ;;  %v676_v37 = vunpack.c.l.b16 %v636_v30  ;;  %v476_v38 = vor.u32 %v475_v25, %v472_v14  ;;  %v491_v39 = vrot.slane %v489_v27, 5  ;;  %v545_v40 = vshll.u32 %v3114_v16, 16  ;;  %v3160_v24 = vld [vmem:[%s3041_s29 + $0x58] sm:$0xf]  ;;  %v3163_v25 = vld [vmem:[%s3041_s29 + $0x5c] sm:$0x1] }
  0x2b   : > { %v486_v42 = vor.u32 %v485_v32, %v481_v31  ;;  %v544_v43 = vrot.slane %v542_v34, 4  ;;  %v551_v44 = vshll.u32 %v3121_v29, 16  ;;  %v555_v45 = vshrl.u32 %v3121_v29, 16  ;;  %v3168_v34 = vld [vmem:[%s3041_s29 + $0xc] sm:$0xf] }
  0x2c   : > { %v685_v47 = vpack.c.b16 %v676_v37, %v675_v21  ;;  %v477_v48 = vrot.slane %v476_v38, 4  ;;  %v547_v49 = vrot.slane %v545_v40, 5  ;;  %v561_v50 = vshll.u32 %v3126_v33, 16 }
  0x2d   : > { %v487_v51 = vrot.slane %v486_v42, 4  ;;  %v553_v52 = vrot.slane %v551_v44, 5  ;;  %v557_v53 = vrot.slane %v555_v45, 4  ;;  %v590_v56 = vshrl.u32 %v3132_v41, 16 }
  0x2e   : > { %2637 = vmatmul.msk.bf16.vlgmr.msra.gmra.mxu3 %vm687_vm3, %v685_v47  ;;  %v482_v57 = vsel %vm3079_vm4, %v477_v48, %v481_v31  ;;  %v548_v58 = vor.u32 %v547_v49, %v544_v43  ;;  %v563_v59 = vrot.slane %v561_v50, 5  ;;  %v593_v61 = vshll.u32 %v3132_v41, 16  ;;  %v3178_v50 = vld [vmem:[%s3041_s29 + $0x10] sm:$0xf] }
  0x2f   : > { %v492_v63 = vsel %vm3079_vm4, %v487_v51, %v491_v39  ;;  %v663_v0 = vunpack.c.l.b16 %v482_v57  ;;  %v558_v1 = vor.u32 %v557_v53, %v553_v52  ;;  %v592_v3 = vrot.slane %v590_v56, 4 }
  0x30   : > { %v664_v4 = vunpack.c.l.b16 %v492_v63  ;;  %v549_v5 = vrot.slane %v548_v58, 4  ;;  %v595_v6 = vrot.slane %v593_v61, 5  ;;  %v599_v7 = vshll.u32 %v3138_v55, 16  ;;  %v3182_v58 = vld [vmem:[%s3041_s29 + $0x14] sm:$0x1] }
  0x31   : > { %v559_v9 = vrot.slane %v558_v1, 4  ;;  %v603_v13 = vshrl.u32 %v3138_v55, 16  ;;  %v609_v14 = vshll.u32 %v3145_v60, 16  ;;  %v638_v15 = vshrl.u32 %v3149_v62, 16 }
  0x32   : > { %v679_v18 = vpack.c.b16 %v664_v4, %v663_v0  ;;  %v554_v21 = vsel %vm3079_vm4, %v549_v5, %v553_v52  ;;  %v596_v22 = vor.u32 %v595_v6, %v592_v3  ;;  %v601_v23 = vrot.slane %v599_v7, 5 }
  0x33   : > { %v564_v27 = vsel %vm3079_vm4, %v559_v9, %v563_v59  ;;  %v669_v30 = vunpack.c.l.b16 %v554_v21  ;;  %v605_v31 = vrot.slane %v603_v13, 4  ;;  %v611_v32 = vrot.slane %v609_v14, 5 }
  0x34   : > { %2631 = vmatmul.msk.bf16.vlgmr.msra.gmra.mxu0 %vm687_vm3, %v679_v18  ;;  %v670_v37 = vunpack.c.l.b16 %v564_v27  ;;  %v597_v38 = vrot.slane %v596_v22, 4  ;;  %v640_v39 = vrot.slane %v638_v15, 4  ;;  %v641_v40 = vshll.u32 %v3149_v62, 16 }
  0x35   : > { %v606_v42 = vor.u32 %v605_v31, %v601_v23  ;;  %v647_v43 = vshll.u32 %v3160_v24, 16  ;;  %v651_v44 = vshrl.u32 %v3160_v24, 16  ;;  %v657_v45 = vshll.u32 %v3163_v25, 16  ;;  %v3203_v31 = vld [vmem:[%s3194_s8] sm:$0xf] }
  0x36   : > { %v682_v47 = vpack.c.b16 %v670_v37, %v669_v30  ;;  %v602_v48 = vsel %vm3079_vm4, %v597_v38, %v601_v23  ;;  %v643_v49 = vrot.slane %v641_v40, 5  ;;  %v494_v51 = vshrl.u32 %v3168_v34, 16  ;;  %v2763_v30 = vld [vmem:[%s3969_s3 + $0xc] sm:$0x3] }
  0x37   : > { %v607_v52 = vrot.slane %v606_v42, 4  ;;  %v673_v53 = vunpack.c.l.b16 %v602_v48  ;;  %v649_v56 = vrot.slane %v647_v43, 5  ;;  %v653_v57 = vrot.slane %v651_v44, 4 }
  0x38   : > { %2634 = vmatmul.msk.bf16.gmra.mxu1 %vm687_vm3, %v682_v47  ;;  %v644_v59 = vor.u32 %v643_v49, %v640_v39  ;;  %v659_v61 = vrot.slane %v657_v45, 5  ;;  %v496_v63 = vrot.slane %v494_v51, 4  ;;  %v497_v0 = vshll.u32 %v3168_v34, 16  ;;  %v3212_v47 = vld [vmem:[%s3194_s8 + $0x4] sm:$0xf] }
  0x39   : > { %v612_v1 = vsel %vm3079_vm4, %v607_v52, %v611_v32  ;;  %v654_v3 = vor.u32 %v653_v57, %v649_v56  ;;  %v503_v4 = vshll.u32 %v3178_v50, 16  ;;  %v507_v5 = vshrl.u32 %v3178_v50, 16 }
  0x3a   : > { %v674_v6 = vunpack.c.l.b16 %v612_v1  ;;  %v645_v7 = vrot.slane %v644_v59, 4  ;;  %v499_v9 = vrot.slane %v497_v0, 5  ;;  %v513_v13 = vshll.u32 %v3182_v58, 16 }
  0x3b   : > { %v655_v14 = vrot.slane %v654_v3, 4  ;;  %v505_v15 = vrot.slane %v503_v4, 5  ;;  %v509_v18 = vrot.slane %v507_v5, 4  ;;  %v2679_v42 = vrot.slane %v3095_v54, 9  ;;  %v2754_v3 = vld [vmem:[%s3969_s3 + $0xa] sm:$0x3] }
  0x3c   : > { %v684_v21 = vpack.c.b16 %v674_v6, %v673_v53  ;;  %v650_v22 = vsel %vm3079_vm4, %v645_v7, %v649_v56  ;;  %v500_v23 = vor.u32 %v499_v9, %v496_v63  ;;  %v515_v27 = vrot.slane %v513_v13, 5  ;;  %v2821_v9 = vld [vmem:[%s3969_s3 + $0x10] sm:$0x3] }
  0x3d   : > { %v660_v32 = vsel %vm3079_vm4, %v655_v14, %v659_v61  ;;  %v677_v37 = vunpack.c.l.b16 %v650_v22  ;;  %v510_v38 = vor.u32 %v509_v18, %v505_v15  ;;  %v894_v43 = vrot.slane %v3101_v2, 5  ;;  %v3224_v2 = vld [vmem:[%s3194_s8 + $0x8] sm:$0x1]  ;;  %v2804_v61 = vld [vmem:[%s3969_s3 + $0xe] sm:$0x3]  ;;  %v2833_v14 = vld [vmem:[%s3041_s29] sm:$0xff] }
  0x3e   : > { %2636 = vmatmul.msk.bf16.gmra.mxu2 %vm687_vm3, %v684_v21  ;;  %v678_v39 = vunpack.c.l.b16 %v660_v32  ;;  %v501_v40 = vrot.slane %v500_v23, 4  ;;  %v1759_v45 = vsel %vm712_vm0, %v2763_v30, 0  ;;  %v1201_v48 = vshrl.u32 %v3203_v31, 16 }
  0x3f   : > { %v511_v44 = vrot.slane %v510_v38, 4  ;;  %v1204_v49 = vshll.u32 %v3203_v31, 16  ;;  %v896_v54 = vrot.slane %v894_v43, 4  ;;  %1768 = vmatpush.bf16.msra.mxu2 %v1759_v45  ;;  %v1210_v1 = vshll.u32 %v3212_v47, 16  ;;  %v3253_v38 = vld [vmem:[%s3194_s8 + $0xc] sm:$0xf] }
  0x40   : > { %v686_v51 = vpack.c.b16 %v678_v39, %v677_v37  ;;  %v506_v52 = vsel %vm3079_vm4, %v501_v40, %v505_v15  ;;  %v1203_v59 = vrot.slane %v1201_v48, 4  ;;  %v895_v4 = vsel %vm3219_vm7, %v2679_v42, %v894_v43  ;;  %v3257_v39 = vld [vmem:[%s3194_s8 + $0x10] sm:$0xf] }
  0x41   : > { %v516_v56 = vsel %vm3079_vm4, %v511_v44, %v515_v27  ;;  %v665_v57 = vunpack.c.l.b16 %v506_v52  ;;  %v1206_v0 = vrot.slane %v1204_v49, 5  ;;  %v898_v5 = vsel %vm3219_vm7, %v896_v54, %v897_v28 }
  0x42   : > { %2638 = vmatmul.msk.bf16.gmra.mxu3 %vm687_vm3, %v686_v51  ;;  %v666_v63 = vunpack.c.l.b16 %v516_v56  ;;  %v1214_v6 = vshrl.u32 %v3212_v47, 16  ;;  %v1220_v7 = vshll.u32 %v3224_v2, 16  ;;  %v1212_v18 = vrot.slane %v1210_v1, 5 }
  0x43   : > { %v1207_v15 = vor.u32 %v1206_v0, %v1203_v59  ;;  %v2069_v21 = vsel %vm712_vm0, %v2804_v61, 0  ;;  %v1625_v28 = vsel %vm712_vm0, %v2754_v3, 0  ;;  %v950_v22 = vunpack.c.l.b16 %v895_v4  ;;  %v2841_v0 = vld [vmem:[%s3194_s8] sm:$0xff] }
  0x44   : > { %v680_v13 = vpack.c.b16 %v666_v63, %v665_v57  ;;  %v1216_v8 = vrot.slane %v1214_v6, 4  ;;  %2078 = vmatpush.bf16.msra.mxu3 %v2069_v21  ;;  %v951_v23 = vunpack.c.l.b16 %v898_v5  ;;  %1634 = vmatpush.bf16.msra.mxu1 %v1625_v28  ;;  %v2251_v30 = vsel %vm712_vm0, %v2821_v9, 0 }
  0x45   : > { %v1208_v27 = vrot.slane %v1207_v15, 4  ;;  %v1222_v37 = vrot.slane %v1220_v7, 5  ;;  %2260 = vmatpush.bf16.msra.mxu0 %v2251_v30  ;;  %v901_v42 = vrot.slane %v3178_v50, 5  ;;  %v1225_v45 = vshrl.u32 %v3253_v38, 16  ;;  %v3291_v30 = vld [vmem:[%s3194_s8 + $0x18] sm:$0xf] }
  0x46   : > { %2632 = vmatmul.msk.bf16.gmra.mxu0 %vm687_vm3, %v680_v13  ;;  %v1217_v32 = vor.u32 %v1216_v8, %v1212_v18  ;;  %v966_v43 = vpack.c.b16 %v951_v23, %v950_v22  ;;  %v1228_v48 = vshll.u32 %v3253_v38, 16  ;;  %v1234_v51 = vshll.u32 %v3257_v39, 16  ;;  %v2834_v8 = vld [vmem:[%s3041_s29 + $0xc] sm:$0xff] }
  0x47   : > { %v1213_v44 = vsel %vm3079_vm4, %v1208_v27, %v1212_v18  ;;  %v1238_v52 = vshrl.u32 %v3257_v39, 16  ;;  %v2681_v54 = vrot.slane %v3044_v10, 9  ;;  %v2680_v50 = vrot.slane %v3168_v34, 9 }
  0x48   : > { %2671 = vmatmul.msk.bf16.vlgmr.msrb.gmra.mxu1 %vm687_vm3, %v2833_v14  ;;  %v1218_v40 = vrot.slane %v1217_v32, 4  ;;  %v908_v56 = vrot.slane %v3047_v11, 5  ;;  %v1394_v57 = vunpack.c.l.b16 %v1213_v44  ;;  %v903_v59 = vrot.slane %v901_v42, 4  ;;  %v3278_v11 = vld [vmem:[%s3194_s8 + $0x14] sm:$0x1] }
  0x49   : > { %v904_v61 = vrot.slane %v3182_v58, 5  ;;  %v911_v63 = vrot.slane %v3050_v12, 5  ;;  %v1227_v3 = vrot.slane %v1225_v45, 4  ;;  %v1230_v4 = vrot.slane %v1228_v48, 5 }
  0x4a   : > { %v1223_v49 = vsel %vm3079_vm4, %v1218_v40, %v1222_v37  ;;  %v909_v10 = vsel %vm3219_vm7, %v2681_v54, %v908_v56  ;;  %v1236_v5 = vrot.slane %v1234_v51, 5  ;;  %v1240_v34 = vrot.slane %v1238_v52, 4  ;;  %v3295_v40 = vld [vmem:[%s3194_s8 + $0x1c] sm:$0xf] }
  0x4b   : > { %v1395_v1 = vunpack.c.l.b16 %v1223_v49  ;;  %v910_v6 = vrot.slane %v908_v56, 4  ;;  %v954_v7 = vunpack.c.l.b16 %v909_v10  ;;  %v902_v12 = vsel %vm3219_vm7, %v2680_v50, %v901_v42 }
  0x4c   : > { %v905_v13 = vsel %vm3219_vm7, %v903_v59, %v904_v61  ;;  %v1231_v14 = vor.u32 %v1230_v4, %v1227_v3  ;;  %v1241_v18 = vor.u32 %v1240_v34, %v1236_v5  ;;  %v1244_v21 = vshll.u32 %v3278_v11, 16  ;;  %v2842_v59 = vld [vmem:[%s3194_s8 + $0xc] sm:$0xff] }
  0x4d   : > { %v912_v58 = vsel %vm3219_vm7, %v910_v6, %v911_v63  ;;  %v1410_v9 = vpack.c.b16 %v1395_v1, %v1394_v57  ;;  %v952_v22 = vunpack.c.l.b16 %v902_v12  ;;  %v953_v23 = vunpack.c.l.b16 %v905_v13  ;;  %v3325_v13 = vld [vmem:[%s3194_s8 + $0x28] sm:$0xf] }
  0x4e   : > { %2688 = vmatmul.msk.bf16.vlgmr.msrb.gmra.mxu2 %vm687_vm3, %v966_v43  ;;  %v955_v15 = vunpack.c.l.b16 %v912_v58  ;;  %v1232_v27 = vrot.slane %v1231_v14, 4  ;;  %v1242_v32 = vrot.slane %v1241_v18, 4  ;;  %v1246_v37 = vrot.slane %v1244_v21, 5  ;;  %v2835_v58 = vld [vmem:[%s3041_s29 + $0x18] sm:$0xff] }
  0x4f   : > { %v2682_v42 = vrot.slane %v3114_v16, 9  ;;  %v915_v43 = vrot.slane %v3121_v29, 5  ;;  %v967_v44 = vpack.c.b16 %v953_v23, %v952_v22  ;;  %v1249_v45 = vshrl.u32 %v3291_v30, 16 }
  0x50   : > { %v968_v28 = vpack.c.b16 %v955_v15, %v954_v7  ;;  %v918_v48 = vrot.slane %v3126_v33, 5  ;;  %v1237_v49 = vsel %vm3079_vm4, %v1232_v27, %v1236_v5  ;;  %v1252_v51 = vshll.u32 %v3291_v30, 16  ;;  %v3315_v5 = vld [vmem:[%s3194_s8 + $0x20] sm:$0x1] }
  0x51   : > { %v916_v52 = vsel %vm3219_vm7, %v2682_v42, %v915_v43  ;;  %v917_v54 = vrot.slane %v915_v43, 4  ;;  %v1247_v16 = vsel %vm3079_vm4, %v1242_v32, %v1246_v37  ;;  %v1258_v29 = vshll.u32 %v3295_v40, 16 }
  0x52   : > { %2729 = vmatmul.msk.bf16.vlgmr.msrb.gmra.mxu3 %vm687_vm3, %v2841_v0  ;;  %v1262_v50 = vshrl.u32 %v3295_v40, 16  ;;  %v956_v56 = vunpack.c.l.b16 %v916_v52  ;;  %v1396_v61 = vunpack.c.l.b16 %v1237_v49  ;;  %v1397_v63 = vunpack.c.l.b16 %v1247_v16 }
  0x53   : > { %v919_v33 = vsel %vm3219_vm7, %v917_v54, %v918_v48  ;;  %v1251_v0 = vrot.slane %v1249_v45, 4  ;;  %v1254_v1 = vrot.slane %v1252_v51, 5  ;;  %v1260_v3 = vrot.slane %v1258_v29, 5  ;;  %v2843_v45 = vld [vmem:[%s3194_s8 + $0x18] sm:$0xff]  ;;  %v3339_v51 = vld [vmem:[%s3194_s8 + $0x2c] sm:$0x1] }
  0x54   : > { %v957_v57 = vunpack.c.l.b16 %v919_v33  ;;  %v1264_v4 = vrot.slane %v1262_v50, 4  ;;  %v1411_v34 = vpack.c.b16 %v1397_v63, %v1396_v61  ;;  %v1268_v12 = vshll.u32 %v3315_v5, 16  ;;  %v2836_v50 = vld [vmem:[%s3041_s29 + $0x24] sm:$0xff] }
  0x55   : > { %v1255_v6 = vor.u32 %v1254_v1, %v1251_v0  ;;  %v1282_v22 = vshll.u32 %v3325_v13, 16  ;;  %v1286_v23 = vshrl.u32 %v3325_v13, 16  ;;  %v1292_v16 = vshll.u32 %v3339_v51, 16 }
  0x56   : > { %2738 = vmatmul.msk.bf16.vlgmr.msrb.gmra.mxu0 %vm687_vm3, %v1410_v9  ;;  %v969_v10 = vpack.c.b16 %v957_v57, %v956_v56  ;;  %v1265_v7 = vor.u32 %v1264_v4, %v1260_v3  ;;  %v3322_v9 = vld [vmem:[%s3194_s8 + $0x24] sm:$0xf]  ;;  %v1270_v18 = vrot.slane %v1268_v12, 5  ;;  %v2683_v12 = vrot.slane %v3057_v17, 9 }
  0x57   : > { %v1256_v14 = vrot.slane %v1255_v6, 4  ;;  %v1273_v21 = vshrl.u32 %v3322_v9, 16  ;;  %v1284_v43 = vrot.slane %v1282_v22, 5  ;;  %v1294_v57 = vrot.slane %v1292_v16, 5 }
  0x58   : > { %2672 = vmatmul.msk.bf16.gmra.mxu1 %vm687_vm3, %v2834_v8  ;;  %v1266_v15 = vrot.slane %v1265_v7, 4  ;;  %v1276_v8 = vshll.u32 %v3322_v9, 16  ;;  %v925_v22 = vrot.slane %v3064_v20, 5 }
  0x59   : > { %v1261_v27 = vsel %vm3079_vm4, %v1256_v14, %v1260_v3  ;;  %v1275_v37 = vrot.slane %v1273_v21, 4 }
  0x5a   : > { %v1271_v32 = vsel %vm3079_vm4, %v1266_v15, %v1270_v18  ;;  %v1278_v42 = vrot.slane %v1276_v8, 5  ;;  %v1398_v48 = vunpack.c.l.b16 %v1261_v27 }
  0x5b   : > { %v1399_v49 = vunpack.c.l.b16 %v1271_v32 }
  0x5c   : > { %v1279_v52 = vor.u32 %v1278_v42, %v1275_v37  ;;  %v2837_v42 = vld [vmem:[%s3041_s29 + $0x30] sm:$0xff] }
  0x5d   : > { %v1412_v29 = vpack.c.b16 %v1399_v49, %v1398_v48  ;;  %v3378_v49 = vld [vmem:[%s3194_s8 + $0x3c] sm:$0xf] }
  0x5e   : > { %2689 = vmatmul.msk.bf16.gmra.mxu2 %vm687_vm3, %v967_v44  ;;  %v1288_v44 = vrot.slane %v1286_v23, 4  ;;  %v1280_v56 = vrot.slane %v1279_v52, 4  ;;  %v3366_v23 = vld [vmem:[%s3194_s8 + $0x38] sm:$0x1]  ;;  %v3381_v52 = vld [vmem:[%s3194_s8 + $0x40] sm:$0xf] }
  0x5f   : > { %v1316_v32 = vshll.u32 %v3366_v23, 16 }
  0x60   : > { %v1289_v54 = vor.u32 %v1288_v44, %v1284_v43  ;;  %v1285_v61 = vsel %vm3079_vm4, %v1280_v56, %v1284_v43  ;;  %v1321_v56 = vshrl.u32 %v3378_v49, 16 }
  0x61   : > { %v1400_v6 = vunpack.c.l.b16 %v1285_v61  ;;  %v1318_v48 = vrot.slane %v1316_v32, 5  ;;  %v1334_v61 = vshrl.u32 %v3381_v52, 16 }
  0x62   : > { %2730 = vmatmul.msk.bf16.gmra.mxu3 %vm687_vm3, %v2842_v59  ;;  %v1290_v33 = vrot.slane %v1289_v54, 4  ;;  %v3349_v59 = vld [vmem:[%s3194_s8 + $0x34] sm:$0xf] }
  0x63   : > { %v1306_v3 = vshll.u32 %v3349_v59, 16  ;;  %v1310_v4 = vshrl.u32 %v3349_v59, 16 }
  0x64   : > { %v1295_v63 = vsel %vm3079_vm4, %v1290_v33, %v1294_v57  ;;  %v1324_v33 = vshll.u32 %v3378_v49, 16  ;;  %v1330_v57 = vshll.u32 %v3381_v52, 16 }
  0x65   : > { %v1401_v7 = vunpack.c.l.b16 %v1295_v63  ;;  %v1308_v18 = vrot.slane %v1306_v3, 5  ;;  %v1312_v21 = vrot.slane %v1310_v4, 4  ;;  %v2684_v3 = vrot.slane %v3132_v41, 9 }
  0x66   : > { %2739 = vmatmul.msk.bf16.gmra.mxu0 %vm687_vm3, %v1411_v34  ;;  %v922_v34 = vrot.slane %v3061_v19, 5 }
  0x67   : > { %v1413_v27 = vpack.c.b16 %v1401_v7, %v1400_v6  ;;  %v1326_v6 = vrot.slane %v1324_v33, 5  ;;  %v1332_v7 = vrot.slane %v1330_v57, 5 }
  0x68   : > { %2673 = vmatmul.msk.bf16.gmra.mxu1 %vm687_vm3, %v2835_v58  ;;  %v2844_v58 = vld [vmem:[%s3194_s8 + $0x24] sm:$0xff]  ;;  %v924_v8 = vrot.slane %v922_v34, 4  ;;  %v923_v17 = vsel %vm3219_vm7, %v2683_v12, %v922_v34  ;;  %v1323_v34 = vrot.slane %v1321_v56, 4  ;;  %v1336_v12 = vrot.slane %v1334_v61, 4  ;;  %v2846_v56 = vld [vmem:[%s3194_s8 + $0x3c] sm:$0xff] }
  0x69   : > { %v958_v43 = vunpack.c.l.b16 %v923_v17  ;;  %v3408_v17 = vld [vmem:[%s3194_s8 + $0x48] sm:$0xf] }
  0x6a   : > { %v926_v37 = vsel %vm3219_vm7, %v924_v8, %v925_v22  ;;  %v2838_v8 = vld [vmem:[%s3041_s29 + $0x3c] sm:$0xff] }
  0x6b   : > { %v959_v20 = vunpack.c.l.b16 %v926_v37  ;;  %v3411_v37 = vld [vmem:[%s3194_s8 + $0x4c] sm:$0xf] }
  0x6d   : > { %v970_v54 = vpack.c.b16 %v959_v20, %v958_v43  ;;  %v1348_v43 = vshll.u32 %v3408_v17, 16 }
  0x6e   : > { %2690 = vmatmul.msk.bf16.gmra.mxu2 %vm687_vm3, %v968_v28  ;;  %v3346_v28 = vld [vmem:[%s3194_s8 + $0x30] sm:$0xf] }
  0x6f   : > { %v1297_v0 = vshrl.u32 %v3346_v28, 16  ;;  %v1300_v1 = vshll.u32 %v3346_v28, 16 }
  0x71   : > { %v1299_v14 = vrot.slane %v1297_v0, 4  ;;  %v1302_v15 = vrot.slane %v1300_v1, 5  ;;  %v2845_v0 = vld [vmem:[%s3194_s8 + $0x30] sm:$0xff] }
  0x72   : > { %2731 = vmatmul.msk.bf16.gmra.mxu3 %vm687_vm3, %v2843_v45 }
  0x73   : > { %v1303_v19 = vor.u32 %v1302_v15, %v1299_v14 }
  0x75   : > { %v1304_v44 = vrot.slane %v1303_v19, 4 }
  0x76   : > { %2740 = vmatmul.msk.bf16.gmra.mxu0 %vm687_vm3, %v1412_v29 }
  0x77   : > { %v1309_v16 = vsel %vm3079_vm4, %v1304_v44, %v1308_v18  ;;  %v1354_v44 = vshll.u32 %v3411_v37, 16 }
  0x78   : > { %2674 = vmatmul.msk.bf16.gmra.mxu1 %vm687_vm3, %v2836_v50  ;;  %v929_v50 = vrot.slane %v3138_v55, 5  ;;  %v1402_v63 = vunpack.c.l.b16 %v1309_v16  ;;  %v932_v55 = vrot.slane %v3145_v60, 5  ;;  %v1358_v16 = vshrl.u32 %v3411_v37, 16 }
  0x79   : > { %v1356_v61 = vrot.slane %v1354_v44, 5 }
  0x7a   : > { %v931_v4 = vrot.slane %v929_v50, 4  ;;  %v930_v15 = vsel %vm3219_vm7, %v2684_v3, %v929_v50  ;;  %v1350_v50 = vrot.slane %v1348_v43, 5  ;;  %v1360_v3 = vrot.slane %v1358_v16, 4 }
  0x7b   : > { %v960_v22 = vunpack.c.l.b16 %v930_v15 }
  0x7c   : > { %v933_v41 = vsel %vm3219_vm7, %v931_v4, %v932_v55  ;;  %v3428_v4 = vld [vmem:[%s3194_s8 + $0x50] sm:$0x1] }
  0x7e   : > { %2691 = vmatmul.msk.bf16.gmra.mxu2 %vm687_vm3, %v969_v10  ;;  %v1313_v10 = vor.u32 %v1312_v21, %v1308_v18  ;;  %v1327_v18 = vor.u32 %v1326_v6, %v1323_v34  ;;  %v1337_v21 = vor.u32 %v1336_v12, %v1332_v7  ;;  %v2839_v12 = vld [vmem:[%s3041_s29 + $0x48] sm:$0xff] }
  0x80   : > { %v1314_v45 = vrot.slane %v1313_v10, 4  ;;  %v1328_v19 = vrot.slane %v1327_v18, 4  ;;  %v1338_v10 = vrot.slane %v1337_v21, 4 }
  0x82   : > { %2732 = vmatmul.msk.bf16.gmra.mxu3 %vm687_vm3, %v2844_v58  ;;  %v1319_v29 = vsel %vm3079_vm4, %v1314_v45, %v1318_v48  ;;  %v3397_v58 = vld [vmem:[%s3194_s8 + $0x44] sm:$0x1]  ;;  %v1333_v45 = vsel %vm3079_vm4, %v1328_v19, %v1332_v7  ;;  %v1361_v7 = vor.u32 %v1360_v3, %v1356_v61 }
  0x83   : > { %v1403_v1 = vunpack.c.l.b16 %v1319_v29  ;;  %v1340_v60 = vshll.u32 %v3397_v58, 16  ;;  %v1404_v33 = vunpack.c.l.b16 %v1333_v45 }
  0x84   : > { %v1362_v18 = vrot.slane %v1361_v7, 4  ;;  %v3487_v7 = vld [vmem:[%s3468_s20 + $0x4] sm:$0xf] }
  0x85   : > { %v1414_v14 = vpack.c.b16 %v1403_v1, %v1402_v63  ;;  %v1342_v32 = vrot.slane %v1340_v60, 5  ;;  %v2685_v63 = vrot.slane %v3068_v26, 9  ;;  %v939_v1 = vrot.slane %v3086_v46, 5  ;;  %v3441_v60 = vld [vmem:[%s3194_s8 + $0x54] sm:$0xf] }
  0x86   : > { %2741 = vmatmul.msk.bf16.gmra.mxu0 %vm687_vm3, %v1413_v27  ;;  %v961_v27 = vunpack.c.l.b16 %v933_v41  ;;  %v1364_v46 = vshll.u32 %v3428_v4, 16  ;;  %v1369_v19 = vshrl.u32 %v3441_v60, 16 }
  0x87   : > { %v1343_v48 = vsel %vm3079_vm4, %v1338_v10, %v1342_v32  ;;  %v1372_v10 = vshll.u32 %v3441_v60, 16 }
  0x88   : > { %2675 = vmatmul.msk.bf16.gmra.mxu1 %vm687_vm3, %v2837_v42  ;;  %v1345_v42 = vshrl.u32 %v3408_v17, 16  ;;  %v971_v20 = vpack.c.b16 %v961_v27, %v960_v22  ;;  %v1405_v57 = vunpack.c.l.b16 %v1343_v48  ;;  %v1366_v21 = vrot.slane %v1364_v46, 5  ;;  %v2840_v46 = vld [vmem:[%s3041_s29 + $0x54] sm:$0xff] }
  0x8a   : > { %v1347_v29 = vrot.slane %v1345_v42, 4  ;;  %v1415_v55 = vpack.c.b16 %v1405_v57, %v1404_v33  ;;  %v1367_v42 = vsel %vm3079_vm4, %v1362_v18, %v1366_v21  ;;  %v2686_v33 = vrot.slane %v3149_v62, 9 }
  0x8b   : > { %v1407_v16 = vunpack.c.l.b16 %v1367_v42 }
  0x8e   : > { %2692 = vmatmul.msk.bf16.gmra.mxu2 %vm687_vm3, %v970_v54  ;;  %v936_v54 = vrot.slane %v3075_v35, 5  ;;  %v1351_v35 = vor.u32 %v1350_v50, %v1347_v29  ;;  %v1371_v29 = vrot.slane %v1369_v19, 4  ;;  %v1374_v50 = vrot.slane %v1372_v10, 5 }
  0x90   : > { %v937_v6 = vsel %vm3219_vm7, %v2685_v63, %v936_v54  ;;  %v1375_v3 = vor.u32 %v1374_v50, %v1371_v29 }
  0x91   : > { %v962_v15 = vunpack.c.l.b16 %v937_v6 }
  0x92   : > { %2733 = vmatmul.msk.bf16.gmra.mxu3 %vm687_vm3, %v2845_v0  ;;  %v938_v0 = vrot.slane %v936_v54, 4  ;;  %v2847_v54 = vld [vmem:[%s3194_s8 + $0x48] sm:$0xff]  ;;  %v1376_v10 = vrot.slane %v1375_v3, 4 }
  0x94   : > { %v940_v26 = vsel %vm3219_vm7, %v938_v0, %v939_v1 }
  0x95   : > { %v963_v41 = vunpack.c.l.b16 %v940_v26 }
  0x96   : > { %2742 = vmatmul.msk.bf16.gmra.mxu0 %vm687_vm3, %v1414_v14  ;;  %v1352_v14 = vrot.slane %v1351_v35, 4  ;;  %v3479_v35 = vld [vmem:[%s3468_s20] sm:$0xf] }
  0x97   : > { %v972_v27 = vpack.c.b16 %v963_v41, %v962_v15  ;;  %v1827_v15 = vshrl.u32 %v3479_v35, 16  ;;  %v1830_v41 = vshll.u32 %v3479_v35, 16 }
  0x98   : > { %2676 = vmatmul.msk.bf16.gmra.mxu1 %vm687_vm3, %v2838_v8  ;;  %v3444_v8 = vld [vmem:[%s3194_s8 + $0x58] sm:$0xf]  ;;  %v1357_v22 = vsel %vm3079_vm4, %v1352_v14, %v1356_v61  ;;  %v946_v61 = vrot.slane %v3163_v25, 5  ;;  %v1520_v14 = vrot.slane %v3212_v47, 5  ;;  %v1523_v47 = vrot.slane %v3224_v2, 5 }
  0x99   : > { %v1378_v32 = vshll.u32 %v3444_v8, 16  ;;  %v1382_v44 = vshrl.u32 %v3444_v8, 16  ;;  %v1406_v45 = vunpack.c.l.b16 %v1357_v22  ;;  %v1836_v22 = vshll.u32 %v3487_v7, 16 }
  0x9b   : > { %v1384_v63 = vrot.slane %v1382_v44, 4  ;;  %v1416_v62 = vpack.c.b16 %v1407_v16, %v1406_v45  ;;  %v2746_v44 = vrot.slane %v3203_v31, 9  ;;  %v1522_v45 = vrot.slane %v1520_v14, 4 }
  0x9c   : > { %v1832_v16 = vrot.slane %v1830_v41, 5  ;;  %v1838_v50 = vrot.slane %v1836_v22, 5 }
  0x9d   : > { %v1521_v31 = vsel %vm3219_vm7, %v2746_v44, %v1520_v14  ;;  %v1524_v3 = vsel %vm3219_vm7, %v1522_v45, %v1523_v47  ;;  %v3527_v47 = vld [vmem:[%s3468_s20 + $0xc] sm:$0xf]  ;;  %v3530_v44 = vld [vmem:[%s3468_s20 + $0x10] sm:$0xf] }
  0x9e   : > { %2693 = vmatmul.msk.bf16.gmra.mxu2 %vm687_vm3, %v971_v20  ;;  %v943_v20 = vrot.slane %v3160_v24, 5  ;;  %v3471_v24 = vld [vmem:[%s3194_s8 + $0x5c] sm:$0x1]  ;;  %v1577_v41 = vunpack.c.l.b16 %v1524_v3  ;;  %v1851_v3 = vshrl.u32 %v3527_v47, 16 }
  0x9f   : > { %v1388_v26 = vshll.u32 %v3471_v24, 16 }
  0xa0   : > { %v945_v57 = vrot.slane %v943_v20, 4  ;;  %v944_v25 = vsel %vm3219_vm7, %v2686_v33, %v943_v20 }
  0xa1   : > { %v964_v18 = vunpack.c.l.b16 %v944_v25  ;;  %v1390_v42 = vrot.slane %v1388_v26, 5 }
  0xa2   : > { %2734 = vmatmul.msk.bf16.gmra.mxu3 %vm687_vm3, %v2846_v56  ;;  %v1380_v56 = vrot.slane %v1378_v32, 5 }
  0xa3   : > { %v3431_v34 = vpop.f32.mrf.mxu1 }
  0xa4   : > { %v1385_v6 = vor.u32 %v1384_v63, %v1380_v56  ;;  %v443_v63 = vld [vmem:[%s3468_s20 + $0x8] sm:$0x1] }
  0xa6   : > { %2743 = vmatmul.msk.bf16.gmra.mxu0 %vm687_vm3, %v1415_v55  ;;  %v947_v55 = vsel %vm3219_vm7, %v945_v57, %v946_v61  ;;  %v1386_v32 = vrot.slane %v1385_v6, 4  ;;  %v1381_v61 = vsel %vm3079_vm4, %v1376_v10, %v1380_v56  ;;  %v2146_v10 = vrot.slane %v3487_v7, 5 }
  0xa7   : > { %v965_v21 = vunpack.c.l.b16 %v947_v55  ;;  %v2848_v55 = vld [vmem:[%s3194_s8 + $0x54] sm:$0xff]  ;;  %v1408_v6 = vunpack.c.l.b16 %v1381_v61  ;;  %s3851_s8 = scalar_lea.vmem %s3971_s5, %s2832_s22 }
  0xa8   : > { %2677 = vmatmul.msk.bf16.gmra.mxu1 %vm687_vm3, %v2839_v12  ;;  %v1391_v2 = vsel %vm3079_vm4, %v1386_v32, %v1390_v42 }
  0xa9   : > { %v973_v29 = vpack.c.b16 %v965_v21, %v964_v18  ;;  %v1409_v56 = vunpack.c.l.b16 %v1391_v2  ;;  %v2148_v2 = vrot.slane %v2146_v10, 4 }
  0xab   : > { %v3454_v43 = vpop.f32.mrf.mxu1  ;;  %v1417_v14 = vpack.c.b16 %v1409_v56, %v1408_v6  ;;  %v1530_v6 = vrot.slane %v3278_v11, 5  ;;  %v2849_v56 = vld [vmem:[%s3468_s20] sm:$0xff] }
  0xad   : > { %v3458_v48 = vpop.f32.mrf.mxu2 }
  0xae   : > { %2694 = vmatmul.msk.bf16.gmra.mxu2 %vm687_vm3, %v972_v27  ;;  %v1840_v27 = vshrl.u32 %v3487_v7, 16 }
  0xb0   : > { %v1842_v33 = vrot.slane %v1840_v27, 4 }
  0xb1   : > { %v3473_v0 = vpop.f32.mrf.mxu0  ;;  %v3475_v1 = vpop.f32.mrf.mxu3 }
  0xb2   : > { %2735 = vmatmul.msk.bf16.gmra.mxu3 %vm687_vm3, %v2847_v54  ;;  %v1829_v54 = vrot.slane %v1827_v15, 4  ;;  %v1843_v26 = vor.u32 %v1842_v33, %v1838_v50  ;;  %v1576_v15 = vunpack.c.l.b16 %v1521_v31  ;;  %v1527_v33 = vrot.slane %v3257_v39, 5 }
  0xb3   : > { %v2149_v31 = vrot.slane %v443_v63, 5 }
  0xb4   : > { %v1833_v25 = vor.u32 %v1832_v16, %v1829_v54  ;;  %v1844_v22 = vrot.slane %v1843_v26, 4  ;;  %v1592_v42 = vpack.c.b16 %v1577_v41, %v1576_v15 }
  0xb5   : > { %v3490_v12 = vpop.f32.mrf.mxu1  ;;  %v3498_v19 = vpop.f32.mrf.mxu2  ;;  %v2150_v15 = vsel %vm3219_vm7, %v2148_v2, %v2149_v31 }
  0xb6   : > { %2744 = vmatmul.msk.bf16.gmra.mxu0 %vm687_vm3, %v1416_v62  ;;  %v1834_v21 = vrot.slane %v1833_v25, 4  ;;  %v1854_v25 = vshll.u32 %v3527_v47, 16 }
  0xb8   : > { %2678 = vmatmul.msk.bf16.gmra.mxu1 %vm687_vm3, %v2840_v46  ;;  %v1846_v46 = vshll.u32 %v443_v63, 16  ;;  %v1839_v16 = vsel %vm3079_vm4, %v1834_v21, %v1838_v50  ;;  %v1860_v50 = vshll.u32 %v3530_v44, 16  ;;  %v1853_v21 = vrot.slane %v1851_v3, 4 }
  0xb9   : > { %v3502_v20 = vpop.f32.mrf.mxu0  ;;  %v3505_v57 = vpop.f32.mrf.mxu3  ;;  %v2020_v63 = vunpack.c.l.b16 %v1839_v16 }
  0xba   : > { %v1848_v27 = vrot.slane %v1846_v46, 5 }
  0xbc   : > { %v1849_v61 = vsel %vm3079_vm4, %v1844_v22, %v1848_v27  ;;  %v1862_v22 = vrot.slane %v1860_v50, 5 }
  0xbd   : > { %v3512_v62 = vpop.f32.mrf.mxu1  ;;  %v2021_v26 = vunpack.c.l.b16 %v1849_v61  ;;  %v2203_v61 = vunpack.c.l.b16 %v2150_v15  ;;  %v2814_v15 = vrot.slane %v3527_v47, 9 }
  0xbe   : > { %2695 = vmatmul.msk.bf16.gmra.mxu2 %vm687_vm3, %v973_v29  ;;  %v2813_v29 = vrot.slane %v3479_v35, 9  ;;  %v1864_v35 = vshrl.u32 %v3530_v44, 16 }
  0xbf   : > { %v2036_v16 = vpack.c.b16 %v2021_v26, %v2020_v63 }
  0xc0   : > { %v2147_v46 = vsel %vm3219_vm7, %v2813_v29, %v2146_v10  ;;  %v1866_v27 = vrot.slane %v1864_v35, 4 }
  0xc1   : > { %v3520_v18 = vpop.f32.mrf.mxu2  ;;  %v2202_v29 = vunpack.c.l.b16 %v2147_v46 }
  0xc2   : > { %2736 = vmatmul.msk.bf16.gmra.mxu3 %vm687_vm3, %v2848_v55  ;;  %v1529_v55 = vrot.slane %v1527_v33, 4  ;;  %v1867_v3 = vor.u32 %v1866_v27, %v1862_v22 }
  0xc3   : > { %v3524_v32 = vpop.f32.mrf.mxu0 }
  0xc4   : > { %v1531_v10 = vsel %vm3219_vm7, %v1529_v55, %v1530_v6  ;;  %v3572_v55 = vld [vmem:[%s3468_s20 + $0x1c] sm:$0xf]  ;;  %v1868_v63 = vrot.slane %v1867_v3, 4 }
  0xc5   : > { %v3532_v45 = vpop.f32.mrf.mxu3  ;;  %v841_v54 = vpop.f32.mrf.mxu1  ;;  %v1579_v35 = vunpack.c.l.b16 %v1531_v10  ;;  %v1537_v10 = vrot.slane %v3315_v5, 5 }
  0xc6   : > { %3977 = vst [vmem:[#allocation2_spill] sm:$0xff] %v3532_v45  ;;  %2745 = vmatmul.msk.bf16.gmra.mxu0 %vm687_vm3, %v1417_v14  ;;  %v842_v7 = vadd.f32 %v841_v54, %v3473_v0  ;;  %v2747_v0 = vrot.slane %v3253_v38, 9  ;;  %v1856_v14 = vrot.slane %v1854_v25, 5  ;;  %v3568_v45 = vld [vmem:[%s3468_s20 + $0x18] sm:$0xf] }
  0xc8   : > { %2755 = vmatmul.msk.bf16.vlgmr.msra.gmra.mxu1 %vm687_vm3, %v1592_v42  ;;  %v446_v42 = vld [vmem:[%s3468_s20 + $0x14] sm:$0x1]  ;;  %v1528_v54 = vsel %vm3219_vm7, %v2747_v0, %v1527_v33  ;;  %v1857_v31 = vor.u32 %v1856_v14, %v1853_v21  ;;  %v2218_v33 = vpack.c.b16 %v2203_v61, %v2202_v29  ;;  %v1875_v21 = vshrl.u32 %v3568_v45, 16 }
  0xc9   : > { %v3547_v39 = vpop.f32.mrf.mxu2  ;;  %v1870_v25 = vshll.u32 %v446_v42, 16  ;;  %v1578_v50 = vunpack.c.l.b16 %v1528_v54  ;;  %v1878_v14 = vshll.u32 %v3568_v45, 16  ;;  %v1534_v54 = vrot.slane %v3295_v40, 5 }
  0xca   : > { %v2156_v40 = vrot.slane %v446_v42, 5  ;;  %v449_v42 = vld [vmem:[%s3468_s20 + $0x20] sm:$0x1] }
  0xcb   : > { %v3556_v41 = vpop.f32.mrf.mxu0  ;;  %v1872_v26 = vrot.slane %v1870_v25, 5  ;;  %v1593_v46 = vpack.c.b16 %v1579_v35, %v1578_v50  ;;  %v1880_v3 = vrot.slane %v1878_v14, 5  ;;  %v2748_v50 = vrot.slane %v3291_v30, 9 }
  0xcc   : > { %v1536_v35 = vrot.slane %v1534_v54, 4 }
  0xcd   : > { %v3559_v38 = vpop.f32.mrf.mxu3  ;;  %v843_v11 = vpop.f32.mrf.mxu1  ;;  %v1873_v29 = vsel %vm3079_vm4, %v1868_v63, %v1872_v26  ;;  %v1535_v14 = vsel %vm3219_vm7, %v2748_v50, %v1534_v54 }
  0xce   : > { %3978 = vst [vmem:[#allocation3_spill] sm:$0xff] %v3559_v38  ;;  %2796 = vmatmul.msk.bf16.vlgmr.msra.gmra.mxu2 %vm687_vm3, %v2849_v56  ;;  %v844_v2 = vadd.f32 %v843_v11, %v3502_v20  ;;  %v1858_v56 = vrot.slane %v1857_v31, 4  ;;  %v2153_v20 = vrot.slane %v3530_v44, 5  ;;  %v1877_v31 = vrot.slane %v1875_v21, 4 }
  0xcf   : > { %v2023_v26 = vunpack.c.l.b16 %v1873_v29  ;;  %v1538_v30 = vsel %vm3219_vm7, %v1536_v35, %v1537_v10  ;;  %v1580_v29 = vunpack.c.l.b16 %v1535_v14  ;;  %v2160_v35 = vrot.slane %v3572_v55, 5 }
  0xd0   : > { %v1863_v47 = vsel %vm3079_vm4, %v1858_v56, %v1862_v22  ;;  %v2155_v61 = vrot.slane %v2153_v20, 4  ;;  %v2154_v5 = vsel %vm3219_vm7, %v2814_v15, %v2153_v20  ;;  %v2850_v56 = vld [vmem:[%s3468_s20 + $0xc] sm:$0xff]  ;;  %v1881_v15 = vor.u32 %v1880_v3, %v1877_v31 }
  0xd1   : > { %v1010_v38 = vpop.f32.mrf.mxu2  ;;  %v2022_v63 = vunpack.c.l.b16 %v1863_v47  ;;  %v2204_v20 = vunpack.c.l.b16 %v2154_v5  ;;  %v2163_v14 = vrot.slane %v449_v42, 5 }
  0xd2   : > { %2805 = vmatmul.msk.bf16.vlgmr.msra.gmra.mxu3 %vm687_vm3, %v2036_v16  ;;  %v1050_v0 = vadd.f32 %v1010_v38, %v842_v7  ;;  %v1884_v7 = vshll.u32 %v3572_v55, 16  ;;  %v1888_v38 = vshrl.u32 %v3572_v55, 16  ;;  %v1882_v5 = vrot.slane %v1881_v15, 4 }
  0xd3   : > { %v1454_v6 = vpop.f32.mrf.mxu0 }
  0xd4   : > { %v1886_v22 = vrot.slane %v1884_v7, 5 }
  0xd5   : > { %v1144_v27 = vpop.f32.mrf.mxu3  ;;  %v846_v11 = vpop.f32.mrf.mxu1 }
  0xd6   : > { %2822 = vmatmul.msk.bf16.vlgmr.msra.gmra.mxu0 %vm687_vm3, %v2218_v33  ;;  %v1184_v44 = vadd.f32 %v1144_v27, %v1050_v0  ;;  %v847_v16 = vadd.f32 %v846_v11, %v3524_v32  ;;  %v1890_v33 = vrot.slane %v1888_v38, 4  ;;  %v2037_v38 = vpack.c.b16 %v2023_v26, %v2022_v63 }
  0xd7   : > { %v1887_v26 = vsel %vm3079_vm4, %v1882_v5, %v1886_v22 }
  0xd8   : > { %2756 = vmatmul.msk.bf16.gmra.mxu1 %vm687_vm3, %v1593_v46  ;;  %v3591_v25 = vadd.f32 %v1454_v6, %v1184_v44  ;;  %v2157_v46 = vsel %vm3219_vm7, %v2155_v61, %v2156_v40  ;;  %v1891_v11 = vor.u32 %v1890_v33, %v1886_v22  ;;  %v1581_v61 = vunpack.c.l.b16 %v1538_v30  ;;  %v3609_v33 = vld [vmem:[%s3468_s20 + $0x24] sm:$0xf] }
  0xd9   : > { %v1012_v32 = vpop.f32.mrf.mxu2  ;;  %v2205_v44 = vunpack.c.l.b16 %v2157_v46  ;;  %v1899_v15 = vshrl.u32 %v3609_v33, 16 }
  0xda   : > { %v1051_v0 = vadd.f32 %v1012_v32, %v844_v2  ;;  %v1894_v2 = vshll.u32 %v449_v42, 16  ;;  %v1892_v31 = vrot.slane %v1891_v11, 4 }
  0xdb   : > { %v1456_v27 = vpop.f32.mrf.mxu0  ;;  %v2219_v10 = vpack.c.b16 %v2205_v44, %v2204_v20 }
  0xdc   : > { %v1896_v54 = vrot.slane %v1894_v2, 5 }
  0xdd   : > { %v1146_v21 = vpop.f32.mrf.mxu3  ;;  %v848_v6 = vpop.f32.mrf.mxu1 }
  0xde   : > { %v1185_v7 = vadd.f32 %v1146_v21, %v1051_v0  ;;  %2797 = vmatmul.msk.bf16.gmra.mxu2 %vm687_vm3, %v2850_v56  ;;  %v849_v47 = vadd.f32 %v848_v6, %v3556_v41  ;;  %v1594_v0 = vpack.c.b16 %v1581_v61, %v1580_v29  ;;  %v3612_v56 = vld [vmem:[%s3468_s20 + $0x28] sm:$0xf]  ;;  %v1897_v46 = vsel %vm3079_vm4, %v1892_v31, %v1896_v54  ;;  %v2851_v29 = vld [vmem:[%s3468_s20 + $0x18] sm:$0xff] }
  0xdf   : > { %v1902_v21 = vshll.u32 %v3609_v33, 16  ;;  %v2162_v6 = vrot.slane %v2160_v35, 4  ;;  %v1908_v22 = vshll.u32 %v3612_v56, 16  ;;  %v1912_v30 = vshrl.u32 %v3612_v56, 16 }
  0xe0   : > { %v3605_v32 = vadd.f32 %v1456_v27, %v1185_v7  ;;  %v1541_v27 = vrot.slane %v3325_v13, 5  ;;  %v2025_v2 = vunpack.c.l.b16 %v1897_v46  ;;  %v2749_v7 = vrot.slane %v3322_v9, 9 }
  0xe1   : > { %v1015_v40 = vpop.f32.mrf.mxu2  ;;  %v1901_v61 = vrot.slane %v1899_v15, 4  ;;  %v1910_v31 = vrot.slane %v1908_v22, 5  ;;  %v1914_v54 = vrot.slane %v1912_v30, 4  ;;  %v2167_v15 = vrot.slane %v3612_v56, 5  ;;  %v3645_v22 = vld [vmem:[%s3468_s20 + $0x30] sm:$0xf] }
  0xe2   : > { %2806 = vmatmul.msk.bf16.gmra.mxu3 %vm687_vm3, %v2037_v38  ;;  %v1052_v3 = vadd.f32 %v1015_v40, %v847_v16  ;;  %v2815_v16 = vrot.slane %v3568_v45, 9  ;;  %v1544_v45 = vrot.slane %v3339_v51, 5  ;;  %v1543_v38 = vrot.slane %v1541_v27, 4 }
  0xe3   : > { %v1459_v50 = vpop.f32.mrf.mxu0  ;;  %v1904_v40 = vrot.slane %v1902_v21, 5  ;;  %v2164_v51 = vsel %vm3219_vm7, %v2162_v6, %v2163_v14  ;;  %v2169_v56 = vrot.slane %v2167_v15, 4 }
  0xe4   : > { %v2161_v42 = vsel %vm3219_vm7, %v2815_v16, %v2160_v35  ;;  %v1545_v35 = vsel %vm3219_vm7, %v1543_v38, %v1544_v45  ;;  %v1915_v16 = vor.u32 %v1914_v54, %v1910_v31  ;;  %v2816_v38 = vrot.slane %v3609_v33, 9 }
  0xe5   : > { %v1149_v41 = vpop.f32.mrf.mxu3  ;;  %v851_v63 = vpop.f32.mrf.mxu1  ;;  %v1905_v46 = vor.u32 %v1904_v40, %v1901_v61  ;;  %v1583_v6 = vunpack.c.l.b16 %v1545_v35  ;;  %v1926_v61 = vshll.u32 %v3645_v22, 16 }
  0xe6   : > { %2823 = vmatmul.msk.bf16.gmra.mxu0 %vm687_vm3, %v2219_v10  ;;  %v1186_v55 = vadd.f32 %v1149_v41, %v1052_v3  ;;  %v852_v20 = vadd.f32 %v851_v63, %v3431_v34  ;;  %v2024_v34 = vunpack.c.l.b16 %v1887_v26  ;;  %v452_v10 = vld [vmem:[%s3468_s20 + $0x2c] sm:$0x1]  ;;  %v2207_v63 = vunpack.c.l.b16 %v2164_v51 }
  0xe7   : > { %v1906_v45 = vrot.slane %v1905_v46, 4 }
  0xe8   : > { %2757 = vmatmul.msk.bf16.gmra.mxu1 %vm687_vm3, %v1594_v0  ;;  %v3628_v13 = vadd.f32 %v1459_v50, %v1186_v55  ;;  %v2038_v50 = vpack.c.b16 %v2025_v2, %v2024_v34  ;;  %v2206_v0 = vunpack.c.l.b16 %v2161_v42  ;;  %v1918_v55 = vshll.u32 %v452_v10, 16 }
  0xe9   : > { %v1017_v11 = vpop.f32.mrf.mxu2  ;;  %v1916_v2 = vrot.slane %v1915_v16, 4  ;;  %v1923_v42 = vshrl.u32 %v3645_v22, 16 }
  0xea   : > { %v1053_v44 = vadd.f32 %v1017_v11, %v849_v47  ;;  %v1542_v47 = vsel %vm3219_vm7, %v2749_v7, %v1541_v27  ;;  %v2220_v27 = vpack.c.b16 %v2207_v63, %v2206_v0  ;;  %v3649_v11 = vld [vmem:[%s3468_s20 + $0x34] sm:$0xf]  ;;  %v1920_v7 = vrot.slane %v1918_v55, 5  ;;  %v2852_v55 = vld [vmem:[%s3468_s20 + $0x24] sm:$0xff] }
  0xeb   : > { %v1461_v5 = vpop.f32.mrf.mxu0  ;;  %v1582_v21 = vunpack.c.l.b16 %v1542_v47  ;;  %v1932_v54 = vshll.u32 %v3649_v11, 16  ;;  %v1925_v47 = vrot.slane %v1923_v42, 4 }
  0xec   : > { %v1921_v0 = vsel %vm3079_vm4, %v1916_v2, %v1920_v7 }
  0xed   : > { %v1151_v3 = vpop.f32.mrf.mxu3  ;;  %v853_v9 = vpop.f32.mrf.mxu1  ;;  %v3674_v63 = vrot.slane %v1932_v54, 5 }
  0xee   : > { %v1187_v41 = vadd.f32 %v1151_v3, %v1053_v44  ;;  %2798 = vmatmul.msk.bf16.gmra.mxu2 %vm687_vm3, %v2851_v29  ;;  %v854_v26 = vadd.f32 %v853_v9, %v3454_v43  ;;  %v1595_v44 = vpack.c.b16 %v1583_v6, %v1582_v21  ;;  %v2170_v29 = vrot.slane %v452_v10, 5 }
  0xef   : > { %v1551_v10 = vrot.slane %v3366_v23, 5  ;;  %v2027_v21 = vunpack.c.l.b16 %v1921_v0  ;;  %v2174_v0 = vrot.slane %v3649_v11, 5 }
  0xf0   : > { %v3651_v34 = vadd.f32 %v1461_v5, %v1187_v41  ;;  %v1936_v5 = vshrl.u32 %v3649_v11, 16  ;;  %v2171_v9 = vsel %vm3219_vm7, %v2169_v56, %v2170_v29  ;;  %v2750_v41 = vrot.slane %v3346_v28, 9 }
  0xf1   : > { %v1020_v14 = vpop.f32.mrf.mxu2  ;;  %v2817_v11 = vrot.slane %v3645_v22, 9 }
  0xf2   : > { %2807 = vmatmul.msk.bf16.gmra.mxu3 %vm687_vm3, %v2038_v50  ;;  %v1054_v30 = vadd.f32 %v1020_v14, %v852_v20  ;;  %v1548_v20 = vrot.slane %v3349_v59, 5  ;;  %v1911_v50 = vsel %vm3079_vm4, %v1906_v45, %v1910_v31  ;;  %v2168_v59 = vsel %vm3219_vm7, %v2816_v38, %v2167_v15  ;;  %v455_v14 = vld [vmem:[%s3468_s20 + $0x38] sm:$0x1] }
  0xf3   : > { %v1464_v43 = vpop.f32.mrf.mxu0  ;;  %v1938_v46 = vrot.slane %v1936_v5, 4  ;;  %v2026_v15 = vunpack.c.l.b16 %v1911_v50  ;;  %v1942_v29 = vshll.u32 %v455_v14, 16 }
  0xf4   : > { %v1550_v31 = vrot.slane %v1548_v20, 4  ;;  %v1549_v2 = vsel %vm3219_vm7, %v2750_v41, %v1548_v20 }
  0xf5   : > { %v1154_v40 = vpop.f32.mrf.mxu3  ;;  %v856_v51 = vpop.f32.mrf.mxu1  ;;  %v2039_v56 = vpack.c.b16 %v2027_v21, %v2026_v15  ;;  %v1584_v42 = vunpack.c.l.b16 %v1549_v2  ;;  %v1944_v50 = vrot.slane %v1942_v29, 5  ;;  %v2176_v21 = vrot.slane %v2174_v0, 4 }
  0xf6   : > { %2824 = vmatmul.msk.bf16.gmra.mxu0 %vm687_vm3, %v2220_v27  ;;  %v1188_v3 = vadd.f32 %v1154_v40, %v1054_v30  ;;  %v857_v33 = vadd.f32 %v856_v51, %v3490_v12  ;;  %v1928_v12 = vrot.slane %v1926_v61, 5  ;;  %v2208_v27 = vunpack.c.l.b16 %v2168_v59  ;;  %v3686_v40 = vld [vmem:[%s3468_s20 + $0x3c] sm:$0xf]  ;;  %v3689_v51 = vld [vmem:[%s3468_s20 + $0x40] sm:$0xf] }
  0xf7   : > { %v2209_v30 = vunpack.c.l.b16 %v2171_v9  ;;  %v1552_v28 = vsel %vm3219_vm7, %v1550_v31, %v1551_v10  ;;  %v1947_v9 = vshrl.u32 %v3686_v40, 16  ;;  %v2751_v2 = vrot.slane %v3378_v49, 9 }
  0xf8   : > { %2758 = vmatmul.msk.bf16.gmra.mxu1 %vm687_vm3, %v1595_v44  ;;  %v3671_v35 = vadd.f32 %v1464_v43, %v1188_v3  ;;  %v1929_v7 = vor.u32 %v1928_v12, %v1925_v47  ;;  %v1585_v61 = vunpack.c.l.b16 %v1552_v28  ;;  %v1950_v47 = vshll.u32 %v3686_v40, 16 }
  0xf9   : > { %v1022_v23 = vpop.f32.mrf.mxu2  ;;  %v2221_v20 = vpack.c.b16 %v2209_v30, %v2208_v27  ;;  %v1956_v12 = vshll.u32 %v3689_v51, 16  ;;  %v1949_v27 = vrot.slane %v1947_v9, 4 }
  0xfa   : > { %v1055_v16 = vadd.f32 %v1022_v23, %v854_v26  ;;  %v1939_v26 = vor.u32 %v1938_v46, %v3674_v63  ;;  %v1930_v5 = vrot.slane %v1929_v7, 4  ;;  %v1960_v23 = vshrl.u32 %v3689_v51, 16  ;;  %v3713_v7 = vld [vmem:[%s3468_s20 + $0x44] sm:$0x1] }
  0xfb   : > { %v1466_v6 = vpop.f32.mrf.mxu0  ;;  %v1596_v41 = vpack.c.b16 %v1585_v61, %v1584_v42  ;;  %v1952_v30 = vrot.slane %v1950_v47, 5  ;;  %v2175_v42 = vsel %vm3219_vm7, %v2817_v11, %v2174_v0  ;;  %v2181_v11 = vrot.slane %v3689_v51, 5 }
  0xfc   : > { %v1940_v3 = vrot.slane %v1939_v26, 4  ;;  %v2210_v0 = vunpack.c.l.b16 %v2175_v42  ;;  %v2818_v51 = vrot.slane %v3686_v40, 9  ;;  %v1565_v40 = vrot.slane %v3428_v4, 5  ;;  %v2854_v4 = vld [vmem:[%s3468_s20 + $0x3c] sm:$0xff] }
  0xfd   : > { %v1156_v45 = vpop.f32.mrf.mxu3  ;;  %v858_v43 = vpop.f32.mrf.mxu1 }
  0xfe   : > { %v1189_v38 = vadd.f32 %v1156_v45, %v1055_v16  ;;  %2799 = vmatmul.msk.bf16.gmra.mxu2 %vm687_vm3, %v2852_v55  ;;  %v859_v44 = vadd.f32 %v858_v43, %v3512_v62  ;;  %v1555_v16 = vrot.slane %v3381_v52, 5  ;;  %v1945_v15 = vsel %vm3079_vm4, %v1940_v3, %v1944_v50 }
  0xff   : > { %v1958_v45 = vrot.slane %v1956_v12, 5  ;;  %v1962_v43 = vrot.slane %v1960_v23, 4  ;;  %v1558_v52 = vrot.slane %v3397_v58, 5  ;;  %v1966_v58 = vshll.u32 %v3713_v7, 16 }
 0x100   : > { %v3693_v59 = vadd.f32 %v1466_v6, %v1189_v38  ;;  %v2177_v6 = vrot.slane %v455_v14, 5  ;;  %v1557_v28 = vrot.slane %v1555_v16, 4  ;;  %v2853_v38 = vld [vmem:[%s3468_s20 + $0x30] sm:$0xff]  ;;  %v2029_v14 = vunpack.c.l.b16 %v1945_v15  ;;  %v3730_v15 = vld [vmem:[%s3468_s20 + $0x48] sm:$0xf] }
 0x101   : > { %v1025_v54 = vpop.f32.mrf.mxu2  ;;  %v1556_v3 = vsel %vm3219_vm7, %v2751_v2, %v1555_v16  ;;  %v1562_v2 = vrot.slane %v3411_v37, 5 }
 0x102   : > { %2808 = vmatmul.msk.bf16.gmra.mxu3 %vm687_vm3, %v2039_v56  ;;  %v1056_v10 = vadd.f32 %v1025_v54, %v857_v33  ;;  %v1935_v33 = vsel %vm3079_vm4, %v1930_v5, %v3674_v63  ;;  %v2178_v61 = vsel %vm3219_vm7, %v2176_v21, %v2177_v6  ;;  %v1963_v54 = vor.u32 %v1962_v43, %v1958_v45 }
 0x103   : > { %v1469_v62 = vpop.f32.mrf.mxu0  ;;  %v2028_v56 = vunpack.c.l.b16 %v1935_v33  ;;  %v1586_v23 = vunpack.c.l.b16 %v1556_v3 }
 0x104   : > { %v1964_v47 = vrot.slane %v1963_v54, 4  ;;  %v2752_v54 = vrot.slane %v3408_v17, 9 }
 0x105   : > { %v1159_v31 = vpop.f32.mrf.mxu3  ;;  %v861_v46 = vpop.f32.mrf.mxu1  ;;  %v2040_v50 = vpack.c.b16 %v2029_v14, %v2028_v56  ;;  %v2184_v56 = vrot.slane %v3713_v7, 5 }
 0x106   : > { %2825 = vmatmul.msk.bf16.gmra.mxu0 %vm687_vm3, %v2221_v20  ;;  %v1190_v55 = vadd.f32 %v1159_v31, %v1056_v10  ;;  %v1953_v20 = vor.u32 %v1952_v30, %v1949_v27  ;;  %v862_v12 = vadd.f32 %v861_v46, %v3458_v48  ;;  %v1968_v31 = vrot.slane %v1966_v58, 5  ;;  %v3735_v27 = vld [vmem:[%s3468_s20 + $0x4c] sm:$0xf] }
 0x107   : > { %v1984_v14 = vshrl.u32 %v3735_v27, 16  ;;  %v1564_v58 = vrot.slane %v1562_v2, 4 }
 0x108   : > { %2759 = vmatmul.msk.bf16.gmra.mxu1 %vm687_vm3, %v1596_v41  ;;  %v3708_v63 = vadd.f32 %v1469_v62, %v1190_v55  ;;  %v2211_v62 = vunpack.c.l.b16 %v2178_v61  ;;  %v1954_v9 = vrot.slane %v1953_v20, 4  ;;  %v1969_v46 = vsel %vm3079_vm4, %v1964_v47, %v1968_v31 }
 0x109   : > { %v1027_v22 = vpop.f32.mrf.mxu2  ;;  %v2031_v37 = vunpack.c.l.b16 %v1969_v46  ;;  %v2182_v61 = vsel %vm3219_vm7, %v2818_v51, %v2181_v11  ;;  %v1566_v17 = vsel %vm3219_vm7, %v1564_v58, %v1565_v40 }
 0x10a   : > { %v1057_v26 = vadd.f32 %v1027_v22, %v859_v44  ;;  %v1559_v44 = vsel %vm3219_vm7, %v1557_v28, %v1558_v52  ;;  %v2222_v16 = vpack.c.b16 %v2211_v62, %v2210_v0  ;;  %v1959_v48 = vsel %vm3079_vm4, %v1954_v9, %v1958_v45  ;;  %v461_v0 = vld [vmem:[%s3468_s20 + $0x50] sm:$0x1] }
 0x10b   : > { %v1471_v29 = vpop.f32.mrf.mxu0  ;;  %v1587_v41 = vunpack.c.l.b16 %v1559_v44  ;;  %v2183_v22 = vrot.slane %v2181_v11, 4  ;;  %v1971_v28 = vshrl.u32 %v3730_v15, 16  ;;  %v1980_v45 = vshll.u32 %v3735_v27, 16 }
 0x10c   : > { %v2212_v62 = vunpack.c.l.b16 %v2182_v61  ;;  %v2191_v58 = vrot.slane %v461_v0, 5 }
 0x10d   : > { %v1161_v5 = vpop.f32.mrf.mxu3  ;;  %v863_v49 = vpop.f32.mrf.mxu1  ;;  %v1597_v30 = vpack.c.b16 %v1587_v41, %v1586_v23  ;;  %v1563_v23 = vsel %vm3219_vm7, %v2752_v54, %v1562_v2 }
 0x10e   : > { %v1191_v10 = vadd.f32 %v1161_v5, %v1057_v26  ;;  %2800 = vmatmul.msk.bf16.gmra.mxu2 %vm687_vm3, %v2853_v38  ;;  %v1974_v26 = vshll.u32 %v3730_v15, 16  ;;  %v864_v42 = vadd.f32 %v863_v49, %v3498_v19  ;;  %v1973_v5 = vrot.slane %v1971_v28, 4 }
 0x10f   : > { %v2185_v19 = vsel %vm3219_vm7, %v2183_v22, %v2184_v56  ;;  %v1982_v49 = vrot.slane %v1980_v45, 5  ;;  %v3772_v56 = vld [vmem:[%s3468_s20 + $0x54] sm:$0xf] }
 0x110   : > { %v3732_v21 = vadd.f32 %v1471_v29, %v1191_v10  ;;  %v2030_v29 = vunpack.c.l.b16 %v1959_v48  ;;  %v1976_v3 = vrot.slane %v1974_v26, 5  ;;  %v1986_v10 = vrot.slane %v1984_v14, 4  ;;  %v3775_v14 = vld [vmem:[%s3468_s20 + $0x58] sm:$0xf] }
 0x111   : > { %v1030_v33 = vpop.f32.mrf.mxu2  ;;  %v2213_v47 = vunpack.c.l.b16 %v2185_v19  ;;  %v1995_v61 = vshrl.u32 %v3772_v56, 16 }
 0x112   : > { %2809 = vmatmul.msk.bf16.gmra.mxu3 %vm687_vm3, %v2040_v50  ;;  %v1058_v55 = vadd.f32 %v1030_v33, %v862_v12  ;;  %v1977_v41 = vor.u32 %v1976_v3, %v1973_v5  ;;  %v2041_v33 = vpack.c.b16 %v2031_v37, %v2030_v29  ;;  %v1987_v11 = vor.u32 %v1986_v10, %v1982_v49 }
 0x113   : > { %v1474_v6 = vpop.f32.mrf.mxu0  ;;  %v2223_v48 = vpack.c.b16 %v2213_v47, %v2212_v62  ;;  %v2819_v29 = vrot.slane %v3730_v15, 9  ;;  %v2004_v5 = vshll.u32 %v3775_v14, 16  ;;  %v2008_v3 = vshrl.u32 %v3775_v14, 16  ;;  %v2855_v62 = vld [vmem:[%s3468_s20 + $0x48] sm:$0xff] }
 0x114   : > { %v1978_v51 = vrot.slane %v1977_v41, 4  ;;  %v1988_v22 = vrot.slane %v1987_v11, 4  ;;  %v1572_v15 = vrot.slane %v3471_v24, 5  ;;  %v2753_v10 = vrot.slane %v3441_v60, 9  ;;  %v464_v41 = vld [vmem:[%s3468_s20 + $0x5c] sm:$0x1] }
 0x115   : > { %v1164_v43 = vpop.f32.mrf.mxu3  ;;  %v866_v52 = vpop.f32.mrf.mxu1  ;;  %v1997_v47 = vrot.slane %v1995_v61, 4 }
 0x116   : > { %2826 = vmatmul.msk.bf16.gmra.mxu0 %vm687_vm3, %v2222_v16  ;;  %v1192_v38 = vadd.f32 %v1164_v43, %v1058_v55  ;;  %v1990_v16 = vshll.u32 %v461_v0, 16  ;;  %v867_v55 = vadd.f32 %v866_v52, %v3520_v18  ;;  %v1983_v40 = vsel %vm3079_vm4, %v1978_v51, %v1982_v49 }
 0x117   : > { %v2032_v19 = vunpack.c.l.b16 %v1983_v40  ;;  %v2014_v51 = vshll.u32 %v464_v41, 16 }
 0x118   : > { %2760 = vmatmul.msk.bf16.gmra.mxu1 %vm687_vm3, %v1597_v30  ;;  %v3754_v20 = vadd.f32 %v1474_v6, %v1192_v38  ;;  %v1588_v6 = vunpack.c.l.b16 %v1563_v23  ;;  %v1589_v30 = vunpack.c.l.b16 %v1566_v17  ;;  %v1992_v2 = vrot.slane %v1990_v16, 5 }
 0x119   : > { %v1032_v7 = vpop.f32.mrf.mxu2  ;;  %v2188_v38 = vrot.slane %v3735_v27, 5  ;;  %v2010_v17 = vrot.slane %v2008_v3, 4 }
 0x11a   : > { %v1059_v44 = vadd.f32 %v1032_v7, %v864_v42  ;;  %v1598_v45 = vpack.c.b16 %v1589_v30, %v1588_v6  ;;  %v1569_v42 = vrot.slane %v3444_v8, 5  ;;  %v1993_v27 = vsel %vm3079_vm4, %v1988_v22, %v1992_v2 }
 0x11b   : > { %v1476_v50 = vpop.f32.mrf.mxu0  ;;  %v1998_v7 = vshll.u32 %v3772_v56, 16  ;;  %v2190_v54 = vrot.slane %v2188_v38, 4  ;;  %v2033_v49 = vunpack.c.l.b16 %v1993_v27  ;;  %v2195_v27 = vrot.slane %v3775_v14, 5 }
 0x11c   : > { %v1570_v60 = vsel %vm3219_vm7, %v2753_v10, %v1569_v42 }
 0x11d   : > { %v1166_v9 = vpop.f32.mrf.mxu3  ;;  %v868_v12 = vpop.f32.mrf.mxu1  ;;  %v2000_v24 = vrot.slane %v1998_v7, 5  ;;  %v2042_v6 = vpack.c.b16 %v2033_v49, %v2032_v19  ;;  %v1590_v22 = vunpack.c.l.b16 %v1570_v60  ;;  %v2197_v3 = vrot.slane %v2195_v27, 4  ;;  %v2856_v49 = vld [vmem:[%s3468_s20 + $0x54] sm:$0xff] }
 0x11e   : > { %v1193_v31 = vadd.f32 %v1166_v9, %v1059_v44  ;;  %2801 = vmatmul.msk.bf16.gmra.mxu2 %vm687_vm3, %v2854_v4  ;;  %v869_v8 = vadd.f32 %v868_v12, %v3547_v39  ;;  %v2189_v9 = vsel %vm3219_vm7, %v2819_v29, %v2188_v38  ;;  %v2192_v39 = vsel %vm3219_vm7, %v2190_v54, %v2191_v58 }
 0x11f   : > { %v2006_v12 = vrot.slane %v2004_v5, 5  ;;  %v2215_v30 = vunpack.c.l.b16 %v2192_v39  ;;  %v2820_v5 = vrot.slane %v3772_v56, 9  ;;  %v3979_v39 = vld [vmem:[#allocation2_spill] sm:$0xff] }
 0x120   : > { %v3768_v28 = vadd.f32 %v1476_v50, %v1193_v31  ;;  %v1571_v50 = vrot.slane %v1569_v42, 4 }
 0x121   : > { %v1035_v46 = vpop.f32.mrf.mxu2  ;;  %v2196_v36 = vsel %vm3219_vm7, %v2820_v5, %v2195_v27 }
 0x122   : > { %2810 = vmatmul.msk.bf16.gmra.mxu3 %vm687_vm3, %v2041_v33  ;;  %v1060_v43 = vadd.f32 %v1035_v46, %v867_v55  ;;  %v2214_v33 = vunpack.c.l.b16 %v2189_v9  ;;  %v1573_v16 = vsel %vm3219_vm7, %v1571_v50, %v1572_v15  ;;  %v2011_v46 = vor.u32 %v2010_v17, %v2006_v12 }
 0x123   : > { %v1479_v26 = vpop.f32.mrf.mxu0  ;;  %v1591_v2 = vunpack.c.l.b16 %v1573_v16  ;;  %v2198_v15 = vrot.slane %v464_v41, 5 }
 0x124   : > { %v2012_v42 = vrot.slane %v2011_v46, 4 }
 0x125   : > { %v1169_v18 = vpop.f32.mrf.mxu3  ;;  %v871_v52 = vpop.f32.mrf.mxu1  ;;  %v1599_v61 = vpack.c.b16 %v1591_v2, %v1590_v22  ;;  %v2199_v56 = vsel %vm3219_vm7, %v2197_v3, %v2198_v15 }
 0x126   : > { %2827 = vmatmul.msk.bf16.gmra.mxu0 %vm687_vm3, %v2223_v48  ;;  %v1194_v37 = vadd.f32 %v1169_v18, %v1060_v43  ;;  %v2001_v48 = vor.u32 %v2000_v24, %v1997_v47  ;;  %v872_v43 = vadd.f32 %v871_v52, %v3475_v1  ;;  %v2216_v24 = vunpack.c.l.b16 %v2196_v36 }
 0x128   : > { %2761 = vmatmul.msk.bf16.gmra.mxu1 %vm687_vm3, %v1598_v45  ;;  %v3791_v44 = vadd.f32 %v1479_v26, %v1194_v37  ;;  %v2224_v45 = vpack.c.b16 %v2215_v30, %v2214_v33  ;;  %v2002_v40 = vrot.slane %v2001_v48, 4  ;;  %v2016_v37 = vrot.slane %v2014_v51, 5 }
 0x129   : > { %v1037_v4 = vpop.f32.mrf.mxu2 }
 0x12a   : > { %v1061_v0 = vadd.f32 %v1037_v4, %v869_v8  ;;  %v2007_v52 = vsel %vm3079_vm4, %v2002_v40, %v2006_v12  ;;  %v2017_v58 = vsel %vm3079_vm4, %v2012_v42, %v2016_v37 }
 0x12b   : > { %v1481_v23 = vpop.f32.mrf.mxu0  ;;  %v2034_v10 = vunpack.c.l.b16 %v2007_v52  ;;  %v2035_v50 = vunpack.c.l.b16 %v2017_v58 }
 0x12d   : > { %v1171_v31 = vpop.f32.mrf.mxu3  ;;  %v873_v11 = vpop.f32.mrf.mxu1 }
 0x12e   : > { %v1195_v55 = vadd.f32 %v1171_v31, %v1061_v0  ;;  %2802 = vmatmul.msk.bf16.gmra.mxu2 %vm687_vm3, %v2855_v62  ;;  %v874_v8 = vadd.f32 %v873_v11, %v3505_v57  ;;  %v2043_v57 = vpack.c.b16 %v2035_v50, %v2034_v10 }
 0x130   : > { %v3806_v26 = vadd.f32 %v1481_v23, %v1195_v55  ;;  %v2217_v23 = vunpack.c.l.b16 %v2199_v56  ;;  %v3980_v55 = vld [vmem:[#allocation3_spill] sm:$0xff] }
 0x131   : > { %v1040_v38 = vpop.f32.mrf.mxu2 }
 0x132   : > { %2811 = vmatmul.msk.bf16.gmra.mxu3 %vm687_vm3, %v2042_v6  ;;  %v1062_v18 = vadd.f32 %v1040_v38, %v872_v43  ;;  %v2225_v31 = vpack.c.b16 %v2217_v23, %v2216_v24 }
 0x133   : > { %v1484_v29 = vpop.f32.mrf.mxu0 }
 0x135   : > { %v1174_v7 = vpop.f32.mrf.mxu3  ;;  %v876_v54 = vpop.f32.mrf.mxu1 }
 0x136   : > { %2828 = vmatmul.msk.bf16.gmra.mxu0 %vm687_vm3, %v2224_v45  ;;  %v1196_v1 = vadd.f32 %v1174_v7, %v1062_v18  ;;  %v877_v12 = vadd.f32 %v876_v54, %v3979_v39 }
 0x138   : > { %2762 = vmatmul.msk.bf16.gmra.mxu1 %vm687_vm3, %v1599_v61  ;;  %v3818_v14 = vadd.f32 %v1484_v29, %v1196_v1  ;;  %v3845_v61 = vld [vmem:[%s3970_s4] ss:$0 sm:$0xff] }
 0x139   : > { %v1042_v4 = vpop.f32.mrf.mxu2 }
 0x13a   : > { %v1063_v19 = vadd.f32 %v1042_v4, %v874_v8 }
 0x13b   : > { %v1486_v0 = vpop.f32.mrf.mxu0 }
 0x13d   : > { %v1176_v62 = vpop.f32.mrf.mxu3  ;;  %v878_v9 = vpop.f32.mrf.mxu1 }
 0x13e   : > { %v1197_v47 = vadd.f32 %v1176_v62, %v1063_v19  ;;  %2803 = vmatmul.msk.bf16.gmra.mxu2 %vm687_vm3, %v2856_v49  ;;  %v879_v6 = vadd.f32 %v878_v9, %v3980_v55 }
 0x140   : > { %v3827_v17 = vadd.f32 %v1486_v0, %v1197_v47 }
 0x141   : > { %v1045_v41 = vpop.f32.mrf.mxu2 }
 0x142   : > { %2812 = vmatmul.msk.bf16.gmra.mxu3 %vm687_vm3, %v2043_v57  ;;  %v1064_v53 = vadd.f32 %v1045_v41, %v877_v12 }
 0x143   : > { %v1489_v33 = vpop.f32.mrf.mxu0 }
 0x145   : > { %v1179_v11 = vpop.f32.mrf.mxu3  ;;  %v1636_v60 = vpop.f32.mrf.mxu1 }
 0x146   : > { %2829 = vmatmul.msk.bf16.gmra.mxu0 %vm687_vm3, %v2225_v31  ;;  %v1198_v16 = vadd.f32 %v1179_v11, %v1064_v53  ;;  %v1676_v38 = vadd.f32 %v1636_v60, %v3591_v25 }
 0x148   : > { %v3833_v30 = vadd.f32 %v1489_v33, %v1198_v16 }
 0x149   : > { %v1047_v48 = vpop.f32.mrf.mxu2 }
 0x14a   : > { %v1065_v46 = vadd.f32 %v1047_v48, %v879_v6 }
 0x14b   : > { %v1491_v51 = vpop.f32.mrf.mxu0 }
 0x14d   : > { %v1181_v43 = vpop.f32.mrf.mxu3  ;;  %v1638_v22 = vpop.f32.mrf.mxu1 }
 0x14e   : > { %v1199_v2 = vadd.f32 %v1181_v43, %v1065_v46  ;;  %v1677_v25 = vadd.f32 %v1638_v22, %v3605_v32 }
 0x150   : > { %v3837_v45 = vadd.f32 %v1491_v51, %v1199_v2 }
 0x151   : > { %v1770_v18 = vpop.f32.mrf.mxu2 }
 0x152   : > { %v1810_v40 = vadd.f32 %v1770_v18, %v1676_v38 }
 0x153   : > { %v2262_v29 = vpop.f32.mrf.mxu0 }
 0x155   : > { %v2080_v42 = vpop.f32.mrf.mxu3  ;;  %v1641_v37 = vpop.f32.mrf.mxu1 }
 0x156   : > { %v2120_v27 = vadd.f32 %v2080_v42, %v1810_v40  ;;  %v1678_v32 = vadd.f32 %v1641_v37, %v3628_v13 }
 0x158   : > { %v2302_v7 = vadd.f32 %v2262_v29, %v2120_v27 }
 0x159   : > { %v1772_v54 = vpop.f32.mrf.mxu2 }
 0x15a   : > { %v2322_v1 = vadd.f32 %v3845_v61, %v2302_v7  ;;  %v1811_v52 = vadd.f32 %v1772_v54, %v1677_v25 }
 0x15b   : > { %v2264_v58 = vpop.f32.mrf.mxu0 }
 0x15c   : > { %2339 = vst.msk [vmem:[%s3851_s8] sm:$0xff] %vm2338_vm8, %v2322_v1  ;;  %v2392_v19 = vmul.f32 %v2322_v1, %v2322_v1  ;;  %v2355_v0 = vsel %vm2338_vm8, %v2322_v1, 0.0 }
 0x15d   : > { %v2082_v5 = vpop.f32.mrf.mxu3  ;;  %v1643_v3 = vpop.f32.mrf.mxu1 }
 0x15e   : > { %v2121_v15 = vadd.f32 %v2082_v5, %v1811_v52  ;;  %v2408_v57 = vsel %vm2338_vm8, %v2392_v19, 0.0  ;;  %v1679_v12 = vadd.f32 %v1643_v3, %v3651_v34 }
 0x160   : > { %v2303_v8 = vadd.f32 %v2264_v58, %v2121_v15 }
 0x161   : > { %v1775_v4 = vpop.f32.mrf.mxu2 }
 0x162   : > { %v2323_v49 = vadd.f32 %v3845_v61, %v2303_v8  ;;  %v1812_v10 = vadd.f32 %v1775_v4, %v1678_v32 }
 0x163   : > { %v2267_v50 = vpop.f32.mrf.mxu0 }
 0x164   : > { %2340 = vst.msk [vmem:[%s3851_s8 + $0x8] sm:$0xff] %vm2338_vm8, %v2323_v49  ;;  %v2356_v36 = vsel %vm2338_vm8, %v2323_v49, 0.0  ;;  %v2393_v56 = vmul.f32 %v2323_v49, %v2323_v49 }
 0x165   : > { %v2357_v62 = vadd.f32 %v2356_v36, %v2355_v0  ;;  %v2085_v9 = vpop.f32.mrf.mxu3  ;;  %v1646_v47 = vpop.f32.mrf.mxu1 }
 0x166   : > { %v2409_v13 = vsel %vm2338_vm8, %v2393_v56, 0.0  ;;  %v2122_v24 = vadd.f32 %v2085_v9, %v1812_v10  ;;  %v1680_v34 = vadd.f32 %v1646_v47, %v3671_v35 }
 0x167   : > { %v2410_v23 = vadd.f32 %v2409_v13, %v2408_v57 }
 0x168   : > { %v2304_v39 = vadd.f32 %v2267_v50, %v2122_v24 }
 0x169   : > { %v1777_v41 = vpop.f32.mrf.mxu2 }
 0x16a   : > { %v2324_v31 = vadd.f32 %v3845_v61, %v2304_v39  ;;  %v1813_v53 = vadd.f32 %v1777_v41, %v1679_v12 }
 0x16b   : > { %v2269_v33 = vpop.f32.mrf.mxu0 }
 0x16c   : > { %2341 = vst.msk [vmem:[%s3851_s8 + $0x10] sm:$0xff] %vm2338_vm8, %v2324_v31  ;;  %v2358_v11 = vsel %vm2338_vm8, %v2324_v31, 0.0  ;;  %v2394_v60 = vmul.f32 %v2324_v31, %v2324_v31 }
 0x16d   : > { %v2359_v16 = vadd.f32 %v2358_v11, %v2357_v62  ;;  %v2087_v55 = vpop.f32.mrf.mxu3  ;;  %v1648_v6 = vpop.f32.mrf.mxu1 }
 0x16e   : > { %v2411_v48 = vsel %vm2338_vm8, %v2394_v60, 0.0  ;;  %v2123_v46 = vadd.f32 %v2087_v55, %v1813_v53  ;;  %v1681_v35 = vadd.f32 %v1648_v6, %v3693_v59 }
 0x16f   : > { %v2412_v51 = vadd.f32 %v2411_v48, %v2410_v23 }
 0x170   : > { %v2305_v43 = vadd.f32 %v2269_v33, %v2123_v46 }
 0x171   : > { %v1780_v22 = vpop.f32.mrf.mxu2 }
 0x172   : > { %v2325_v2 = vadd.f32 %v3845_v61, %v2305_v43  ;;  %v1814_v38 = vadd.f32 %v1780_v22, %v1680_v34 }
 0x173   : > { %v2272_v18 = vpop.f32.mrf.mxu0 }
 0x174   : > { %2342 = vst.msk [vmem:[%s3851_s8 + $0x18] sm:$0xff] %vm2338_vm8, %v2325_v2  ;;  %v2360_v40 = vsel %vm2338_vm8, %v2325_v2, 0.0  ;;  %v2395_v29 = vmul.f32 %v2325_v2, %v2325_v2 }
 0x175   : > { %v2361_v42 = vadd.f32 %v2360_v40, %v2359_v16  ;;  %v2090_v37 = vpop.f32.mrf.mxu3  ;;  %v1651_v27 = vpop.f32.mrf.mxu1 }
 0x176   : > { %v2413_v7 = vsel %vm2338_vm8, %v2395_v29, 0.0  ;;  %v2124_v25 = vadd.f32 %v2090_v37, %v1814_v38  ;;  %v1682_v59 = vadd.f32 %v1651_v27, %v3708_v63 }
 0x177   : > { %v2414_v54 = vadd.f32 %v2413_v7, %v2412_v51 }
 0x178   : > { %v2306_v1 = vadd.f32 %v2272_v18, %v2124_v25 }
 0x179   : > { %v1782_v52 = vpop.f32.mrf.mxu2 }
 0x17a   : > { %v2326_v58 = vadd.f32 %v3845_v61, %v2306_v1  ;;  %v1815_v5 = vadd.f32 %v1782_v52, %v1681_v35 }
 0x17b   : > { %v2274_v3 = vpop.f32.mrf.mxu0 }
 0x17c   : > { %2343 = vst.msk [vmem:[%s3851_s8 + $0x20] sm:$0xff] %vm2338_vm8, %v2326_v58  ;;  %v2362_v15 = vsel %vm2338_vm8, %v2326_v58, 0.0  ;;  %v2396_v8 = vmul.f32 %v2326_v58, %v2326_v58 }
 0x17d   : > { %v2363_v32 = vadd.f32 %v2362_v15, %v2361_v42  ;;  %v2092_v4 = vpop.f32.mrf.mxu3  ;;  %v1653_v19 = vpop.f32.mrf.mxu1 }
 0x17e   : > { %v2415_v49 = vsel %vm2338_vm8, %v2396_v8, 0.0  ;;  %v2125_v10 = vadd.f32 %v2092_v4, %v1815_v5  ;;  %v1683_v63 = vadd.f32 %v1653_v19, %v3732_v21 }
 0x17f   : > { %v2416_v50 = vadd.f32 %v2415_v49, %v2414_v54 }
 0x180   : > { %v2307_v0 = vadd.f32 %v2274_v3, %v2125_v10 }
 0x181   : > { %v1785_v36 = vpop.f32.mrf.mxu2 }
 0x182   : > { %v2327_v56 = vadd.f32 %v3845_v61, %v2307_v0  ;;  %v1816_v62 = vadd.f32 %v1785_v36, %v1682_v59 }
 0x183   : > { %v2277_v9 = vpop.f32.mrf.mxu0 }
 0x184   : > { %2344 = vst.msk [vmem:[%s3851_s8 + $0x28] sm:$0xff] %vm2338_vm8, %v2327_v56  ;;  %v2364_v47 = vsel %vm2338_vm8, %v2327_v56, 0.0  ;;  %v2397_v57 = vmul.f32 %v2327_v56, %v2327_v56 }
 0x185   : > { %v2365_v13 = vadd.f32 %v2364_v47, %v2363_v32  ;;  %v2095_v24 = vpop.f32.mrf.mxu3  ;;  %v1656_v23 = vpop.f32.mrf.mxu1 }
 0x186   : > { %v2417_v39 = vsel %vm2338_vm8, %v2397_v57, 0.0  ;;  %v2126_v12 = vadd.f32 %v2095_v24, %v1816_v62  ;;  %v1684_v21 = vadd.f32 %v1656_v23, %v3754_v20 }
 0x187   : > { %v2418_v41 = vadd.f32 %v2417_v39, %v2416_v50 }
 0x188   : > { %v2308_v31 = vadd.f32 %v2277_v9, %v2126_v12 }
 0x189   : > { %v1787_v53 = vpop.f32.mrf.mxu2 }
 0x18a   : > { %v2328_v33 = vadd.f32 %v3845_v61, %v2308_v31  ;;  %v1817_v11 = vadd.f32 %v1787_v53, %v1683_v63 }
 0x18b   : > { %v2279_v60 = vpop.f32.mrf.mxu0 }
 0x18c   : > { %2345 = vst.msk [vmem:[%s3851_s8 + $0x30] sm:$0xff] %vm2338_vm8, %v2328_v33  ;;  %v2366_v16 = vsel %vm2338_vm8, %v2328_v33, 0.0  ;;  %v2398_v55 = vmul.f32 %v2328_v33, %v2328_v33 }
 0x18d   : > { %v2367_v6 = vadd.f32 %v2366_v16, %v2365_v13  ;;  %v2097_v48 = vpop.f32.mrf.mxu3  ;;  %v1658_v46 = vpop.f32.mrf.mxu1 }
 0x18e   : > { %v2419_v51 = vsel %vm2338_vm8, %v2398_v55, 0.0  ;;  %v2127_v43 = vadd.f32 %v2097_v48, %v1817_v11  ;;  %v1685_v20 = vadd.f32 %v1658_v46, %v3768_v28 }
 0x18f   : > { %v2420_v34 = vadd.f32 %v2419_v51, %v2418_v41 }
 0x190   : > { %v2309_v22 = vadd.f32 %v2279_v60, %v2127_v43 }
 0x191   : > { %v1790_v2 = vpop.f32.mrf.mxu2 }
 0x192   : > { %v2329_v38 = vadd.f32 %v3845_v61, %v2309_v22  ;;  %v1818_v18 = vadd.f32 %v1790_v2, %v1684_v21 }
 0x193   : > { %v2282_v40 = vpop.f32.mrf.mxu0 }
 0x194   : > { %2346 = vst.msk [vmem:[%s3851_s8 + $0x38] sm:$0xff] %vm2338_vm8, %v2329_v38  ;;  %v2368_v29 = vsel %vm2338_vm8, %v2329_v38, 0.0  ;;  %v2399_v42 = vmul.f32 %v2329_v38, %v2329_v38 }
 0x195   : > { %v2369_v37 = vadd.f32 %v2368_v29, %v2367_v6  ;;  %v2100_v27 = vpop.f32.mrf.mxu3  ;;  %v1661_v7 = vpop.f32.mrf.mxu1 }
 0x196   : > { %v2421_v25 = vsel %vm2338_vm8, %v2399_v42, 0.0  ;;  %v2128_v54 = vadd.f32 %v2100_v27, %v1818_v18  ;;  %v1686_v28 = vadd.f32 %v1661_v7, %v3791_v44 }
 0x197   : > { %v2422_v1 = vadd.f32 %v2421_v25, %v2420_v34 }
 0x198   : > { %v2310_v35 = vadd.f32 %v2282_v40, %v2128_v54 }
 0x199   : > { %v1792_v52 = vpop.f32.mrf.mxu2 }
 0x19a   : > { %v2330_v58 = vadd.f32 %v3845_v61, %v2310_v35  ;;  %v1819_v5 = vadd.f32 %v1792_v52, %v1685_v20 }
 0x19b   : > { %v2284_v3 = vpop.f32.mrf.mxu0 }
 0x19c   : > { %2347 = vst.msk [vmem:[%s3851_s8 + $0x40] sm:$0xff] %vm2338_vm8, %v2330_v58  ;;  %v2370_v15 = vsel %vm2338_vm8, %v2330_v58, 0.0  ;;  %v2400_v8 = vmul.f32 %v2330_v58, %v2330_v58 }
 0x19d   : > { %v2371_v32 = vadd.f32 %v2370_v15, %v2369_v37  ;;  %v2102_v4 = vpop.f32.mrf.mxu3  ;;  %v1663_v19 = vpop.f32.mrf.mxu1 }
 0x19e   : > { %v2423_v49 = vsel %vm2338_vm8, %v2400_v8, 0.0  ;;  %v2129_v10 = vadd.f32 %v2102_v4, %v1819_v5  ;;  %v1687_v44 = vadd.f32 %v1663_v19, %v3806_v26 }
 0x19f   : > { %v2424_v50 = vadd.f32 %v2423_v49, %v2422_v1 }
 0x1a0   : > { %v2311_v0 = vadd.f32 %v2284_v3, %v2129_v10 }
 0x1a1   : > { %v1795_v59 = vpop.f32.mrf.mxu2 }
 0x1a2   : > { %v2331_v36 = vadd.f32 %v3845_v61, %v2311_v0  ;;  %v1820_v56 = vadd.f32 %v1795_v59, %v1686_v28 }
 0x1a3   : > { %v2287_v62 = vpop.f32.mrf.mxu0 }
 0x1a4   : > { %2348 = vst.msk [vmem:[%s3851_s8 + $0x48] sm:$0xff] %vm2338_vm8, %v2331_v36  ;;  %v2372_v9 = vsel %vm2338_vm8, %v2331_v36, 0.0  ;;  %v2401_v47 = vmul.f32 %v2331_v36, %v2331_v36 }
 0x1a5   : > { %v2373_v57 = vadd.f32 %v2372_v9, %v2371_v32  ;;  %v2105_v13 = vpop.f32.mrf.mxu3  ;;  %v1666_v39 = vpop.f32.mrf.mxu1 }
 0x1a6   : > { %v2425_v24 = vsel %vm2338_vm8, %v2401_v47, 0.0  ;;  %v2130_v23 = vadd.f32 %v2105_v13, %v1820_v56  ;;  %v1688_v26 = vadd.f32 %v1666_v39, %v3818_v14 }
 0x1a7   : > { %v2426_v12 = vadd.f32 %v2425_v24, %v2424_v50 }
 0x1a8   : > { %v2312_v41 = vadd.f32 %v2287_v62, %v2130_v23 }
 0x1a9   : > { %v1797_v31 = vpop.f32.mrf.mxu2 }
 0x1aa   : > { %v2332_v63 = vadd.f32 %v3845_v61, %v2312_v41  ;;  %v1821_v53 = vadd.f32 %v1797_v31, %v1687_v44 }
 0x1ab   : > { %v2289_v33 = vpop.f32.mrf.mxu0 }
 0x1ac   : > { %2349 = vst.msk [vmem:[%s3851_s8 + $0x50] sm:$0xff] %vm2338_vm8, %v2332_v63  ;;  %v2374_v11 = vsel %vm2338_vm8, %v2332_v63, 0.0  ;;  %v2402_v60 = vmul.f32 %v2332_v63, %v2332_v63 }
 0x1ad   : > { %v2375_v16 = vadd.f32 %v2374_v11, %v2373_v57  ;;  %v2107_v55 = vpop.f32.mrf.mxu3  ;;  %v1668_v43 = vpop.f32.mrf.mxu1 }
 0x1ae   : > { %v2427_v6 = vsel %vm2338_vm8, %v2402_v60, 0.0  ;;  %v2131_v48 = vadd.f32 %v2107_v55, %v1821_v53  ;;  %v1689_v14 = vadd.f32 %v1668_v43, %v3827_v17 }
 0x1af   : > { %v2428_v46 = vadd.f32 %v2427_v6, %v2426_v12 }
 0x1b0   : > { %v2313_v51 = vadd.f32 %v2289_v33, %v2131_v48 }
 0x1b1   : > { %v1800_v34 = vpop.f32.mrf.mxu2 }
 0x1b2   : > { %v2333_v22 = vadd.f32 %v3845_v61, %v2313_v51  ;;  %v1822_v21 = vadd.f32 %v1800_v34, %v1688_v26 }
 0x1b3   : > { %v2292_v2 = vpop.f32.mrf.mxu0 }
 0x1b4   : > { %2350 = vst.msk [vmem:[%s3851_s8 + $0x58] sm:$0xff] %vm2338_vm8, %v2333_v22  ;;  %v2376_v38 = vsel %vm2338_vm8, %v2333_v22, 0.0  ;;  %v2403_v18 = vmul.f32 %v2333_v22, %v2333_v22 }
 0x1b5   : > { %v2377_v40 = vadd.f32 %v2376_v38, %v2375_v16  ;;  %v2110_v29 = vpop.f32.mrf.mxu3  ;;  %v1671_v35 = vpop.f32.mrf.mxu1 }
 0x1b6   : > { %v2429_v42 = vsel %vm2338_vm8, %v2403_v18, 0.0  ;;  %v2132_v37 = vadd.f32 %v2110_v29, %v1822_v21  ;;  %v1690_v17 = vadd.f32 %v1671_v35, %v3833_v30 }
 0x1b7   : > { %v2430_v27 = vadd.f32 %v2429_v42, %v2428_v46 }
 0x1b8   : > { %v2314_v7 = vadd.f32 %v2292_v2, %v2132_v37 }
 0x1b9   : > { %v1802_v25 = vpop.f32.mrf.mxu2 }
 0x1ba   : > { %v2334_v54 = vadd.f32 %v3845_v61, %v2314_v7  ;;  %v1823_v1 = vadd.f32 %v1802_v25, %v1689_v14 }
 0x1bb   : > { %v2294_v20 = vpop.f32.mrf.mxu0 }
 0x1bc   : > { %2351 = vst.msk [vmem:[%s3851_s8 + $0x60] sm:$0xff] %vm2338_vm8, %v2334_v54  ;;  %v2378_v52 = vsel %vm2338_vm8, %v2334_v54, 0.0  ;;  %v2404_v58 = vmul.f32 %v2334_v54, %v2334_v54 }
 0x1bd   : > { %v2379_v5 = vadd.f32 %v2378_v52, %v2377_v40  ;;  %v2112_v3 = vpop.f32.mrf.mxu3  ;;  %v1673_v28 = vpop.f32.mrf.mxu1 }
 0x1be   : > { %v2431_v15 = vsel %vm2338_vm8, %v2404_v58, 0.0  ;;  %v2133_v8 = vadd.f32 %v2112_v3, %v1823_v1  ;;  %v1691_v30 = vadd.f32 %v1673_v28, %v3837_v45 }
 0x1bf   : > { %v2432_v32 = vadd.f32 %v2431_v15, %v2430_v27 }
 0x1c0   : > { %v2315_v4 = vadd.f32 %v2294_v20, %v2133_v8 }
 0x1c1   : > { %v1805_v19 = vpop.f32.mrf.mxu2 }
 0x1c2   : > { %v2335_v49 = vadd.f32 %v3845_v61, %v2315_v4  ;;  %v1824_v10 = vadd.f32 %v1805_v19, %v1690_v17 }
 0x1c3   : > { %v2297_v36 = vpop.f32.mrf.mxu0 }
 0x1c4   : > { %2352 = vst.msk [vmem:[%s3851_s8 + $0x68] sm:$0xff] %vm2338_vm8, %v2335_v49  ;;  %v2380_v50 = vsel %vm2338_vm8, %v2335_v49, 0.0  ;;  %v2405_v0 = vmul.f32 %v2335_v49, %v2335_v49 }
 0x1c5   : > { %v2381_v59 = vadd.f32 %v2380_v50, %v2379_v5  ;;  %v2115_v56 = vpop.f32.mrf.mxu3 }
 0x1c6   : > { %v2433_v62 = vsel %vm2338_vm8, %v2405_v0, 0.0  ;;  %v2134_v9 = vadd.f32 %v2115_v56, %v1824_v10 }
 0x1c7   : > { %v2434_v47 = vadd.f32 %v2433_v62, %v2432_v32 }
 0x1c8   : > { %v2316_v57 = vadd.f32 %v2297_v36, %v2134_v9 }
 0x1c9   : > { %v1807_v13 = vpop.f32.mrf.mxu2 }
 0x1ca   : > { %v2336_v24 = vadd.f32 %v3845_v61, %v2316_v57  ;;  %v1825_v23 = vadd.f32 %v1807_v13, %v1691_v30 }
 0x1cb   : > { %v2299_v33 = vpop.f32.mrf.mxu0 }
 0x1cc   : > { %2353 = vst.msk [vmem:[%s3851_s8 + $0x70] sm:$0xff] %vm2338_vm8, %v2336_v24  ;;  %v2382_v39 = vsel %vm2338_vm8, %v2336_v24, 0.0  ;;  %v2406_v12 = vmul.f32 %v2336_v24, %v2336_v24 }
 0x1cd   : > { %v2383_v41 = vadd.f32 %v2382_v39, %v2381_v59  ;;  %v2117_v44 = vpop.f32.mrf.mxu3 }
 0x1ce   : > { %v2435_v31 = vsel %vm2338_vm8, %v2406_v12, 0.0  ;;  %v2135_v63 = vadd.f32 %v2117_v44, %v1825_v23 }
 0x1cf   : > { %v2436_v53 = vadd.f32 %v2435_v31, %v2434_v47 }
 0x1d0   : > { %v2317_v11 = vadd.f32 %v2299_v33, %v2135_v63 }
 0x1d2   : > { %v2337_v60 = vadd.f32 %v3845_v61, %v2317_v11 }
 0x1d4   : > { %2354 = vst.msk [vmem:[%s3851_s8 + $0x78] sm:$0xff] %vm2338_vm8, %v2337_v60  ;;  %v2384_v45 = vsel %vm2338_vm8, %v2337_v60, 0.0  ;;  %v2407_v16 = vmul.f32 %v2337_v60, %v2337_v60 }
 0x1d5   : > { %v2385_v55 = vadd.f32 %v2384_v45, %v2383_v41 }
 0x1d6   : > { %v2437_v6 = vsel %vm2338_vm8, %v2407_v16, 0.0 }
 0x1d7   : > { %v2386_v48 = vrot.slane %v2385_v55, 4  ;;  %v2438_v46 = vadd.f32 %v2437_v6, %v2436_v53 }
 0x1d9   : > { %v2387_v51 = vadd.f32 %v2386_v48, %v2385_v55  ;;  %v2439_v26 = vrot.slane %v2438_v46, 4 }
 0x1db   : > { %v2388_v43 = vrot.slane %v2387_v51, 2  ;;  %v2440_v34 = vadd.f32 %v2439_v26, %v2438_v46 }
 0x1dd   : > { %v2389_v22 = vadd.f32 %v2388_v43, %v2387_v51  ;;  %v2441_v21 = vrot.slane %v2440_v34, 2 }
 0x1df   : > { %v2390_v2 = vrot.slane %v2389_v22, 1  ;;  %v2442_v38 = vadd.f32 %v2441_v21, %v2440_v34 }
 0x1e1   : > { %v2443_v61 = vrot.slane %v2442_v38, 1  ;;  %v2391_v18 = vadd.f32 %v2390_v2, %v2389_v22 }
 0x1e3   : > { %v2444_v40 = vadd.f32 %v2443_v61, %v2442_v38 }
 0x1e5   : > { %v2446_v29 = vsel %vm2445_vm9, %v2391_v18, %v2444_v40 }
 0x1e6   : > { %2448 = vst.msk [vmem:[%s389_s12] sm:$0x3] %vm2447_vm10, %v2446_v29 }
 0x1e7 PF: > { %s17_s25 = sadd.s32 1, %s2941_s25   ;;  %s3981_s21 = smov %s2933_s23 }
 0x1e8   : > { %p14_p8 = scmp.ge.s32.totalorder %s17_s25, 6   ;;  %s3982_s22 = smov %s2937_s24 }
 0x1e9   : > { %s3983_s23 = smov %s3986_s26  ;;  %s3984_s24 = smov %s3990_s27 }
 0x1ea   :  { %16 = sbr.rel (!%p14_p8) target bundleno = 3 (0x3), region = 96 }

// kernel: _lambda_.6
= control target key start
LH: loop header
LB: loop body
LE: loop exit
PB: predicated region body
PF: predicated region fallthrough
CT: control target
= control target key end

     0   :  { %s2977_s21 = smov 0   ;;  %s2979_s22 = smov 0   ;;  %s3965_s0 = inlined_call_operand.vmem [shape: bf16[2,16,18,8], index: 0, kind: input, shape index: {}]   ;;  %s3966_s1 = inlined_call_operand.vmem [shape: bf16[2,16,18,8], index: 1, kind: input, shape index: {}]   ;;  %s3967_s2 = inlined_call_operand.vmem [shape: bf16[2,16,18,8], index: 2, kind: input, shape index: {}]   ;;  %s3968_s3 = inlined_call_operand.vmem [shape: bf16[9,8,128], index: 3, kind: input, shape index: {}]   ;;  %s3969_s4 = inlined_call_operand.vmem [shape: f32[1,8], index: 4, kind: input, shape index: {}]   ;;  %s3970_s5 = inlined_call_operand.vmem [shape: f32[4,128,8], index: 5, kind: output, shape index: {0}]   ;;  %s3971_s6 = inlined_call_operand.vmem [shape: f32[4,2,8], index: 6, kind: output, shape index: {1}]  }
   0x1   :  { %s2981_s23 = smov 0   ;;  %s2983_s24 = smov 0  }
   0x2   :  { %s2985_s25 = smov 0  }
   0x3 LB: > { %s26_s26 = sadd.s32 1, %s2932_s23  ;;  %s29_s27 = sadd.s32 1, %s2936_s24  ;;  %s2940_s25 = sphi %s2985_s25, %s17_s25   ;;  %s2936_s24 = sphi %s2983_s24, %s3983_s24   ;;  %s2932_s23 = sphi %s2981_s23, %s3982_s23   ;;  %s2928_s22 = sphi %s2979_s22, %s3981_s22   ;;  %s2924_s21 = sphi %s2977_s21, %s3980_s21  }
   0x4   : > { %p27_p0 = scmp.ge.s32.totalorder %s26_s26, 2  ;;  %p2617_p1 = scmp.ge.s32.totalorder %s2940_s25, 1 }
   0x5   : > { %p279_p2 = scmp.lt.s32.totalorder %s2940_s25, 5 }
   0x6   : > { %s3985_s26 = smov (%p27_p0, %s26_s26), 0  ;;  %s3987_s27 = smov (!%p27_p0, %s29_s27), %s2936_s24 }
   0x7   : > { %p280_p3 = pnand %p2617_p1, %p279_p2  ;;  %p31_p4 = scmp.ge.s32.totalorder %s3987_s27, 2 }
   0x9   : > { %s3989_s27 = smov (%p31_p4, %s3987_s27), 0  ;;  %283 = sbr.rel (%p280_p3) target bundleno = 487 (0x1e7), region = 40 }
   0xe   : > { %v2629_v0 = vld [vmem:[%s3968_s3 + $0x4] sm:$0xf]  ;;  %vm712_vm0 = vcmask 1043456   ;;  %s2618_s30 = sshll.u32 %s2924_s21, 3  ;;  %p343_p5 = scmp.lt.s32.totalorder %s2928_s22, 1  ;;  %vm687_vm3 = vcmask 64512  }
   0xf   : > { %v714_v1 = vsel %vm712_vm0, %v2629_v0, 0  ;;  %p345_p6 = scmp.lt.s32.totalorder %s2618_s30, 15  ;;  %v2686_v2 = vld [vmem:[%s3968_s3 + $0x8] sm:$0xf]  ;;  %v2695_v4 = vld [vmem:[%s3968_s3 + $0xc] sm:$0xf] }
  0x10   : > { %2856 = vmatpush.bf16.msra.mxu1 %v714_v1  ;;  %2857 = vmatpush.bf16.msra.mxu2 %v714_v1  ;;  %s344_s7 = scalar_select %p343_p5, %s2928_s22, 1  ;;  %v999_v3 = vsel %vm712_vm0, %v2686_v2, 0  ;;  %v465_v5 = vld [vmem:[%s3968_s3] sm:$0xf]  ;;  %v2736_v6 = vld [vmem:[%s3968_s3 + $0x10] sm:$0xf] }
  0x11   : > { %2858 = vmatpush.bf16.msra.mxu3 %v714_v1  ;;  %723 = vmatpush.bf16.msra.mxu0 %v714_v1  ;;  %s3991_s30 = smov (!%p345_p6, %s2618_s30), 15  ;;  %v1133_v7 = vsel %vm712_vm0, %v2695_v4, 0  ;;  %v830_v8 = vsel %vm712_vm0, %v465_v5, 0  ;;  %v1443_v9 = vsel %vm712_vm0, %v2736_v6, 0  ;;  %vm466_vm1 = vsmask.f32 3328 }
  0x12   : > { %s2860_s10 = smul.u32 48, %s344_s7  ;;  %vm467_vm2 = vsmask.f32 7440  ;;  %vm889_vm5 = vcmask 1042432   ;;  %vm890_vm6 = vcmask 1046532   ;;  %vm2444_vm8 = vcmask 1040384  }
  0x13   : > { %s2859_s11 = smul.u32 3, %s3991_s30  ;;  %vm3078_vm4 = vmor %vm466_vm1, %vm467_vm2  ;;  %vm2446_vm9 = vcmask 58368  }
  0x14   : > { %1008 = vmatpush.bf16.msrb.mxu2 %v999_v3  ;;  %839 = vmatpush.bf16.msrb.mxu1 %v830_v8  ;;  %vm3218_vm7 = vmor %vm889_vm5, %vm890_vm6 }
  0x15   : > { %s349_s18 = sadd.s32 %s2860_s10, %s2859_s11  ;;  %1142 = vmatpush.bf16.msrb.mxu3 %v1133_v7  ;;  %1452 = vmatpush.bf16.msrb.mxu0 %v1443_v9 }
  0x16   : > { %s3034_s19 = sshll.u32 %s349_s18, 2 }
  0x17   : > { %s3040_s29 = scalar_lea.vmem %s3965_s0, %s3034_s19  ;;  %s3193_s8 = scalar_lea.vmem %s3966_s1, %s3034_s19 }
  0x18   : > { %v3043_v10 = vld [vmem:[%s3040_s29 + $0x18] sm:$0xf]  ;;  %v3046_v11 = vld [vmem:[%s3040_s29 + $0x1c] sm:$0xf]  ;;  %v3049_v12 = vld [vmem:[%s3040_s29 + $0x20] sm:$0x1]  ;;  %s3467_s20 = scalar_lea.vmem %s3967_s2, %s3034_s19 }
  0x19   : > { %v518_v13 = vshrl.u32 %v3043_v10, 16  ;;  %v521_v14 = vshll.u32 %v3043_v10, 16  ;;  %v527_v15 = vshll.u32 %v3046_v11, 16  ;;  %v531_v16 = vshrl.u32 %v3046_v11, 16  ;;  %v3056_v17 = vld [vmem:[%s3040_s29 + $0x30] sm:$0xf] }
  0x1a   : > { %v537_v18 = vshll.u32 %v3049_v12, 16  ;;  %v3060_v19 = vld [vmem:[%s3040_s29 + $0x34] sm:$0xf]  ;;  %v3063_v20 = vld [vmem:[%s3040_s29 + $0x38] sm:$0x1]  ;;  %v566_v21 = vshrl.u32 %v3056_v17, 16 }
  0x1b   : > { %v520_v22 = vrot.slane %v518_v13, 4  ;;  %v523_v23 = vrot.slane %v521_v14, 5  ;;  %v529_v24 = vrot.slane %v527_v15, 5  ;;  %v533_v25 = vrot.slane %v531_v16, 4  ;;  %v3067_v26 = vld [vmem:[%s3040_s29 + $0x48] sm:$0xf] }
  0x1c   : > { %v539_v27 = vrot.slane %v537_v18, 5  ;;  %v568_v28 = vrot.slane %v566_v21, 4  ;;  %v569_v29 = vshll.u32 %v3056_v17, 16  ;;  %v575_v30 = vshll.u32 %v3060_v19, 16  ;;  %v3074_v35 = vld [vmem:[%s3040_s29 + $0x4c] sm:$0xf] }
  0x1d   : > { %v524_v31 = vor.u32 %v523_v23, %v520_v22  ;;  %v534_v32 = vor.u32 %v533_v25, %v529_v24  ;;  %v579_v33 = vshrl.u32 %v3060_v19, 16  ;;  %v585_v34 = vshll.u32 %v3063_v20, 16  ;;  %v3085_v46 = vld [vmem:[%s3040_s29 + $0x50] sm:$0x1]  ;;  %v3094_v54 = vld [vmem:[%s3040_s29] sm:$0xf] }
  0x1e   : > { %v571_v37 = vrot.slane %v569_v29, 5  ;;  %v577_v38 = vrot.slane %v575_v30, 5  ;;  %v614_v39 = vshrl.u32 %v3067_v26, 16  ;;  %v617_v40 = vshll.u32 %v3067_v26, 16  ;;  %v3100_v2 = vld [vmem:[%s3040_s29 + $0x4] sm:$0xf] }
  0x1f   : > { %v525_v41 = vrot.slane %v524_v31, 4  ;;  %v535_v42 = vrot.slane %v534_v32, 4  ;;  %v581_v43 = vrot.slane %v579_v33, 4  ;;  %v587_v44 = vrot.slane %v585_v34, 5  ;;  %v3106_v8 = vld [vmem:[%s3040_s29 + $0x8] sm:$0x1] }
  0x20   : > { %v572_v45 = vor.u32 %v571_v37, %v568_v28  ;;  %v616_v47 = vrot.slane %v614_v39, 4  ;;  %v619_v48 = vrot.slane %v617_v40, 5  ;;  %v623_v49 = vshll.u32 %v3074_v35, 16  ;;  %v3113_v16 = vld [vmem:[%s3040_s29 + $0x24] sm:$0xf]  ;;  %s2624_s19 = sshll.u32 %s2928_s22, 1 }
  0x21   : > { %v530_v50 = vsel %vm3078_vm4, %v525_v41, %v529_v24  ;;  %v540_v51 = vsel %vm3078_vm4, %v535_v42, %v539_v27  ;;  %v582_v52 = vor.u32 %v581_v43, %v577_v38  ;;  %v627_v53 = vshrl.u32 %v3074_v35, 16  ;;  %v3120_v29 = vld [vmem:[%s3040_s29 + $0x28] sm:$0xf]  ;;  %v3125_v33 = vld [vmem:[%s3040_s29 + $0x2c] sm:$0x1]  ;;  %s376_s28 = sadd.s32 %s2924_s21, %s2624_s19 }
  0x22   : > { %v667_v55 = vunpack.c.l.b16 %v530_v50  ;;  %v668_v56 = vunpack.c.l.b16 %v540_v51  ;;  %v573_v57 = vrot.slane %v572_v45, 4  ;;  %v620_v58 = vor.u32 %v619_v48, %v616_v47  ;;  %v3131_v41 = vld [vmem:[%s3040_s29 + $0x3c] sm:$0xf]  ;;  %p377_p7 = scmp.lt.s32.totalorder %s376_s28, 3 }
  0x23   : > { %v583_v59 = vrot.slane %v582_v52, 4  ;;  %v625_v60 = vrot.slane %v623_v49, 5  ;;  %v629_v61 = vrot.slane %v627_v53, 4  ;;  %v633_v62 = vshll.u32 %v3085_v46, 16 }
  0x24   : > { %v681_v63 = vpack.c.b16 %v668_v56, %v667_v55  ;;  %v578_v0 = vsel %vm3078_vm4, %v573_v57, %v577_v38  ;;  %v621_v1 = vrot.slane %v620_v58, 4  ;;  %v470_v3 = vshrl.u32 %v3094_v54, 16  ;;  %v3137_v55 = vld [vmem:[%s3040_s29 + $0x40] sm:$0xf]  ;;  %s3993_s28 = smov (!%p377_p7, %s376_s28), 3 }
  0x25   : > { %v588_v4 = vsel %vm3078_vm4, %v583_v59, %v587_v44  ;;  %v671_v5 = vunpack.c.l.b16 %v578_v0  ;;  %v630_v6 = vor.u32 %v629_v61, %v625_v60  ;;  %v635_v7 = vrot.slane %v633_v62, 5  ;;  %v3148_v62 = vld [vmem:[%s3040_s29 + $0x54] sm:$0xf]  ;;  %s2831_s22 = sshll.u32 %s3993_s28, 7  ;;  %s2628_s9 = sshll.u32 %s3993_s28, 1 }
  0x26   : > { %2632 = vmatmul.msk.bf16.vlgmr.msra.gmra.mxu1 %vm687_vm3, %v681_v63  ;;  %v672_v9 = vunpack.c.l.b16 %v588_v4  ;;  %v626_v13 = vsel %vm3078_vm4, %v621_v1, %v625_v60  ;;  %v472_v14 = vrot.slane %v470_v3, 4  ;;  %v473_v15 = vshll.u32 %v3094_v54, 16  ;;  %v3144_v60 = vld [vmem:[%s3040_s29 + $0x44] sm:$0x1]  ;;  %s389_s12 = scalar_lea.vmem %s3971_s6, %s2628_s9 }
  0x27   : > { %v631_v18 = vrot.slane %v630_v6, 4  ;;  %v675_v21 = vunpack.c.l.b16 %v626_v13  ;;  %v479_v22 = vshll.u32 %v3100_v2, 16  ;;  %v483_v23 = vshrl.u32 %v3100_v2, 16 }
  0x28   : > { %v683_v24 = vpack.c.b16 %v672_v9, %v671_v5  ;;  %v475_v25 = vrot.slane %v473_v15, 5  ;;  %v489_v27 = vshll.u32 %v3106_v8, 16  ;;  %v897_v28 = vrot.slane %v3106_v8, 5 }
  0x29   : > { %v636_v30 = vsel %vm3078_vm4, %v631_v18, %v635_v7  ;;  %v481_v31 = vrot.slane %v479_v22, 5  ;;  %v485_v32 = vrot.slane %v483_v23, 4  ;;  %v542_v34 = vshrl.u32 %v3113_v16, 16 }
  0x2a   : > { %2634 = vmatmul.msk.bf16.vlgmr.msra.gmra.mxu2 %vm687_vm3, %v683_v24  ;;  %v676_v37 = vunpack.c.l.b16 %v636_v30  ;;  %v476_v38 = vor.u32 %v475_v25, %v472_v14  ;;  %v491_v39 = vrot.slane %v489_v27, 5  ;;  %v545_v40 = vshll.u32 %v3113_v16, 16  ;;  %v3159_v24 = vld [vmem:[%s3040_s29 + $0x58] sm:$0xf]  ;;  %v3162_v25 = vld [vmem:[%s3040_s29 + $0x5c] sm:$0x1] }
  0x2b   : > { %v486_v42 = vor.u32 %v485_v32, %v481_v31  ;;  %v544_v43 = vrot.slane %v542_v34, 4  ;;  %v551_v44 = vshll.u32 %v3120_v29, 16  ;;  %v555_v45 = vshrl.u32 %v3120_v29, 16  ;;  %v3167_v34 = vld [vmem:[%s3040_s29 + $0xc] sm:$0xf] }
  0x2c   : > { %v685_v47 = vpack.c.b16 %v676_v37, %v675_v21  ;;  %v477_v48 = vrot.slane %v476_v38, 4  ;;  %v547_v49 = vrot.slane %v545_v40, 5  ;;  %v561_v50 = vshll.u32 %v3125_v33, 16 }
  0x2d   : > { %v487_v51 = vrot.slane %v486_v42, 4  ;;  %v553_v52 = vrot.slane %v551_v44, 5  ;;  %v557_v53 = vrot.slane %v555_v45, 4  ;;  %v590_v56 = vshrl.u32 %v3131_v41, 16 }
  0x2e   : > { %2636 = vmatmul.msk.bf16.vlgmr.msra.gmra.mxu3 %vm687_vm3, %v685_v47  ;;  %v482_v57 = vsel %vm3078_vm4, %v477_v48, %v481_v31  ;;  %v548_v58 = vor.u32 %v547_v49, %v544_v43  ;;  %v563_v59 = vrot.slane %v561_v50, 5  ;;  %v593_v61 = vshll.u32 %v3131_v41, 16  ;;  %v3177_v50 = vld [vmem:[%s3040_s29 + $0x10] sm:$0xf] }
  0x2f   : > { %v492_v63 = vsel %vm3078_vm4, %v487_v51, %v491_v39  ;;  %v663_v0 = vunpack.c.l.b16 %v482_v57  ;;  %v558_v1 = vor.u32 %v557_v53, %v553_v52  ;;  %v592_v3 = vrot.slane %v590_v56, 4 }
  0x30   : > { %v664_v4 = vunpack.c.l.b16 %v492_v63  ;;  %v549_v5 = vrot.slane %v548_v58, 4  ;;  %v595_v6 = vrot.slane %v593_v61, 5  ;;  %v599_v7 = vshll.u32 %v3137_v55, 16  ;;  %v3181_v58 = vld [vmem:[%s3040_s29 + $0x14] sm:$0x1] }
  0x31   : > { %v559_v9 = vrot.slane %v558_v1, 4  ;;  %v603_v13 = vshrl.u32 %v3137_v55, 16  ;;  %v609_v14 = vshll.u32 %v3144_v60, 16  ;;  %v638_v15 = vshrl.u32 %v3148_v62, 16 }
  0x32   : > { %v679_v18 = vpack.c.b16 %v664_v4, %v663_v0  ;;  %v554_v21 = vsel %vm3078_vm4, %v549_v5, %v553_v52  ;;  %v596_v22 = vor.u32 %v595_v6, %v592_v3  ;;  %v601_v23 = vrot.slane %v599_v7, 5 }
  0x33   : > { %v564_v27 = vsel %vm3078_vm4, %v559_v9, %v563_v59  ;;  %v669_v30 = vunpack.c.l.b16 %v554_v21  ;;  %v605_v31 = vrot.slane %v603_v13, 4  ;;  %v611_v32 = vrot.slane %v609_v14, 5 }
  0x34   : > { %2630 = vmatmul.msk.bf16.vlgmr.msra.gmra.mxu0 %vm687_vm3, %v679_v18  ;;  %v670_v37 = vunpack.c.l.b16 %v564_v27  ;;  %v597_v38 = vrot.slane %v596_v22, 4  ;;  %v640_v39 = vrot.slane %v638_v15, 4  ;;  %v641_v40 = vshll.u32 %v3148_v62, 16 }
  0x35   : > { %v606_v42 = vor.u32 %v605_v31, %v601_v23  ;;  %v647_v43 = vshll.u32 %v3159_v24, 16  ;;  %v651_v44 = vshrl.u32 %v3159_v24, 16  ;;  %v657_v45 = vshll.u32 %v3162_v25, 16  ;;  %v3202_v31 = vld [vmem:[%s3193_s8] sm:$0xf] }
  0x36   : > { %v682_v47 = vpack.c.b16 %v670_v37, %v669_v30  ;;  %v602_v48 = vsel %vm3078_vm4, %v597_v38, %v601_v23  ;;  %v643_v49 = vrot.slane %v641_v40, 5  ;;  %v494_v51 = vshrl.u32 %v3167_v34, 16  ;;  %v2762_v30 = vld [vmem:[%s3968_s3 + $0x18] sm:$0xf] }
  0x37   : > { %v607_v52 = vrot.slane %v606_v42, 4  ;;  %v673_v53 = vunpack.c.l.b16 %v602_v48  ;;  %v649_v56 = vrot.slane %v647_v43, 5  ;;  %v653_v57 = vrot.slane %v651_v44, 4 }
  0x38   : > { %2633 = vmatmul.msk.bf16.gmra.mxu1 %vm687_vm3, %v682_v47  ;;  %v644_v59 = vor.u32 %v643_v49, %v640_v39  ;;  %v659_v61 = vrot.slane %v657_v45, 5  ;;  %v496_v63 = vrot.slane %v494_v51, 4  ;;  %v497_v0 = vshll.u32 %v3167_v34, 16  ;;  %v3211_v47 = vld [vmem:[%s3193_s8 + $0x4] sm:$0xf] }
  0x39   : > { %v612_v1 = vsel %vm3078_vm4, %v607_v52, %v611_v32  ;;  %v654_v3 = vor.u32 %v653_v57, %v649_v56  ;;  %v503_v4 = vshll.u32 %v3177_v50, 16  ;;  %v507_v5 = vshrl.u32 %v3177_v50, 16 }
  0x3a   : > { %v674_v6 = vunpack.c.l.b16 %v612_v1  ;;  %v645_v7 = vrot.slane %v644_v59, 4  ;;  %v499_v9 = vrot.slane %v497_v0, 5  ;;  %v513_v13 = vshll.u32 %v3181_v58, 16 }
  0x3b   : > { %v655_v14 = vrot.slane %v654_v3, 4  ;;  %v505_v15 = vrot.slane %v503_v4, 5  ;;  %v509_v18 = vrot.slane %v507_v5, 4  ;;  %v2678_v42 = vrot.slane %v3094_v54, 9  ;;  %v2753_v3 = vld [vmem:[%s3968_s3 + $0x14] sm:$0xf] }
  0x3c   : > { %v684_v21 = vpack.c.b16 %v674_v6, %v673_v53  ;;  %v650_v22 = vsel %vm3078_vm4, %v645_v7, %v649_v56  ;;  %v500_v23 = vor.u32 %v499_v9, %v496_v63  ;;  %v515_v27 = vrot.slane %v513_v13, 5  ;;  %v2820_v9 = vld [vmem:[%s3968_s3 + $0x20] sm:$0xf] }
  0x3d   : > { %v660_v32 = vsel %vm3078_vm4, %v655_v14, %v659_v61  ;;  %v677_v37 = vunpack.c.l.b16 %v650_v22  ;;  %v510_v38 = vor.u32 %v509_v18, %v505_v15  ;;  %v894_v43 = vrot.slane %v3100_v2, 5  ;;  %v3223_v2 = vld [vmem:[%s3193_s8 + $0x8] sm:$0x1]  ;;  %v2803_v61 = vld [vmem:[%s3968_s3 + $0x1c] sm:$0xf]  ;;  %v2832_v14 = vld [vmem:[%s3040_s29] sm:$0xff] }
  0x3e   : > { %2635 = vmatmul.msk.bf16.gmra.mxu2 %vm687_vm3, %v684_v21  ;;  %v678_v39 = vunpack.c.l.b16 %v660_v32  ;;  %v501_v40 = vrot.slane %v500_v23, 4  ;;  %v1759_v45 = vsel %vm712_vm0, %v2762_v30, 0  ;;  %v1201_v48 = vshrl.u32 %v3202_v31, 16 }
  0x3f   : > { %v511_v44 = vrot.slane %v510_v38, 4  ;;  %v1204_v49 = vshll.u32 %v3202_v31, 16  ;;  %v896_v54 = vrot.slane %v894_v43, 4  ;;  %1768 = vmatpush.bf16.msra.mxu2 %v1759_v45  ;;  %v1210_v1 = vshll.u32 %v3211_v47, 16  ;;  %v3252_v38 = vld [vmem:[%s3193_s8 + $0xc] sm:$0xf] }
  0x40   : > { %v686_v51 = vpack.c.b16 %v678_v39, %v677_v37  ;;  %v506_v52 = vsel %vm3078_vm4, %v501_v40, %v505_v15  ;;  %v1203_v59 = vrot.slane %v1201_v48, 4  ;;  %v895_v4 = vsel %vm3218_vm7, %v2678_v42, %v894_v43  ;;  %v3256_v39 = vld [vmem:[%s3193_s8 + $0x10] sm:$0xf] }
  0x41   : > { %v516_v56 = vsel %vm3078_vm4, %v511_v44, %v515_v27  ;;  %v665_v57 = vunpack.c.l.b16 %v506_v52  ;;  %v1206_v0 = vrot.slane %v1204_v49, 5  ;;  %v898_v5 = vsel %vm3218_vm7, %v896_v54, %v897_v28 }
  0x42   : > { %2637 = vmatmul.msk.bf16.gmra.mxu3 %vm687_vm3, %v686_v51  ;;  %v666_v63 = vunpack.c.l.b16 %v516_v56  ;;  %v1214_v6 = vshrl.u32 %v3211_v47, 16  ;;  %v1220_v7 = vshll.u32 %v3223_v2, 16  ;;  %v1212_v18 = vrot.slane %v1210_v1, 5 }
  0x43   : > { %v1207_v15 = vor.u32 %v1206_v0, %v1203_v59  ;;  %v2069_v21 = vsel %vm712_vm0, %v2803_v61, 0  ;;  %v1625_v28 = vsel %vm712_vm0, %v2753_v3, 0  ;;  %v950_v22 = vunpack.c.l.b16 %v895_v4  ;;  %v2840_v0 = vld [vmem:[%s3193_s8] sm:$0xff] }
  0x44   : > { %v680_v13 = vpack.c.b16 %v666_v63, %v665_v57  ;;  %v1216_v8 = vrot.slane %v1214_v6, 4  ;;  %2078 = vmatpush.bf16.msra.mxu3 %v2069_v21  ;;  %v951_v23 = vunpack.c.l.b16 %v898_v5  ;;  %1634 = vmatpush.bf16.msra.mxu1 %v1625_v28  ;;  %v2251_v30 = vsel %vm712_vm0, %v2820_v9, 0 }
  0x45   : > { %v1208_v27 = vrot.slane %v1207_v15, 4  ;;  %v1222_v37 = vrot.slane %v1220_v7, 5  ;;  %2260 = vmatpush.bf16.msra.mxu0 %v2251_v30  ;;  %v901_v42 = vrot.slane %v3177_v50, 5  ;;  %v1225_v45 = vshrl.u32 %v3252_v38, 16  ;;  %v3290_v30 = vld [vmem:[%s3193_s8 + $0x18] sm:$0xf] }
  0x46   : > { %2631 = vmatmul.msk.bf16.gmra.mxu0 %vm687_vm3, %v680_v13  ;;  %v1217_v32 = vor.u32 %v1216_v8, %v1212_v18  ;;  %v966_v43 = vpack.c.b16 %v951_v23, %v950_v22  ;;  %v1228_v48 = vshll.u32 %v3252_v38, 16  ;;  %v1234_v51 = vshll.u32 %v3256_v39, 16  ;;  %v2833_v8 = vld [vmem:[%s3040_s29 + $0xc] sm:$0xff] }
  0x47   : > { %v1213_v44 = vsel %vm3078_vm4, %v1208_v27, %v1212_v18  ;;  %v1238_v52 = vshrl.u32 %v3256_v39, 16  ;;  %v2680_v54 = vrot.slane %v3043_v10, 9  ;;  %v2679_v50 = vrot.slane %v3167_v34, 9 }
  0x48   : > { %2670 = vmatmul.msk.bf16.vlgmr.msrb.gmra.mxu1 %vm687_vm3, %v2832_v14  ;;  %v1218_v40 = vrot.slane %v1217_v32, 4  ;;  %v908_v56 = vrot.slane %v3046_v11, 5  ;;  %v1394_v57 = vunpack.c.l.b16 %v1213_v44  ;;  %v903_v59 = vrot.slane %v901_v42, 4  ;;  %v3277_v11 = vld [vmem:[%s3193_s8 + $0x14] sm:$0x1] }
  0x49   : > { %v904_v61 = vrot.slane %v3181_v58, 5  ;;  %v911_v63 = vrot.slane %v3049_v12, 5  ;;  %v1227_v3 = vrot.slane %v1225_v45, 4  ;;  %v1230_v4 = vrot.slane %v1228_v48, 5 }
  0x4a   : > { %v1223_v49 = vsel %vm3078_vm4, %v1218_v40, %v1222_v37  ;;  %v909_v10 = vsel %vm3218_vm7, %v2680_v54, %v908_v56  ;;  %v1236_v5 = vrot.slane %v1234_v51, 5  ;;  %v1240_v34 = vrot.slane %v1238_v52, 4  ;;  %v3294_v40 = vld [vmem:[%s3193_s8 + $0x1c] sm:$0xf] }
  0x4b   : > { %v1395_v1 = vunpack.c.l.b16 %v1223_v49  ;;  %v910_v6 = vrot.slane %v908_v56, 4  ;;  %v954_v7 = vunpack.c.l.b16 %v909_v10  ;;  %v902_v12 = vsel %vm3218_vm7, %v2679_v50, %v901_v42 }
  0x4c   : > { %v905_v13 = vsel %vm3218_vm7, %v903_v59, %v904_v61  ;;  %v1231_v14 = vor.u32 %v1230_v4, %v1227_v3  ;;  %v1241_v18 = vor.u32 %v1240_v34, %v1236_v5  ;;  %v1244_v21 = vshll.u32 %v3277_v11, 16  ;;  %v2841_v59 = vld [vmem:[%s3193_s8 + $0xc] sm:$0xff] }
  0x4d   : > { %v912_v58 = vsel %vm3218_vm7, %v910_v6, %v911_v63  ;;  %v1410_v9 = vpack.c.b16 %v1395_v1, %v1394_v57  ;;  %v952_v22 = vunpack.c.l.b16 %v902_v12  ;;  %v953_v23 = vunpack.c.l.b16 %v905_v13  ;;  %v3324_v13 = vld [vmem:[%s3193_s8 + $0x28] sm:$0xf] }
  0x4e   : > { %2687 = vmatmul.msk.bf16.vlgmr.msrb.gmra.mxu2 %vm687_vm3, %v966_v43  ;;  %v955_v15 = vunpack.c.l.b16 %v912_v58  ;;  %v1232_v27 = vrot.slane %v1231_v14, 4  ;;  %v1242_v32 = vrot.slane %v1241_v18, 4  ;;  %v1246_v37 = vrot.slane %v1244_v21, 5  ;;  %v2834_v58 = vld [vmem:[%s3040_s29 + $0x18] sm:$0xff] }
  0x4f   : > { %v2681_v42 = vrot.slane %v3113_v16, 9  ;;  %v915_v43 = vrot.slane %v3120_v29, 5  ;;  %v967_v44 = vpack.c.b16 %v953_v23, %v952_v22  ;;  %v1249_v45 = vshrl.u32 %v3290_v30, 16 }
  0x50   : > { %v968_v28 = vpack.c.b16 %v955_v15, %v954_v7  ;;  %v918_v48 = vrot.slane %v3125_v33, 5  ;;  %v1237_v49 = vsel %vm3078_vm4, %v1232_v27, %v1236_v5  ;;  %v1252_v51 = vshll.u32 %v3290_v30, 16  ;;  %v3314_v5 = vld [vmem:[%s3193_s8 + $0x20] sm:$0x1] }
  0x51   : > { %v916_v52 = vsel %vm3218_vm7, %v2681_v42, %v915_v43  ;;  %v917_v54 = vrot.slane %v915_v43, 4  ;;  %v1247_v16 = vsel %vm3078_vm4, %v1242_v32, %v1246_v37  ;;  %v1258_v29 = vshll.u32 %v3294_v40, 16 }
  0x52   : > { %2728 = vmatmul.msk.bf16.vlgmr.msrb.gmra.mxu3 %vm687_vm3, %v2840_v0  ;;  %v1262_v50 = vshrl.u32 %v3294_v40, 16  ;;  %v956_v56 = vunpack.c.l.b16 %v916_v52  ;;  %v1396_v61 = vunpack.c.l.b16 %v1237_v49  ;;  %v1397_v63 = vunpack.c.l.b16 %v1247_v16 }
  0x53   : > { %v919_v33 = vsel %vm3218_vm7, %v917_v54, %v918_v48  ;;  %v1251_v0 = vrot.slane %v1249_v45, 4  ;;  %v1254_v1 = vrot.slane %v1252_v51, 5  ;;  %v1260_v3 = vrot.slane %v1258_v29, 5  ;;  %v2842_v45 = vld [vmem:[%s3193_s8 + $0x18] sm:$0xff]  ;;  %v3338_v51 = vld [vmem:[%s3193_s8 + $0x2c] sm:$0x1] }
  0x54   : > { %v957_v57 = vunpack.c.l.b16 %v919_v33  ;;  %v1264_v4 = vrot.slane %v1262_v50, 4  ;;  %v1411_v34 = vpack.c.b16 %v1397_v63, %v1396_v61  ;;  %v1268_v12 = vshll.u32 %v3314_v5, 16  ;;  %v2835_v50 = vld [vmem:[%s3040_s29 + $0x24] sm:$0xff] }
  0x55   : > { %v1255_v6 = vor.u32 %v1254_v1, %v1251_v0  ;;  %v1282_v22 = vshll.u32 %v3324_v13, 16  ;;  %v1286_v23 = vshrl.u32 %v3324_v13, 16  ;;  %v1292_v16 = vshll.u32 %v3338_v51, 16 }
  0x56   : > { %2737 = vmatmul.msk.bf16.vlgmr.msrb.gmra.mxu0 %vm687_vm3, %v1410_v9  ;;  %v969_v10 = vpack.c.b16 %v957_v57, %v956_v56  ;;  %v1265_v7 = vor.u32 %v1264_v4, %v1260_v3  ;;  %v3321_v9 = vld [vmem:[%s3193_s8 + $0x24] sm:$0xf]  ;;  %v1270_v18 = vrot.slane %v1268_v12, 5  ;;  %v2682_v12 = vrot.slane %v3056_v17, 9 }
  0x57   : > { %v1256_v14 = vrot.slane %v1255_v6, 4  ;;  %v1273_v21 = vshrl.u32 %v3321_v9, 16  ;;  %v1284_v43 = vrot.slane %v1282_v22, 5  ;;  %v1294_v57 = vrot.slane %v1292_v16, 5 }
  0x58   : > { %2671 = vmatmul.msk.bf16.gmra.mxu1 %vm687_vm3, %v2833_v8  ;;  %v1266_v15 = vrot.slane %v1265_v7, 4  ;;  %v1276_v8 = vshll.u32 %v3321_v9, 16  ;;  %v925_v22 = vrot.slane %v3063_v20, 5 }
  0x59   : > { %v1261_v27 = vsel %vm3078_vm4, %v1256_v14, %v1260_v3  ;;  %v1275_v37 = vrot.slane %v1273_v21, 4 }
  0x5a   : > { %v1271_v32 = vsel %vm3078_vm4, %v1266_v15, %v1270_v18  ;;  %v1278_v42 = vrot.slane %v1276_v8, 5  ;;  %v1398_v48 = vunpack.c.l.b16 %v1261_v27 }
  0x5b   : > { %v1399_v49 = vunpack.c.l.b16 %v1271_v32 }
  0x5c   : > { %v1279_v52 = vor.u32 %v1278_v42, %v1275_v37  ;;  %v2836_v42 = vld [vmem:[%s3040_s29 + $0x30] sm:$0xff] }
  0x5d   : > { %v1412_v29 = vpack.c.b16 %v1399_v49, %v1398_v48  ;;  %v3377_v49 = vld [vmem:[%s3193_s8 + $0x3c] sm:$0xf] }
  0x5e   : > { %2688 = vmatmul.msk.bf16.gmra.mxu2 %vm687_vm3, %v967_v44  ;;  %v1288_v44 = vrot.slane %v1286_v23, 4  ;;  %v1280_v56 = vrot.slane %v1279_v52, 4  ;;  %v3365_v23 = vld [vmem:[%s3193_s8 + $0x38] sm:$0x1]  ;;  %v3380_v52 = vld [vmem:[%s3193_s8 + $0x40] sm:$0xf] }
  0x5f   : > { %v1316_v32 = vshll.u32 %v3365_v23, 16 }
  0x60   : > { %v1289_v54 = vor.u32 %v1288_v44, %v1284_v43  ;;  %v1285_v61 = vsel %vm3078_vm4, %v1280_v56, %v1284_v43  ;;  %v1321_v56 = vshrl.u32 %v3377_v49, 16 }
  0x61   : > { %v1400_v6 = vunpack.c.l.b16 %v1285_v61  ;;  %v1318_v48 = vrot.slane %v1316_v32, 5  ;;  %v1334_v61 = vshrl.u32 %v3380_v52, 16 }
  0x62   : > { %2729 = vmatmul.msk.bf16.gmra.mxu3 %vm687_vm3, %v2841_v59  ;;  %v1290_v33 = vrot.slane %v1289_v54, 4  ;;  %v3348_v59 = vld [vmem:[%s3193_s8 + $0x34] sm:$0xf] }
  0x63   : > { %v1306_v3 = vshll.u32 %v3348_v59, 16  ;;  %v1310_v4 = vshrl.u32 %v3348_v59, 16 }
  0x64   : > { %v1295_v63 = vsel %vm3078_vm4, %v1290_v33, %v1294_v57  ;;  %v1324_v33 = vshll.u32 %v3377_v49, 16  ;;  %v1330_v57 = vshll.u32 %v3380_v52, 16 }
  0x65   : > { %v1401_v7 = vunpack.c.l.b16 %v1295_v63  ;;  %v1308_v18 = vrot.slane %v1306_v3, 5  ;;  %v1312_v21 = vrot.slane %v1310_v4, 4  ;;  %v2683_v3 = vrot.slane %v3131_v41, 9 }
  0x66   : > { %2738 = vmatmul.msk.bf16.gmra.mxu0 %vm687_vm3, %v1411_v34  ;;  %v922_v34 = vrot.slane %v3060_v19, 5 }
  0x67   : > { %v1413_v27 = vpack.c.b16 %v1401_v7, %v1400_v6  ;;  %v1326_v6 = vrot.slane %v1324_v33, 5  ;;  %v1332_v7 = vrot.slane %v1330_v57, 5 }
  0x68   : > { %2672 = vmatmul.msk.bf16.gmra.mxu1 %vm687_vm3, %v2834_v58  ;;  %v2843_v58 = vld [vmem:[%s3193_s8 + $0x24] sm:$0xff]  ;;  %v924_v8 = vrot.slane %v922_v34, 4  ;;  %v923_v17 = vsel %vm3218_vm7, %v2682_v12, %v922_v34  ;;  %v1323_v34 = vrot.slane %v1321_v56, 4  ;;  %v1336_v12 = vrot.slane %v1334_v61, 4  ;;  %v2845_v56 = vld [vmem:[%s3193_s8 + $0x3c] sm:$0xff] }
  0x69   : > { %v958_v43 = vunpack.c.l.b16 %v923_v17  ;;  %v3407_v17 = vld [vmem:[%s3193_s8 + $0x48] sm:$0xf] }
  0x6a   : > { %v926_v37 = vsel %vm3218_vm7, %v924_v8, %v925_v22  ;;  %v2837_v8 = vld [vmem:[%s3040_s29 + $0x3c] sm:$0xff] }
  0x6b   : > { %v959_v20 = vunpack.c.l.b16 %v926_v37  ;;  %v3410_v37 = vld [vmem:[%s3193_s8 + $0x4c] sm:$0xf] }
  0x6d   : > { %v970_v54 = vpack.c.b16 %v959_v20, %v958_v43  ;;  %v1348_v43 = vshll.u32 %v3407_v17, 16 }
  0x6e   : > { %2689 = vmatmul.msk.bf16.gmra.mxu2 %vm687_vm3, %v968_v28  ;;  %v3345_v28 = vld [vmem:[%s3193_s8 + $0x30] sm:$0xf] }
  0x6f   : > { %v1297_v0 = vshrl.u32 %v3345_v28, 16  ;;  %v1300_v1 = vshll.u32 %v3345_v28, 16 }
  0x71   : > { %v1299_v14 = vrot.slane %v1297_v0, 4  ;;  %v1302_v15 = vrot.slane %v1300_v1, 5  ;;  %v2844_v0 = vld [vmem:[%s3193_s8 + $0x30] sm:$0xff] }
  0x72   : > { %2730 = vmatmul.msk.bf16.gmra.mxu3 %vm687_vm3, %v2842_v45 }
  0x73   : > { %v1303_v19 = vor.u32 %v1302_v15, %v1299_v14 }
  0x75   : > { %v1304_v44 = vrot.slane %v1303_v19, 4 }
  0x76   : > { %2739 = vmatmul.msk.bf16.gmra.mxu0 %vm687_vm3, %v1412_v29 }
  0x77   : > { %v1309_v16 = vsel %vm3078_vm4, %v1304_v44, %v1308_v18  ;;  %v1354_v44 = vshll.u32 %v3410_v37, 16 }
  0x78   : > { %2673 = vmatmul.msk.bf16.gmra.mxu1 %vm687_vm3, %v2835_v50  ;;  %v929_v50 = vrot.slane %v3137_v55, 5  ;;  %v1402_v63 = vunpack.c.l.b16 %v1309_v16  ;;  %v932_v55 = vrot.slane %v3144_v60, 5  ;;  %v1358_v16 = vshrl.u32 %v3410_v37, 16 }
  0x79   : > { %v1356_v61 = vrot.slane %v1354_v44, 5 }
  0x7a   : > { %v931_v4 = vrot.slane %v929_v50, 4  ;;  %v930_v15 = vsel %vm3218_vm7, %v2683_v3, %v929_v50  ;;  %v1350_v50 = vrot.slane %v1348_v43, 5  ;;  %v1360_v3 = vrot.slane %v1358_v16, 4 }
  0x7b   : > { %v960_v22 = vunpack.c.l.b16 %v930_v15 }
  0x7c   : > { %v933_v41 = vsel %vm3218_vm7, %v931_v4, %v932_v55  ;;  %v3427_v4 = vld [vmem:[%s3193_s8 + $0x50] sm:$0x1] }
  0x7e   : > { %2690 = vmatmul.msk.bf16.gmra.mxu2 %vm687_vm3, %v969_v10  ;;  %v1313_v10 = vor.u32 %v1312_v21, %v1308_v18  ;;  %v1327_v18 = vor.u32 %v1326_v6, %v1323_v34  ;;  %v1337_v21 = vor.u32 %v1336_v12, %v1332_v7  ;;  %v2838_v12 = vld [vmem:[%s3040_s29 + $0x48] sm:$0xff] }
  0x80   : > { %v1314_v45 = vrot.slane %v1313_v10, 4  ;;  %v1328_v19 = vrot.slane %v1327_v18, 4  ;;  %v1338_v10 = vrot.slane %v1337_v21, 4 }
  0x82   : > { %2731 = vmatmul.msk.bf16.gmra.mxu3 %vm687_vm3, %v2843_v58  ;;  %v1319_v29 = vsel %vm3078_vm4, %v1314_v45, %v1318_v48  ;;  %v3396_v58 = vld [vmem:[%s3193_s8 + $0x44] sm:$0x1]  ;;  %v1333_v45 = vsel %vm3078_vm4, %v1328_v19, %v1332_v7  ;;  %v1361_v7 = vor.u32 %v1360_v3, %v1356_v61 }
  0x83   : > { %v1403_v1 = vunpack.c.l.b16 %v1319_v29  ;;  %v1340_v60 = vshll.u32 %v3396_v58, 16  ;;  %v1404_v33 = vunpack.c.l.b16 %v1333_v45 }
  0x84   : > { %v1362_v18 = vrot.slane %v1361_v7, 4  ;;  %v3486_v7 = vld [vmem:[%s3467_s20 + $0x4] sm:$0xf] }
  0x85   : > { %v1414_v14 = vpack.c.b16 %v1403_v1, %v1402_v63  ;;  %v1342_v32 = vrot.slane %v1340_v60, 5  ;;  %v2684_v63 = vrot.slane %v3067_v26, 9  ;;  %v939_v1 = vrot.slane %v3085_v46, 5  ;;  %v3440_v60 = vld [vmem:[%s3193_s8 + $0x54] sm:$0xf] }
  0x86   : > { %2740 = vmatmul.msk.bf16.gmra.mxu0 %vm687_vm3, %v1413_v27  ;;  %v961_v27 = vunpack.c.l.b16 %v933_v41  ;;  %v1364_v46 = vshll.u32 %v3427_v4, 16  ;;  %v1369_v19 = vshrl.u32 %v3440_v60, 16 }
  0x87   : > { %v1343_v48 = vsel %vm3078_vm4, %v1338_v10, %v1342_v32  ;;  %v1372_v10 = vshll.u32 %v3440_v60, 16 }
  0x88   : > { %2674 = vmatmul.msk.bf16.gmra.mxu1 %vm687_vm3, %v2836_v42  ;;  %v1345_v42 = vshrl.u32 %v3407_v17, 16  ;;  %v971_v20 = vpack.c.b16 %v961_v27, %v960_v22  ;;  %v1405_v57 = vunpack.c.l.b16 %v1343_v48  ;;  %v1366_v21 = vrot.slane %v1364_v46, 5  ;;  %v2839_v46 = vld [vmem:[%s3040_s29 + $0x54] sm:$0xff] }
  0x8a   : > { %v1347_v29 = vrot.slane %v1345_v42, 4  ;;  %v1415_v55 = vpack.c.b16 %v1405_v57, %v1404_v33  ;;  %v1367_v42 = vsel %vm3078_vm4, %v1362_v18, %v1366_v21  ;;  %v2685_v33 = vrot.slane %v3148_v62, 9 }
  0x8b   : > { %v1407_v16 = vunpack.c.l.b16 %v1367_v42 }
  0x8e   : > { %2691 = vmatmul.msk.bf16.gmra.mxu2 %vm687_vm3, %v970_v54  ;;  %v936_v54 = vrot.slane %v3074_v35, 5  ;;  %v1351_v35 = vor.u32 %v1350_v50, %v1347_v29  ;;  %v1371_v29 = vrot.slane %v1369_v19, 4  ;;  %v1374_v50 = vrot.slane %v1372_v10, 5 }
  0x90   : > { %v937_v6 = vsel %vm3218_vm7, %v2684_v63, %v936_v54  ;;  %v1375_v3 = vor.u32 %v1374_v50, %v1371_v29 }
  0x91   : > { %v962_v15 = vunpack.c.l.b16 %v937_v6 }
  0x92   : > { %2732 = vmatmul.msk.bf16.gmra.mxu3 %vm687_vm3, %v2844_v0  ;;  %v938_v0 = vrot.slane %v936_v54, 4  ;;  %v2846_v54 = vld [vmem:[%s3193_s8 + $0x48] sm:$0xff]  ;;  %v1376_v10 = vrot.slane %v1375_v3, 4 }
  0x94   : > { %v940_v26 = vsel %vm3218_vm7, %v938_v0, %v939_v1 }
  0x95   : > { %v963_v41 = vunpack.c.l.b16 %v940_v26 }
  0x96   : > { %2741 = vmatmul.msk.bf16.gmra.mxu0 %vm687_vm3, %v1414_v14  ;;  %v1352_v14 = vrot.slane %v1351_v35, 4  ;;  %v3478_v35 = vld [vmem:[%s3467_s20] sm:$0xf] }
  0x97   : > { %v972_v27 = vpack.c.b16 %v963_v41, %v962_v15  ;;  %v1827_v15 = vshrl.u32 %v3478_v35, 16  ;;  %v1830_v41 = vshll.u32 %v3478_v35, 16 }
  0x98   : > { %2675 = vmatmul.msk.bf16.gmra.mxu1 %vm687_vm3, %v2837_v8  ;;  %v3443_v8 = vld [vmem:[%s3193_s8 + $0x58] sm:$0xf]  ;;  %v1357_v22 = vsel %vm3078_vm4, %v1352_v14, %v1356_v61  ;;  %v946_v61 = vrot.slane %v3162_v25, 5  ;;  %v1520_v14 = vrot.slane %v3211_v47, 5  ;;  %v1523_v47 = vrot.slane %v3223_v2, 5 }
  0x99   : > { %v1378_v32 = vshll.u32 %v3443_v8, 16  ;;  %v1382_v44 = vshrl.u32 %v3443_v8, 16  ;;  %v1406_v45 = vunpack.c.l.b16 %v1357_v22  ;;  %v1836_v22 = vshll.u32 %v3486_v7, 16 }
  0x9b   : > { %v1384_v63 = vrot.slane %v1382_v44, 4  ;;  %v1416_v62 = vpack.c.b16 %v1407_v16, %v1406_v45  ;;  %v2745_v44 = vrot.slane %v3202_v31, 9  ;;  %v1522_v45 = vrot.slane %v1520_v14, 4 }
  0x9c   : > { %v1832_v16 = vrot.slane %v1830_v41, 5  ;;  %v1838_v50 = vrot.slane %v1836_v22, 5 }
  0x9d   : > { %v1521_v31 = vsel %vm3218_vm7, %v2745_v44, %v1520_v14  ;;  %v1524_v3 = vsel %vm3218_vm7, %v1522_v45, %v1523_v47  ;;  %v3526_v47 = vld [vmem:[%s3467_s20 + $0xc] sm:$0xf]  ;;  %v3529_v44 = vld [vmem:[%s3467_s20 + $0x10] sm:$0xf] }
  0x9e   : > { %2692 = vmatmul.msk.bf16.gmra.mxu2 %vm687_vm3, %v971_v20  ;;  %v943_v20 = vrot.slane %v3159_v24, 5  ;;  %v3470_v24 = vld [vmem:[%s3193_s8 + $0x5c] sm:$0x1]  ;;  %v1577_v41 = vunpack.c.l.b16 %v1524_v3  ;;  %v1851_v3 = vshrl.u32 %v3526_v47, 16 }
  0x9f   : > { %v1388_v26 = vshll.u32 %v3470_v24, 16 }
  0xa0   : > { %v945_v57 = vrot.slane %v943_v20, 4  ;;  %v944_v25 = vsel %vm3218_vm7, %v2685_v33, %v943_v20 }
  0xa1   : > { %v964_v18 = vunpack.c.l.b16 %v944_v25  ;;  %v1390_v42 = vrot.slane %v1388_v26, 5 }
  0xa2   : > { %2733 = vmatmul.msk.bf16.gmra.mxu3 %vm687_vm3, %v2845_v56  ;;  %v1380_v56 = vrot.slane %v1378_v32, 5 }
  0xa3   : > { %v3430_v34 = vpop.f32.mrf.mxu1 }
  0xa4   : > { %v1385_v6 = vor.u32 %v1384_v63, %v1380_v56  ;;  %v443_v63 = vld [vmem:[%s3467_s20 + $0x8] sm:$0x1] }
  0xa6   : > { %2742 = vmatmul.msk.bf16.gmra.mxu0 %vm687_vm3, %v1415_v55  ;;  %v947_v55 = vsel %vm3218_vm7, %v945_v57, %v946_v61  ;;  %v1386_v32 = vrot.slane %v1385_v6, 4  ;;  %v1381_v61 = vsel %vm3078_vm4, %v1376_v10, %v1380_v56  ;;  %v2146_v10 = vrot.slane %v3486_v7, 5 }
  0xa7   : > { %v965_v21 = vunpack.c.l.b16 %v947_v55  ;;  %v2847_v55 = vld [vmem:[%s3193_s8 + $0x54] sm:$0xff]  ;;  %v1408_v6 = vunpack.c.l.b16 %v1381_v61  ;;  %s3850_s8 = scalar_lea.vmem %s3970_s5, %s2831_s22 }
  0xa8   : > { %2676 = vmatmul.msk.bf16.gmra.mxu1 %vm687_vm3, %v2838_v12  ;;  %v1391_v2 = vsel %vm3078_vm4, %v1386_v32, %v1390_v42 }
  0xa9   : > { %v973_v29 = vpack.c.b16 %v965_v21, %v964_v18  ;;  %v1409_v56 = vunpack.c.l.b16 %v1391_v2  ;;  %v2148_v2 = vrot.slane %v2146_v10, 4 }
  0xab   : > { %v3453_v43 = vpop.f32.mrf.mxu1  ;;  %v1417_v14 = vpack.c.b16 %v1409_v56, %v1408_v6  ;;  %v1530_v6 = vrot.slane %v3277_v11, 5  ;;  %v2848_v56 = vld [vmem:[%s3467_s20] sm:$0xff] }
  0xad   : > { %v3457_v48 = vpop.f32.mrf.mxu2 }
  0xae   : > { %2693 = vmatmul.msk.bf16.gmra.mxu2 %vm687_vm3, %v972_v27  ;;  %v1840_v27 = vshrl.u32 %v3486_v7, 16 }
  0xb0   : > { %v1842_v33 = vrot.slane %v1840_v27, 4 }
  0xb1   : > { %v3472_v0 = vpop.f32.mrf.mxu0  ;;  %v3474_v1 = vpop.f32.mrf.mxu3 }
  0xb2   : > { %2734 = vmatmul.msk.bf16.gmra.mxu3 %vm687_vm3, %v2846_v54  ;;  %v1829_v54 = vrot.slane %v1827_v15, 4  ;;  %v1843_v26 = vor.u32 %v1842_v33, %v1838_v50  ;;  %v1576_v15 = vunpack.c.l.b16 %v1521_v31  ;;  %v1527_v33 = vrot.slane %v3256_v39, 5 }
  0xb3   : > { %v2149_v31 = vrot.slane %v443_v63, 5 }
  0xb4   : > { %v1833_v25 = vor.u32 %v1832_v16, %v1829_v54  ;;  %v1844_v22 = vrot.slane %v1843_v26, 4  ;;  %v1592_v42 = vpack.c.b16 %v1577_v41, %v1576_v15 }
  0xb5   : > { %v3489_v12 = vpop.f32.mrf.mxu1  ;;  %v3497_v19 = vpop.f32.mrf.mxu2  ;;  %v2150_v15 = vsel %vm3218_vm7, %v2148_v2, %v2149_v31 }
  0xb6   : > { %2743 = vmatmul.msk.bf16.gmra.mxu0 %vm687_vm3, %v1416_v62  ;;  %v1834_v21 = vrot.slane %v1833_v25, 4  ;;  %v1854_v25 = vshll.u32 %v3526_v47, 16 }
  0xb8   : > { %2677 = vmatmul.msk.bf16.gmra.mxu1 %vm687_vm3, %v2839_v46  ;;  %v1846_v46 = vshll.u32 %v443_v63, 16  ;;  %v1839_v16 = vsel %vm3078_vm4, %v1834_v21, %v1838_v50  ;;  %v1860_v50 = vshll.u32 %v3529_v44, 16  ;;  %v1853_v21 = vrot.slane %v1851_v3, 4 }
  0xb9   : > { %v3501_v20 = vpop.f32.mrf.mxu0  ;;  %v3504_v57 = vpop.f32.mrf.mxu3  ;;  %v2020_v63 = vunpack.c.l.b16 %v1839_v16 }
  0xba   : > { %v1848_v27 = vrot.slane %v1846_v46, 5 }
  0xbc   : > { %v1849_v61 = vsel %vm3078_vm4, %v1844_v22, %v1848_v27  ;;  %v1862_v22 = vrot.slane %v1860_v50, 5 }
  0xbd   : > { %v3511_v62 = vpop.f32.mrf.mxu1  ;;  %v2021_v26 = vunpack.c.l.b16 %v1849_v61  ;;  %v2203_v61 = vunpack.c.l.b16 %v2150_v15  ;;  %v2813_v15 = vrot.slane %v3526_v47, 9 }
  0xbe   : > { %2694 = vmatmul.msk.bf16.gmra.mxu2 %vm687_vm3, %v973_v29  ;;  %v2812_v29 = vrot.slane %v3478_v35, 9  ;;  %v1864_v35 = vshrl.u32 %v3529_v44, 16 }
  0xbf   : > { %v2036_v16 = vpack.c.b16 %v2021_v26, %v2020_v63 }
  0xc0   : > { %v2147_v46 = vsel %vm3218_vm7, %v2812_v29, %v2146_v10  ;;  %v1866_v27 = vrot.slane %v1864_v35, 4 }
  0xc1   : > { %v3519_v18 = vpop.f32.mrf.mxu2  ;;  %v2202_v29 = vunpack.c.l.b16 %v2147_v46 }
  0xc2   : > { %2735 = vmatmul.msk.bf16.gmra.mxu3 %vm687_vm3, %v2847_v55  ;;  %v1529_v55 = vrot.slane %v1527_v33, 4  ;;  %v1867_v3 = vor.u32 %v1866_v27, %v1862_v22 }
  0xc3   : > { %v3523_v32 = vpop.f32.mrf.mxu0 }
  0xc4   : > { %v1531_v10 = vsel %vm3218_vm7, %v1529_v55, %v1530_v6  ;;  %v3571_v55 = vld [vmem:[%s3467_s20 + $0x1c] sm:$0xf]  ;;  %v1868_v63 = vrot.slane %v1867_v3, 4 }
  0xc5   : > { %v3531_v45 = vpop.f32.mrf.mxu3  ;;  %v841_v54 = vpop.f32.mrf.mxu1  ;;  %v1579_v35 = vunpack.c.l.b16 %v1531_v10  ;;  %v1537_v10 = vrot.slane %v3314_v5, 5 }
  0xc6   : > { %3976 = vst [vmem:[#allocation2_spill] sm:$0xff] %v3531_v45  ;;  %2744 = vmatmul.msk.bf16.gmra.mxu0 %vm687_vm3, %v1417_v14  ;;  %v842_v7 = vadd.f32 %v841_v54, %v3472_v0  ;;  %v2746_v0 = vrot.slane %v3252_v38, 9  ;;  %v1856_v14 = vrot.slane %v1854_v25, 5  ;;  %v3567_v45 = vld [vmem:[%s3467_s20 + $0x18] sm:$0xf] }
  0xc8   : > { %2754 = vmatmul.msk.bf16.vlgmr.msra.gmra.mxu1 %vm687_vm3, %v1592_v42  ;;  %v446_v42 = vld [vmem:[%s3467_s20 + $0x14] sm:$0x1]  ;;  %v1528_v54 = vsel %vm3218_vm7, %v2746_v0, %v1527_v33  ;;  %v1857_v31 = vor.u32 %v1856_v14, %v1853_v21  ;;  %v2218_v33 = vpack.c.b16 %v2203_v61, %v2202_v29  ;;  %v1875_v21 = vshrl.u32 %v3567_v45, 16 }
  0xc9   : > { %v3546_v39 = vpop.f32.mrf.mxu2  ;;  %v1870_v25 = vshll.u32 %v446_v42, 16  ;;  %v1578_v50 = vunpack.c.l.b16 %v1528_v54  ;;  %v1878_v14 = vshll.u32 %v3567_v45, 16  ;;  %v1534_v54 = vrot.slane %v3294_v40, 5 }
  0xca   : > { %v2156_v40 = vrot.slane %v446_v42, 5  ;;  %v449_v42 = vld [vmem:[%s3467_s20 + $0x20] sm:$0x1] }
  0xcb   : > { %v3555_v41 = vpop.f32.mrf.mxu0  ;;  %v1872_v26 = vrot.slane %v1870_v25, 5  ;;  %v1593_v46 = vpack.c.b16 %v1579_v35, %v1578_v50  ;;  %v1880_v3 = vrot.slane %v1878_v14, 5  ;;  %v2747_v50 = vrot.slane %v3290_v30, 9 }
  0xcc   : > { %v1536_v35 = vrot.slane %v1534_v54, 4 }
  0xcd   : > { %v3558_v38 = vpop.f32.mrf.mxu3  ;;  %v843_v11 = vpop.f32.mrf.mxu1  ;;  %v1873_v29 = vsel %vm3078_vm4, %v1868_v63, %v1872_v26  ;;  %v1535_v14 = vsel %vm3218_vm7, %v2747_v50, %v1534_v54 }
  0xce   : > { %3977 = vst [vmem:[#allocation3_spill] sm:$0xff] %v3558_v38  ;;  %2795 = vmatmul.msk.bf16.vlgmr.msra.gmra.mxu2 %vm687_vm3, %v2848_v56  ;;  %v844_v2 = vadd.f32 %v843_v11, %v3501_v20  ;;  %v1858_v56 = vrot.slane %v1857_v31, 4  ;;  %v2153_v20 = vrot.slane %v3529_v44, 5  ;;  %v1877_v31 = vrot.slane %v1875_v21, 4 }
  0xcf   : > { %v2023_v26 = vunpack.c.l.b16 %v1873_v29  ;;  %v1538_v30 = vsel %vm3218_vm7, %v1536_v35, %v1537_v10  ;;  %v1580_v29 = vunpack.c.l.b16 %v1535_v14  ;;  %v2160_v35 = vrot.slane %v3571_v55, 5 }
  0xd0   : > { %v1863_v47 = vsel %vm3078_vm4, %v1858_v56, %v1862_v22  ;;  %v2155_v61 = vrot.slane %v2153_v20, 4  ;;  %v2154_v5 = vsel %vm3218_vm7, %v2813_v15, %v2153_v20  ;;  %v2849_v56 = vld [vmem:[%s3467_s20 + $0xc] sm:$0xff]  ;;  %v1881_v15 = vor.u32 %v1880_v3, %v1877_v31 }
  0xd1   : > { %v1010_v38 = vpop.f32.mrf.mxu2  ;;  %v2022_v63 = vunpack.c.l.b16 %v1863_v47  ;;  %v2204_v20 = vunpack.c.l.b16 %v2154_v5  ;;  %v2163_v14 = vrot.slane %v449_v42, 5 }
  0xd2   : > { %2804 = vmatmul.msk.bf16.vlgmr.msra.gmra.mxu3 %vm687_vm3, %v2036_v16  ;;  %v1050_v0 = vadd.f32 %v1010_v38, %v842_v7  ;;  %v1884_v7 = vshll.u32 %v3571_v55, 16  ;;  %v1888_v38 = vshrl.u32 %v3571_v55, 16  ;;  %v1882_v5 = vrot.slane %v1881_v15, 4 }
  0xd3   : > { %v1454_v6 = vpop.f32.mrf.mxu0 }
  0xd4   : > { %v1886_v22 = vrot.slane %v1884_v7, 5 }
  0xd5   : > { %v1144_v27 = vpop.f32.mrf.mxu3  ;;  %v846_v11 = vpop.f32.mrf.mxu1 }
  0xd6   : > { %2821 = vmatmul.msk.bf16.vlgmr.msra.gmra.mxu0 %vm687_vm3, %v2218_v33  ;;  %v1184_v44 = vadd.f32 %v1144_v27, %v1050_v0  ;;  %v847_v16 = vadd.f32 %v846_v11, %v3523_v32  ;;  %v1890_v33 = vrot.slane %v1888_v38, 4  ;;  %v2037_v38 = vpack.c.b16 %v2023_v26, %v2022_v63 }
  0xd7   : > { %v1887_v26 = vsel %vm3078_vm4, %v1882_v5, %v1886_v22 }
  0xd8   : > { %2755 = vmatmul.msk.bf16.gmra.mxu1 %vm687_vm3, %v1593_v46  ;;  %v3590_v25 = vadd.f32 %v1454_v6, %v1184_v44  ;;  %v2157_v46 = vsel %vm3218_vm7, %v2155_v61, %v2156_v40  ;;  %v1891_v11 = vor.u32 %v1890_v33, %v1886_v22  ;;  %v1581_v61 = vunpack.c.l.b16 %v1538_v30  ;;  %v3608_v33 = vld [vmem:[%s3467_s20 + $0x24] sm:$0xf] }
  0xd9   : > { %v1012_v32 = vpop.f32.mrf.mxu2  ;;  %v2205_v44 = vunpack.c.l.b16 %v2157_v46  ;;  %v1899_v15 = vshrl.u32 %v3608_v33, 16 }
  0xda   : > { %v1051_v0 = vadd.f32 %v1012_v32, %v844_v2  ;;  %v1894_v2 = vshll.u32 %v449_v42, 16  ;;  %v1892_v31 = vrot.slane %v1891_v11, 4 }
  0xdb   : > { %v1456_v27 = vpop.f32.mrf.mxu0  ;;  %v2219_v10 = vpack.c.b16 %v2205_v44, %v2204_v20 }
  0xdc   : > { %v1896_v54 = vrot.slane %v1894_v2, 5 }
  0xdd   : > { %v1146_v21 = vpop.f32.mrf.mxu3  ;;  %v848_v6 = vpop.f32.mrf.mxu1 }
  0xde   : > { %v1185_v7 = vadd.f32 %v1146_v21, %v1051_v0  ;;  %2796 = vmatmul.msk.bf16.gmra.mxu2 %vm687_vm3, %v2849_v56  ;;  %v849_v47 = vadd.f32 %v848_v6, %v3555_v41  ;;  %v1594_v0 = vpack.c.b16 %v1581_v61, %v1580_v29  ;;  %v3611_v56 = vld [vmem:[%s3467_s20 + $0x28] sm:$0xf]  ;;  %v1897_v46 = vsel %vm3078_vm4, %v1892_v31, %v1896_v54  ;;  %v2850_v29 = vld [vmem:[%s3467_s20 + $0x18] sm:$0xff] }
  0xdf   : > { %v1902_v21 = vshll.u32 %v3608_v33, 16  ;;  %v2162_v6 = vrot.slane %v2160_v35, 4  ;;  %v1908_v22 = vshll.u32 %v3611_v56, 16  ;;  %v1912_v30 = vshrl.u32 %v3611_v56, 16 }
  0xe0   : > { %v3604_v32 = vadd.f32 %v1456_v27, %v1185_v7  ;;  %v1541_v27 = vrot.slane %v3324_v13, 5  ;;  %v2025_v2 = vunpack.c.l.b16 %v1897_v46  ;;  %v2748_v7 = vrot.slane %v3321_v9, 9 }
  0xe1   : > { %v1015_v40 = vpop.f32.mrf.mxu2  ;;  %v1901_v61 = vrot.slane %v1899_v15, 4  ;;  %v1910_v31 = vrot.slane %v1908_v22, 5  ;;  %v1914_v54 = vrot.slane %v1912_v30, 4  ;;  %v2167_v15 = vrot.slane %v3611_v56, 5  ;;  %v3644_v22 = vld [vmem:[%s3467_s20 + $0x30] sm:$0xf] }
  0xe2   : > { %2805 = vmatmul.msk.bf16.gmra.mxu3 %vm687_vm3, %v2037_v38  ;;  %v1052_v3 = vadd.f32 %v1015_v40, %v847_v16  ;;  %v2814_v16 = vrot.slane %v3567_v45, 9  ;;  %v1544_v45 = vrot.slane %v3338_v51, 5  ;;  %v1543_v38 = vrot.slane %v1541_v27, 4 }
  0xe3   : > { %v1459_v50 = vpop.f32.mrf.mxu0  ;;  %v1904_v40 = vrot.slane %v1902_v21, 5  ;;  %v2164_v51 = vsel %vm3218_vm7, %v2162_v6, %v2163_v14  ;;  %v2169_v56 = vrot.slane %v2167_v15, 4 }
  0xe4   : > { %v2161_v42 = vsel %vm3218_vm7, %v2814_v16, %v2160_v35  ;;  %v1545_v35 = vsel %vm3218_vm7, %v1543_v38, %v1544_v45  ;;  %v1915_v16 = vor.u32 %v1914_v54, %v1910_v31  ;;  %v2815_v38 = vrot.slane %v3608_v33, 9 }
  0xe5   : > { %v1149_v41 = vpop.f32.mrf.mxu3  ;;  %v851_v63 = vpop.f32.mrf.mxu1  ;;  %v1905_v46 = vor.u32 %v1904_v40, %v1901_v61  ;;  %v1583_v6 = vunpack.c.l.b16 %v1545_v35  ;;  %v1926_v61 = vshll.u32 %v3644_v22, 16 }
  0xe6   : > { %2822 = vmatmul.msk.bf16.gmra.mxu0 %vm687_vm3, %v2219_v10  ;;  %v1186_v55 = vadd.f32 %v1149_v41, %v1052_v3  ;;  %v852_v20 = vadd.f32 %v851_v63, %v3430_v34  ;;  %v2024_v34 = vunpack.c.l.b16 %v1887_v26  ;;  %v452_v10 = vld [vmem:[%s3467_s20 + $0x2c] sm:$0x1]  ;;  %v2207_v63 = vunpack.c.l.b16 %v2164_v51 }
  0xe7   : > { %v1906_v45 = vrot.slane %v1905_v46, 4 }
  0xe8   : > { %2756 = vmatmul.msk.bf16.gmra.mxu1 %vm687_vm3, %v1594_v0  ;;  %v3627_v13 = vadd.f32 %v1459_v50, %v1186_v55  ;;  %v2038_v50 = vpack.c.b16 %v2025_v2, %v2024_v34  ;;  %v2206_v0 = vunpack.c.l.b16 %v2161_v42  ;;  %v1918_v55 = vshll.u32 %v452_v10, 16 }
  0xe9   : > { %v1017_v11 = vpop.f32.mrf.mxu2  ;;  %v1916_v2 = vrot.slane %v1915_v16, 4  ;;  %v1923_v42 = vshrl.u32 %v3644_v22, 16 }
  0xea   : > { %v1053_v44 = vadd.f32 %v1017_v11, %v849_v47  ;;  %v1542_v47 = vsel %vm3218_vm7, %v2748_v7, %v1541_v27  ;;  %v2220_v27 = vpack.c.b16 %v2207_v63, %v2206_v0  ;;  %v3648_v11 = vld [vmem:[%s3467_s20 + $0x34] sm:$0xf]  ;;  %v1920_v7 = vrot.slane %v1918_v55, 5  ;;  %v2851_v55 = vld [vmem:[%s3467_s20 + $0x24] sm:$0xff] }
  0xeb   : > { %v1461_v5 = vpop.f32.mrf.mxu0  ;;  %v1582_v21 = vunpack.c.l.b16 %v1542_v47  ;;  %v1932_v54 = vshll.u32 %v3648_v11, 16  ;;  %v1925_v47 = vrot.slane %v1923_v42, 4 }
  0xec   : > { %v1921_v0 = vsel %vm3078_vm4, %v1916_v2, %v1920_v7 }
  0xed   : > { %v1151_v3 = vpop.f32.mrf.mxu3  ;;  %v853_v9 = vpop.f32.mrf.mxu1  ;;  %v3673_v63 = vrot.slane %v1932_v54, 5 }
  0xee   : > { %v1187_v41 = vadd.f32 %v1151_v3, %v1053_v44  ;;  %2797 = vmatmul.msk.bf16.gmra.mxu2 %vm687_vm3, %v2850_v29  ;;  %v854_v26 = vadd.f32 %v853_v9, %v3453_v43  ;;  %v1595_v44 = vpack.c.b16 %v1583_v6, %v1582_v21  ;;  %v2170_v29 = vrot.slane %v452_v10, 5 }
  0xef   : > { %v1551_v10 = vrot.slane %v3365_v23, 5  ;;  %v2027_v21 = vunpack.c.l.b16 %v1921_v0  ;;  %v2174_v0 = vrot.slane %v3648_v11, 5 }
  0xf0   : > { %v3650_v34 = vadd.f32 %v1461_v5, %v1187_v41  ;;  %v1936_v5 = vshrl.u32 %v3648_v11, 16  ;;  %v2171_v9 = vsel %vm3218_vm7, %v2169_v56, %v2170_v29  ;;  %v2749_v41 = vrot.slane %v3345_v28, 9 }
  0xf1   : > { %v1020_v14 = vpop.f32.mrf.mxu2  ;;  %v2816_v11 = vrot.slane %v3644_v22, 9 }
  0xf2   : > { %2806 = vmatmul.msk.bf16.gmra.mxu3 %vm687_vm3, %v2038_v50  ;;  %v1054_v30 = vadd.f32 %v1020_v14, %v852_v20  ;;  %v1548_v20 = vrot.slane %v3348_v59, 5  ;;  %v1911_v50 = vsel %vm3078_vm4, %v1906_v45, %v1910_v31  ;;  %v2168_v59 = vsel %vm3218_vm7, %v2815_v38, %v2167_v15  ;;  %v455_v14 = vld [vmem:[%s3467_s20 + $0x38] sm:$0x1] }
  0xf3   : > { %v1464_v43 = vpop.f32.mrf.mxu0  ;;  %v1938_v46 = vrot.slane %v1936_v5, 4  ;;  %v2026_v15 = vunpack.c.l.b16 %v1911_v50  ;;  %v1942_v29 = vshll.u32 %v455_v14, 16 }
  0xf4   : > { %v1550_v31 = vrot.slane %v1548_v20, 4  ;;  %v1549_v2 = vsel %vm3218_vm7, %v2749_v41, %v1548_v20 }
  0xf5   : > { %v1154_v40 = vpop.f32.mrf.mxu3  ;;  %v856_v51 = vpop.f32.mrf.mxu1  ;;  %v2039_v56 = vpack.c.b16 %v2027_v21, %v2026_v15  ;;  %v1584_v42 = vunpack.c.l.b16 %v1549_v2  ;;  %v1944_v50 = vrot.slane %v1942_v29, 5  ;;  %v2176_v21 = vrot.slane %v2174_v0, 4 }
  0xf6   : > { %2823 = vmatmul.msk.bf16.gmra.mxu0 %vm687_vm3, %v2220_v27  ;;  %v1188_v3 = vadd.f32 %v1154_v40, %v1054_v30  ;;  %v857_v33 = vadd.f32 %v856_v51, %v3489_v12  ;;  %v1928_v12 = vrot.slane %v1926_v61, 5  ;;  %v2208_v27 = vunpack.c.l.b16 %v2168_v59  ;;  %v3685_v40 = vld [vmem:[%s3467_s20 + $0x3c] sm:$0xf]  ;;  %v3688_v51 = vld [vmem:[%s3467_s20 + $0x40] sm:$0xf] }
  0xf7   : > { %v2209_v30 = vunpack.c.l.b16 %v2171_v9  ;;  %v1552_v28 = vsel %vm3218_vm7, %v1550_v31, %v1551_v10  ;;  %v1947_v9 = vshrl.u32 %v3685_v40, 16  ;;  %v2750_v2 = vrot.slane %v3377_v49, 9 }
  0xf8   : > { %2757 = vmatmul.msk.bf16.gmra.mxu1 %vm687_vm3, %v1595_v44  ;;  %v3670_v35 = vadd.f32 %v1464_v43, %v1188_v3  ;;  %v1929_v7 = vor.u32 %v1928_v12, %v1925_v47  ;;  %v1585_v61 = vunpack.c.l.b16 %v1552_v28  ;;  %v1950_v47 = vshll.u32 %v3685_v40, 16 }
  0xf9   : > { %v1022_v23 = vpop.f32.mrf.mxu2  ;;  %v2221_v20 = vpack.c.b16 %v2209_v30, %v2208_v27  ;;  %v1956_v12 = vshll.u32 %v3688_v51, 16  ;;  %v1949_v27 = vrot.slane %v1947_v9, 4 }
  0xfa   : > { %v1055_v16 = vadd.f32 %v1022_v23, %v854_v26  ;;  %v1939_v26 = vor.u32 %v1938_v46, %v3673_v63  ;;  %v1930_v5 = vrot.slane %v1929_v7, 4  ;;  %v1960_v23 = vshrl.u32 %v3688_v51, 16  ;;  %v3712_v7 = vld [vmem:[%s3467_s20 + $0x44] sm:$0x1] }
  0xfb   : > { %v1466_v6 = vpop.f32.mrf.mxu0  ;;  %v1596_v41 = vpack.c.b16 %v1585_v61, %v1584_v42  ;;  %v1952_v30 = vrot.slane %v1950_v47, 5  ;;  %v2175_v42 = vsel %vm3218_vm7, %v2816_v11, %v2174_v0  ;;  %v2181_v11 = vrot.slane %v3688_v51, 5 }
  0xfc   : > { %v1940_v3 = vrot.slane %v1939_v26, 4  ;;  %v2210_v0 = vunpack.c.l.b16 %v2175_v42  ;;  %v2817_v51 = vrot.slane %v3685_v40, 9  ;;  %v1565_v40 = vrot.slane %v3427_v4, 5  ;;  %v2853_v4 = vld [vmem:[%s3467_s20 + $0x3c] sm:$0xff] }
  0xfd   : > { %v1156_v45 = vpop.f32.mrf.mxu3  ;;  %v858_v43 = vpop.f32.mrf.mxu1 }
  0xfe   : > { %v1189_v38 = vadd.f32 %v1156_v45, %v1055_v16  ;;  %2798 = vmatmul.msk.bf16.gmra.mxu2 %vm687_vm3, %v2851_v55  ;;  %v859_v44 = vadd.f32 %v858_v43, %v3511_v62  ;;  %v1555_v16 = vrot.slane %v3380_v52, 5  ;;  %v1945_v15 = vsel %vm3078_vm4, %v1940_v3, %v1944_v50 }
  0xff   : > { %v1958_v45 = vrot.slane %v1956_v12, 5  ;;  %v1962_v43 = vrot.slane %v1960_v23, 4  ;;  %v1558_v52 = vrot.slane %v3396_v58, 5  ;;  %v1966_v58 = vshll.u32 %v3712_v7, 16 }
 0x100   : > { %v3692_v59 = vadd.f32 %v1466_v6, %v1189_v38  ;;  %v2177_v6 = vrot.slane %v455_v14, 5  ;;  %v1557_v28 = vrot.slane %v1555_v16, 4  ;;  %v2852_v38 = vld [vmem:[%s3467_s20 + $0x30] sm:$0xff]  ;;  %v2029_v14 = vunpack.c.l.b16 %v1945_v15  ;;  %v3729_v15 = vld [vmem:[%s3467_s20 + $0x48] sm:$0xf] }
 0x101   : > { %v1025_v54 = vpop.f32.mrf.mxu2  ;;  %v1556_v3 = vsel %vm3218_vm7, %v2750_v2, %v1555_v16  ;;  %v1562_v2 = vrot.slane %v3410_v37, 5 }
 0x102   : > { %2807 = vmatmul.msk.bf16.gmra.mxu3 %vm687_vm3, %v2039_v56  ;;  %v1056_v10 = vadd.f32 %v1025_v54, %v857_v33  ;;  %v1935_v33 = vsel %vm3078_vm4, %v1930_v5, %v3673_v63  ;;  %v2178_v61 = vsel %vm3218_vm7, %v2176_v21, %v2177_v6  ;;  %v1963_v54 = vor.u32 %v1962_v43, %v1958_v45 }
 0x103   : > { %v1469_v62 = vpop.f32.mrf.mxu0  ;;  %v2028_v56 = vunpack.c.l.b16 %v1935_v33  ;;  %v1586_v23 = vunpack.c.l.b16 %v1556_v3 }
 0x104   : > { %v1964_v47 = vrot.slane %v1963_v54, 4  ;;  %v2751_v54 = vrot.slane %v3407_v17, 9 }
 0x105   : > { %v1159_v31 = vpop.f32.mrf.mxu3  ;;  %v861_v46 = vpop.f32.mrf.mxu1  ;;  %v2040_v50 = vpack.c.b16 %v2029_v14, %v2028_v56  ;;  %v2184_v56 = vrot.slane %v3712_v7, 5 }
 0x106   : > { %2824 = vmatmul.msk.bf16.gmra.mxu0 %vm687_vm3, %v2221_v20  ;;  %v1190_v55 = vadd.f32 %v1159_v31, %v1056_v10  ;;  %v1953_v20 = vor.u32 %v1952_v30, %v1949_v27  ;;  %v862_v12 = vadd.f32 %v861_v46, %v3457_v48  ;;  %v1968_v31 = vrot.slane %v1966_v58, 5  ;;  %v3734_v27 = vld [vmem:[%s3467_s20 + $0x4c] sm:$0xf] }
 0x107   : > { %v1984_v14 = vshrl.u32 %v3734_v27, 16  ;;  %v1564_v58 = vrot.slane %v1562_v2, 4 }
 0x108   : > { %2758 = vmatmul.msk.bf16.gmra.mxu1 %vm687_vm3, %v1596_v41  ;;  %v3707_v63 = vadd.f32 %v1469_v62, %v1190_v55  ;;  %v2211_v62 = vunpack.c.l.b16 %v2178_v61  ;;  %v1954_v9 = vrot.slane %v1953_v20, 4  ;;  %v1969_v46 = vsel %vm3078_vm4, %v1964_v47, %v1968_v31 }
 0x109   : > { %v1027_v22 = vpop.f32.mrf.mxu2  ;;  %v2031_v37 = vunpack.c.l.b16 %v1969_v46  ;;  %v2182_v61 = vsel %vm3218_vm7, %v2817_v51, %v2181_v11  ;;  %v1566_v17 = vsel %vm3218_vm7, %v1564_v58, %v1565_v40 }
 0x10a   : > { %v1057_v26 = vadd.f32 %v1027_v22, %v859_v44  ;;  %v1559_v44 = vsel %vm3218_vm7, %v1557_v28, %v1558_v52  ;;  %v2222_v16 = vpack.c.b16 %v2211_v62, %v2210_v0  ;;  %v1959_v48 = vsel %vm3078_vm4, %v1954_v9, %v1958_v45  ;;  %v461_v0 = vld [vmem:[%s3467_s20 + $0x50] sm:$0x1] }
 0x10b   : > { %v1471_v29 = vpop.f32.mrf.mxu0  ;;  %v1587_v41 = vunpack.c.l.b16 %v1559_v44  ;;  %v2183_v22 = vrot.slane %v2181_v11, 4  ;;  %v1971_v28 = vshrl.u32 %v3729_v15, 16  ;;  %v1980_v45 = vshll.u32 %v3734_v27, 16 }
 0x10c   : > { %v2212_v62 = vunpack.c.l.b16 %v2182_v61  ;;  %v2191_v58 = vrot.slane %v461_v0, 5 }
 0x10d   : > { %v1161_v5 = vpop.f32.mrf.mxu3  ;;  %v863_v49 = vpop.f32.mrf.mxu1  ;;  %v1597_v30 = vpack.c.b16 %v1587_v41, %v1586_v23  ;;  %v1563_v23 = vsel %vm3218_vm7, %v2751_v54, %v1562_v2 }
 0x10e   : > { %v1191_v10 = vadd.f32 %v1161_v5, %v1057_v26  ;;  %2799 = vmatmul.msk.bf16.gmra.mxu2 %vm687_vm3, %v2852_v38  ;;  %v1974_v26 = vshll.u32 %v3729_v15, 16  ;;  %v864_v42 = vadd.f32 %v863_v49, %v3497_v19  ;;  %v1973_v5 = vrot.slane %v1971_v28, 4 }
 0x10f   : > { %v2185_v19 = vsel %vm3218_vm7, %v2183_v22, %v2184_v56  ;;  %v1982_v49 = vrot.slane %v1980_v45, 5  ;;  %v3771_v56 = vld [vmem:[%s3467_s20 + $0x54] sm:$0xf] }
 0x110   : > { %v3731_v21 = vadd.f32 %v1471_v29, %v1191_v10  ;;  %v2030_v29 = vunpack.c.l.b16 %v1959_v48  ;;  %v1976_v3 = vrot.slane %v1974_v26, 5  ;;  %v1986_v10 = vrot.slane %v1984_v14, 4  ;;  %v3774_v14 = vld [vmem:[%s3467_s20 + $0x58] sm:$0xf] }
 0x111   : > { %v1030_v33 = vpop.f32.mrf.mxu2  ;;  %v2213_v47 = vunpack.c.l.b16 %v2185_v19  ;;  %v1995_v61 = vshrl.u32 %v3771_v56, 16 }
 0x112   : > { %2808 = vmatmul.msk.bf16.gmra.mxu3 %vm687_vm3, %v2040_v50  ;;  %v1058_v55 = vadd.f32 %v1030_v33, %v862_v12  ;;  %v1977_v41 = vor.u32 %v1976_v3, %v1973_v5  ;;  %v2041_v33 = vpack.c.b16 %v2031_v37, %v2030_v29  ;;  %v1987_v11 = vor.u32 %v1986_v10, %v1982_v49 }
 0x113   : > { %v1474_v6 = vpop.f32.mrf.mxu0  ;;  %v2223_v48 = vpack.c.b16 %v2213_v47, %v2212_v62  ;;  %v2818_v29 = vrot.slane %v3729_v15, 9  ;;  %v2004_v5 = vshll.u32 %v3774_v14, 16  ;;  %v2008_v3 = vshrl.u32 %v3774_v14, 16  ;;  %v2854_v62 = vld [vmem:[%s3467_s20 + $0x48] sm:$0xff] }
 0x114   : > { %v1978_v51 = vrot.slane %v1977_v41, 4  ;;  %v1988_v22 = vrot.slane %v1987_v11, 4  ;;  %v1572_v15 = vrot.slane %v3470_v24, 5  ;;  %v2752_v10 = vrot.slane %v3440_v60, 9  ;;  %v464_v41 = vld [vmem:[%s3467_s20 + $0x5c] sm:$0x1] }
 0x115   : > { %v1164_v43 = vpop.f32.mrf.mxu3  ;;  %v866_v52 = vpop.f32.mrf.mxu1  ;;  %v1997_v47 = vrot.slane %v1995_v61, 4 }
 0x116   : > { %2825 = vmatmul.msk.bf16.gmra.mxu0 %vm687_vm3, %v2222_v16  ;;  %v1192_v38 = vadd.f32 %v1164_v43, %v1058_v55  ;;  %v1990_v16 = vshll.u32 %v461_v0, 16  ;;  %v867_v55 = vadd.f32 %v866_v52, %v3519_v18  ;;  %v1983_v40 = vsel %vm3078_vm4, %v1978_v51, %v1982_v49 }
 0x117   : > { %v2032_v19 = vunpack.c.l.b16 %v1983_v40  ;;  %v2014_v51 = vshll.u32 %v464_v41, 16 }
 0x118   : > { %2759 = vmatmul.msk.bf16.gmra.mxu1 %vm687_vm3, %v1597_v30  ;;  %v3753_v20 = vadd.f32 %v1474_v6, %v1192_v38  ;;  %v1588_v6 = vunpack.c.l.b16 %v1563_v23  ;;  %v1589_v30 = vunpack.c.l.b16 %v1566_v17  ;;  %v1992_v2 = vrot.slane %v1990_v16, 5 }
 0x119   : > { %v1032_v7 = vpop.f32.mrf.mxu2  ;;  %v2188_v38 = vrot.slane %v3734_v27, 5  ;;  %v2010_v17 = vrot.slane %v2008_v3, 4 }
 0x11a   : > { %v1059_v44 = vadd.f32 %v1032_v7, %v864_v42  ;;  %v1598_v45 = vpack.c.b16 %v1589_v30, %v1588_v6  ;;  %v1569_v42 = vrot.slane %v3443_v8, 5  ;;  %v1993_v27 = vsel %vm3078_vm4, %v1988_v22, %v1992_v2 }
 0x11b   : > { %v1476_v50 = vpop.f32.mrf.mxu0  ;;  %v1998_v7 = vshll.u32 %v3771_v56, 16  ;;  %v2190_v54 = vrot.slane %v2188_v38, 4  ;;  %v2033_v49 = vunpack.c.l.b16 %v1993_v27  ;;  %v2195_v27 = vrot.slane %v3774_v14, 5 }
 0x11c   : > { %v1570_v60 = vsel %vm3218_vm7, %v2752_v10, %v1569_v42 }
 0x11d   : > { %v1166_v9 = vpop.f32.mrf.mxu3  ;;  %v868_v12 = vpop.f32.mrf.mxu1  ;;  %v2000_v24 = vrot.slane %v1998_v7, 5  ;;  %v2042_v6 = vpack.c.b16 %v2033_v49, %v2032_v19  ;;  %v1590_v22 = vunpack.c.l.b16 %v1570_v60  ;;  %v2197_v3 = vrot.slane %v2195_v27, 4  ;;  %v2855_v49 = vld [vmem:[%s3467_s20 + $0x54] sm:$0xff] }
 0x11e   : > { %v1193_v31 = vadd.f32 %v1166_v9, %v1059_v44  ;;  %2800 = vmatmul.msk.bf16.gmra.mxu2 %vm687_vm3, %v2853_v4  ;;  %v869_v8 = vadd.f32 %v868_v12, %v3546_v39  ;;  %v2189_v9 = vsel %vm3218_vm7, %v2818_v29, %v2188_v38  ;;  %v2192_v39 = vsel %vm3218_vm7, %v2190_v54, %v2191_v58 }
 0x11f   : > { %v2006_v12 = vrot.slane %v2004_v5, 5  ;;  %v2215_v30 = vunpack.c.l.b16 %v2192_v39  ;;  %v2819_v5 = vrot.slane %v3771_v56, 9  ;;  %v3978_v39 = vld [vmem:[#allocation2_spill] sm:$0xff] }
 0x120   : > { %v3767_v28 = vadd.f32 %v1476_v50, %v1193_v31  ;;  %v1571_v50 = vrot.slane %v1569_v42, 4 }
 0x121   : > { %v1035_v46 = vpop.f32.mrf.mxu2  ;;  %v2196_v36 = vsel %vm3218_vm7, %v2819_v5, %v2195_v27 }
 0x122   : > { %2809 = vmatmul.msk.bf16.gmra.mxu3 %vm687_vm3, %v2041_v33  ;;  %v1060_v43 = vadd.f32 %v1035_v46, %v867_v55  ;;  %v2214_v33 = vunpack.c.l.b16 %v2189_v9  ;;  %v1573_v16 = vsel %vm3218_vm7, %v1571_v50, %v1572_v15  ;;  %v2011_v46 = vor.u32 %v2010_v17, %v2006_v12 }
 0x123   : > { %v1479_v26 = vpop.f32.mrf.mxu0  ;;  %v1591_v2 = vunpack.c.l.b16 %v1573_v16  ;;  %v2198_v15 = vrot.slane %v464_v41, 5 }
 0x124   : > { %v2012_v42 = vrot.slane %v2011_v46, 4 }
 0x125   : > { %v1169_v18 = vpop.f32.mrf.mxu3  ;;  %v871_v52 = vpop.f32.mrf.mxu1  ;;  %v1599_v61 = vpack.c.b16 %v1591_v2, %v1590_v22  ;;  %v2199_v56 = vsel %vm3218_vm7, %v2197_v3, %v2198_v15 }
 0x126   : > { %2826 = vmatmul.msk.bf16.gmra.mxu0 %vm687_vm3, %v2223_v48  ;;  %v1194_v37 = vadd.f32 %v1169_v18, %v1060_v43  ;;  %v2001_v48 = vor.u32 %v2000_v24, %v1997_v47  ;;  %v872_v43 = vadd.f32 %v871_v52, %v3474_v1  ;;  %v2216_v24 = vunpack.c.l.b16 %v2196_v36 }
 0x128   : > { %2760 = vmatmul.msk.bf16.gmra.mxu1 %vm687_vm3, %v1598_v45  ;;  %v3790_v44 = vadd.f32 %v1479_v26, %v1194_v37  ;;  %v2224_v45 = vpack.c.b16 %v2215_v30, %v2214_v33  ;;  %v2002_v40 = vrot.slane %v2001_v48, 4  ;;  %v2016_v37 = vrot.slane %v2014_v51, 5 }
 0x129   : > { %v1037_v4 = vpop.f32.mrf.mxu2 }
 0x12a   : > { %v1061_v0 = vadd.f32 %v1037_v4, %v869_v8  ;;  %v2007_v52 = vsel %vm3078_vm4, %v2002_v40, %v2006_v12  ;;  %v2017_v58 = vsel %vm3078_vm4, %v2012_v42, %v2016_v37 }
 0x12b   : > { %v1481_v23 = vpop.f32.mrf.mxu0  ;;  %v2034_v10 = vunpack.c.l.b16 %v2007_v52  ;;  %v2035_v50 = vunpack.c.l.b16 %v2017_v58 }
 0x12d   : > { %v1171_v31 = vpop.f32.mrf.mxu3  ;;  %v873_v11 = vpop.f32.mrf.mxu1 }
 0x12e   : > { %v1195_v55 = vadd.f32 %v1171_v31, %v1061_v0  ;;  %2801 = vmatmul.msk.bf16.gmra.mxu2 %vm687_vm3, %v2854_v62  ;;  %v874_v8 = vadd.f32 %v873_v11, %v3504_v57  ;;  %v2043_v57 = vpack.c.b16 %v2035_v50, %v2034_v10 }
 0x130   : > { %v3805_v26 = vadd.f32 %v1481_v23, %v1195_v55  ;;  %v2217_v23 = vunpack.c.l.b16 %v2199_v56  ;;  %v3979_v55 = vld [vmem:[#allocation3_spill] sm:$0xff] }
 0x131   : > { %v1040_v38 = vpop.f32.mrf.mxu2 }
 0x132   : > { %2810 = vmatmul.msk.bf16.gmra.mxu3 %vm687_vm3, %v2042_v6  ;;  %v1062_v18 = vadd.f32 %v1040_v38, %v872_v43  ;;  %v2225_v31 = vpack.c.b16 %v2217_v23, %v2216_v24 }
 0x133   : > { %v1484_v29 = vpop.f32.mrf.mxu0 }
 0x135   : > { %v1174_v7 = vpop.f32.mrf.mxu3  ;;  %v876_v54 = vpop.f32.mrf.mxu1 }
 0x136   : > { %2827 = vmatmul.msk.bf16.gmra.mxu0 %vm687_vm3, %v2224_v45  ;;  %v1196_v1 = vadd.f32 %v1174_v7, %v1062_v18  ;;  %v877_v12 = vadd.f32 %v876_v54, %v3978_v39 }
 0x138   : > { %2761 = vmatmul.msk.bf16.gmra.mxu1 %vm687_vm3, %v1599_v61  ;;  %v3817_v14 = vadd.f32 %v1484_v29, %v1196_v1  ;;  %v3844_v61 = vld [vmem:[%s3969_s4] ss:$0 sm:$0xff] }
 0x139   : > { %v1042_v4 = vpop.f32.mrf.mxu2 }
 0x13a   : > { %v1063_v19 = vadd.f32 %v1042_v4, %v874_v8 }
 0x13b   : > { %v1486_v0 = vpop.f32.mrf.mxu0 }
 0x13d   : > { %v1176_v62 = vpop.f32.mrf.mxu3  ;;  %v878_v9 = vpop.f32.mrf.mxu1 }
 0x13e   : > { %v1197_v47 = vadd.f32 %v1176_v62, %v1063_v19  ;;  %2802 = vmatmul.msk.bf16.gmra.mxu2 %vm687_vm3, %v2855_v49  ;;  %v879_v6 = vadd.f32 %v878_v9, %v3979_v55 }
 0x140   : > { %v3826_v17 = vadd.f32 %v1486_v0, %v1197_v47 }
 0x141   : > { %v1045_v41 = vpop.f32.mrf.mxu2 }
 0x142   : > { %2811 = vmatmul.msk.bf16.gmra.mxu3 %vm687_vm3, %v2043_v57  ;;  %v1064_v53 = vadd.f32 %v1045_v41, %v877_v12 }
 0x143   : > { %v1489_v33 = vpop.f32.mrf.mxu0 }
 0x145   : > { %v1179_v11 = vpop.f32.mrf.mxu3  ;;  %v1636_v60 = vpop.f32.mrf.mxu1 }
 0x146   : > { %2828 = vmatmul.msk.bf16.gmra.mxu0 %vm687_vm3, %v2225_v31  ;;  %v1198_v16 = vadd.f32 %v1179_v11, %v1064_v53  ;;  %v1676_v38 = vadd.f32 %v1636_v60, %v3590_v25 }
 0x148   : > { %v3832_v30 = vadd.f32 %v1489_v33, %v1198_v16 }
 0x149   : > { %v1047_v48 = vpop.f32.mrf.mxu2 }
 0x14a   : > { %v1065_v46 = vadd.f32 %v1047_v48, %v879_v6 }
 0x14b   : > { %v1491_v51 = vpop.f32.mrf.mxu0 }
 0x14d   : > { %v1181_v43 = vpop.f32.mrf.mxu3  ;;  %v1638_v22 = vpop.f32.mrf.mxu1 }
 0x14e   : > { %v1199_v2 = vadd.f32 %v1181_v43, %v1065_v46  ;;  %v1677_v25 = vadd.f32 %v1638_v22, %v3604_v32 }
 0x150   : > { %v3836_v45 = vadd.f32 %v1491_v51, %v1199_v2 }
 0x151   : > { %v1770_v18 = vpop.f32.mrf.mxu2 }
 0x152   : > { %v1810_v40 = vadd.f32 %v1770_v18, %v1676_v38 }
 0x153   : > { %v2262_v29 = vpop.f32.mrf.mxu0 }
 0x155   : > { %v2080_v42 = vpop.f32.mrf.mxu3  ;;  %v1641_v37 = vpop.f32.mrf.mxu1 }
 0x156   : > { %v2120_v27 = vadd.f32 %v2080_v42, %v1810_v40  ;;  %v1678_v32 = vadd.f32 %v1641_v37, %v3627_v13 }
 0x158   : > { %v2302_v7 = vadd.f32 %v2262_v29, %v2120_v27 }
 0x159   : > { %v1772_v54 = vpop.f32.mrf.mxu2 }
 0x15a   : > { %v2322_v1 = vadd.f32 %v3844_v61, %v2302_v7  ;;  %v1811_v52 = vadd.f32 %v1772_v54, %v1677_v25 }
 0x15b   : > { %v2264_v58 = vpop.f32.mrf.mxu0 }
 0x15c   : > { %2338 = vst.msk [vmem:[%s3850_s8] sm:$0xff] %vm687_vm3, %v2322_v1  ;;  %v2391_v19 = vmul.f32 %v2322_v1, %v2322_v1  ;;  %v2354_v0 = vsel %vm687_vm3, %v2322_v1, 0.0 }
 0x15d   : > { %v2082_v5 = vpop.f32.mrf.mxu3  ;;  %v1643_v3 = vpop.f32.mrf.mxu1 }
 0x15e   : > { %v2121_v15 = vadd.f32 %v2082_v5, %v1811_v52  ;;  %v2407_v57 = vsel %vm687_vm3, %v2391_v19, 0.0  ;;  %v1679_v12 = vadd.f32 %v1643_v3, %v3650_v34 }
 0x160   : > { %v2303_v8 = vadd.f32 %v2264_v58, %v2121_v15 }
 0x161   : > { %v1775_v4 = vpop.f32.mrf.mxu2 }
 0x162   : > { %v2323_v49 = vadd.f32 %v3844_v61, %v2303_v8  ;;  %v1812_v10 = vadd.f32 %v1775_v4, %v1678_v32 }
 0x163   : > { %v2267_v50 = vpop.f32.mrf.mxu0 }
 0x164   : > { %2339 = vst.msk [vmem:[%s3850_s8 + $0x8] sm:$0xff] %vm687_vm3, %v2323_v49  ;;  %v2355_v36 = vsel %vm687_vm3, %v2323_v49, 0.0  ;;  %v2392_v56 = vmul.f32 %v2323_v49, %v2323_v49 }
 0x165   : > { %v2356_v62 = vadd.f32 %v2355_v36, %v2354_v0  ;;  %v2085_v9 = vpop.f32.mrf.mxu3  ;;  %v1646_v47 = vpop.f32.mrf.mxu1 }
 0x166   : > { %v2408_v13 = vsel %vm687_vm3, %v2392_v56, 0.0  ;;  %v2122_v24 = vadd.f32 %v2085_v9, %v1812_v10  ;;  %v1680_v34 = vadd.f32 %v1646_v47, %v3670_v35 }
 0x167   : > { %v2409_v23 = vadd.f32 %v2408_v13, %v2407_v57 }
 0x168   : > { %v2304_v39 = vadd.f32 %v2267_v50, %v2122_v24 }
 0x169   : > { %v1777_v41 = vpop.f32.mrf.mxu2 }
 0x16a   : > { %v2324_v31 = vadd.f32 %v3844_v61, %v2304_v39  ;;  %v1813_v53 = vadd.f32 %v1777_v41, %v1679_v12 }
 0x16b   : > { %v2269_v33 = vpop.f32.mrf.mxu0 }
 0x16c   : > { %2340 = vst.msk [vmem:[%s3850_s8 + $0x10] sm:$0xff] %vm687_vm3, %v2324_v31  ;;  %v2357_v11 = vsel %vm687_vm3, %v2324_v31, 0.0  ;;  %v2393_v60 = vmul.f32 %v2324_v31, %v2324_v31 }
 0x16d   : > { %v2358_v16 = vadd.f32 %v2357_v11, %v2356_v62  ;;  %v2087_v55 = vpop.f32.mrf.mxu3  ;;  %v1648_v6 = vpop.f32.mrf.mxu1 }
 0x16e   : > { %v2410_v48 = vsel %vm687_vm3, %v2393_v60, 0.0  ;;  %v2123_v46 = vadd.f32 %v2087_v55, %v1813_v53  ;;  %v1681_v35 = vadd.f32 %v1648_v6, %v3692_v59 }
 0x16f   : > { %v2411_v51 = vadd.f32 %v2410_v48, %v2409_v23 }
 0x170   : > { %v2305_v43 = vadd.f32 %v2269_v33, %v2123_v46 }
 0x171   : > { %v1780_v22 = vpop.f32.mrf.mxu2 }
 0x172   : > { %v2325_v2 = vadd.f32 %v3844_v61, %v2305_v43  ;;  %v1814_v38 = vadd.f32 %v1780_v22, %v1680_v34 }
 0x173   : > { %v2272_v18 = vpop.f32.mrf.mxu0 }
 0x174   : > { %2341 = vst.msk [vmem:[%s3850_s8 + $0x18] sm:$0xff] %vm687_vm3, %v2325_v2  ;;  %v2359_v40 = vsel %vm687_vm3, %v2325_v2, 0.0  ;;  %v2394_v29 = vmul.f32 %v2325_v2, %v2325_v2 }
 0x175   : > { %v2360_v42 = vadd.f32 %v2359_v40, %v2358_v16  ;;  %v2090_v37 = vpop.f32.mrf.mxu3  ;;  %v1651_v27 = vpop.f32.mrf.mxu1 }
 0x176   : > { %v2412_v7 = vsel %vm687_vm3, %v2394_v29, 0.0  ;;  %v2124_v25 = vadd.f32 %v2090_v37, %v1814_v38  ;;  %v1682_v59 = vadd.f32 %v1651_v27, %v3707_v63 }
 0x177   : > { %v2413_v54 = vadd.f32 %v2412_v7, %v2411_v51 }
 0x178   : > { %v2306_v1 = vadd.f32 %v2272_v18, %v2124_v25 }
 0x179   : > { %v1782_v52 = vpop.f32.mrf.mxu2 }
 0x17a   : > { %v2326_v58 = vadd.f32 %v3844_v61, %v2306_v1  ;;  %v1815_v5 = vadd.f32 %v1782_v52, %v1681_v35 }
 0x17b   : > { %v2274_v3 = vpop.f32.mrf.mxu0 }
 0x17c   : > { %2342 = vst.msk [vmem:[%s3850_s8 + $0x20] sm:$0xff] %vm687_vm3, %v2326_v58  ;;  %v2361_v15 = vsel %vm687_vm3, %v2326_v58, 0.0  ;;  %v2395_v8 = vmul.f32 %v2326_v58, %v2326_v58 }
 0x17d   : > { %v2362_v32 = vadd.f32 %v2361_v15, %v2360_v42  ;;  %v2092_v4 = vpop.f32.mrf.mxu3  ;;  %v1653_v19 = vpop.f32.mrf.mxu1 }
 0x17e   : > { %v2414_v49 = vsel %vm687_vm3, %v2395_v8, 0.0  ;;  %v2125_v10 = vadd.f32 %v2092_v4, %v1815_v5  ;;  %v1683_v63 = vadd.f32 %v1653_v19, %v3731_v21 }
 0x17f   : > { %v2415_v50 = vadd.f32 %v2414_v49, %v2413_v54 }
 0x180   : > { %v2307_v0 = vadd.f32 %v2274_v3, %v2125_v10 }
 0x181   : > { %v1785_v36 = vpop.f32.mrf.mxu2 }
 0x182   : > { %v2327_v56 = vadd.f32 %v3844_v61, %v2307_v0  ;;  %v1816_v62 = vadd.f32 %v1785_v36, %v1682_v59 }
 0x183   : > { %v2277_v9 = vpop.f32.mrf.mxu0 }
 0x184   : > { %2343 = vst.msk [vmem:[%s3850_s8 + $0x28] sm:$0xff] %vm687_vm3, %v2327_v56  ;;  %v2363_v47 = vsel %vm687_vm3, %v2327_v56, 0.0  ;;  %v2396_v57 = vmul.f32 %v2327_v56, %v2327_v56 }
 0x185   : > { %v2364_v13 = vadd.f32 %v2363_v47, %v2362_v32  ;;  %v2095_v24 = vpop.f32.mrf.mxu3  ;;  %v1656_v23 = vpop.f32.mrf.mxu1 }
 0x186   : > { %v2416_v39 = vsel %vm687_vm3, %v2396_v57, 0.0  ;;  %v2126_v12 = vadd.f32 %v2095_v24, %v1816_v62  ;;  %v1684_v21 = vadd.f32 %v1656_v23, %v3753_v20 }
 0x187   : > { %v2417_v41 = vadd.f32 %v2416_v39, %v2415_v50 }
 0x188   : > { %v2308_v31 = vadd.f32 %v2277_v9, %v2126_v12 }
 0x189   : > { %v1787_v53 = vpop.f32.mrf.mxu2 }
 0x18a   : > { %v2328_v33 = vadd.f32 %v3844_v61, %v2308_v31  ;;  %v1817_v11 = vadd.f32 %v1787_v53, %v1683_v63 }
 0x18b   : > { %v2279_v60 = vpop.f32.mrf.mxu0 }
 0x18c   : > { %2344 = vst.msk [vmem:[%s3850_s8 + $0x30] sm:$0xff] %vm687_vm3, %v2328_v33  ;;  %v2365_v16 = vsel %vm687_vm3, %v2328_v33, 0.0  ;;  %v2397_v55 = vmul.f32 %v2328_v33, %v2328_v33 }
 0x18d   : > { %v2366_v6 = vadd.f32 %v2365_v16, %v2364_v13  ;;  %v2097_v48 = vpop.f32.mrf.mxu3  ;;  %v1658_v46 = vpop.f32.mrf.mxu1 }
 0x18e   : > { %v2418_v51 = vsel %vm687_vm3, %v2397_v55, 0.0  ;;  %v2127_v43 = vadd.f32 %v2097_v48, %v1817_v11  ;;  %v1685_v20 = vadd.f32 %v1658_v46, %v3767_v28 }
 0x18f   : > { %v2419_v34 = vadd.f32 %v2418_v51, %v2417_v41 }
 0x190   : > { %v2309_v22 = vadd.f32 %v2279_v60, %v2127_v43 }
 0x191   : > { %v1790_v2 = vpop.f32.mrf.mxu2 }
 0x192   : > { %v2329_v38 = vadd.f32 %v3844_v61, %v2309_v22  ;;  %v1818_v18 = vadd.f32 %v1790_v2, %v1684_v21 }
 0x193   : > { %v2282_v40 = vpop.f32.mrf.mxu0 }
 0x194   : > { %2345 = vst.msk [vmem:[%s3850_s8 + $0x38] sm:$0xff] %vm687_vm3, %v2329_v38  ;;  %v2367_v29 = vsel %vm687_vm3, %v2329_v38, 0.0  ;;  %v2398_v42 = vmul.f32 %v2329_v38, %v2329_v38 }
 0x195   : > { %v2368_v37 = vadd.f32 %v2367_v29, %v2366_v6  ;;  %v2100_v27 = vpop.f32.mrf.mxu3  ;;  %v1661_v7 = vpop.f32.mrf.mxu1 }
 0x196   : > { %v2420_v25 = vsel %vm687_vm3, %v2398_v42, 0.0  ;;  %v2128_v54 = vadd.f32 %v2100_v27, %v1818_v18  ;;  %v1686_v28 = vadd.f32 %v1661_v7, %v3790_v44 }
 0x197   : > { %v2421_v1 = vadd.f32 %v2420_v25, %v2419_v34 }
 0x198   : > { %v2310_v35 = vadd.f32 %v2282_v40, %v2128_v54 }
 0x199   : > { %v1792_v52 = vpop.f32.mrf.mxu2 }
 0x19a   : > { %v2330_v58 = vadd.f32 %v3844_v61, %v2310_v35  ;;  %v1819_v5 = vadd.f32 %v1792_v52, %v1685_v20 }
 0x19b   : > { %v2284_v3 = vpop.f32.mrf.mxu0 }
 0x19c   : > { %2346 = vst.msk [vmem:[%s3850_s8 + $0x40] sm:$0xff] %vm687_vm3, %v2330_v58  ;;  %v2369_v15 = vsel %vm687_vm3, %v2330_v58, 0.0  ;;  %v2399_v8 = vmul.f32 %v2330_v58, %v2330_v58 }
 0x19d   : > { %v2370_v32 = vadd.f32 %v2369_v15, %v2368_v37  ;;  %v2102_v4 = vpop.f32.mrf.mxu3  ;;  %v1663_v19 = vpop.f32.mrf.mxu1 }
 0x19e   : > { %v2422_v49 = vsel %vm687_vm3, %v2399_v8, 0.0  ;;  %v2129_v10 = vadd.f32 %v2102_v4, %v1819_v5  ;;  %v1687_v44 = vadd.f32 %v1663_v19, %v3805_v26 }
 0x19f   : > { %v2423_v50 = vadd.f32 %v2422_v49, %v2421_v1 }
 0x1a0   : > { %v2311_v0 = vadd.f32 %v2284_v3, %v2129_v10 }
 0x1a1   : > { %v1795_v59 = vpop.f32.mrf.mxu2 }
 0x1a2   : > { %v2331_v36 = vadd.f32 %v3844_v61, %v2311_v0  ;;  %v1820_v56 = vadd.f32 %v1795_v59, %v1686_v28 }
 0x1a3   : > { %v2287_v62 = vpop.f32.mrf.mxu0 }
 0x1a4   : > { %2347 = vst.msk [vmem:[%s3850_s8 + $0x48] sm:$0xff] %vm687_vm3, %v2331_v36  ;;  %v2371_v9 = vsel %vm687_vm3, %v2331_v36, 0.0  ;;  %v2400_v47 = vmul.f32 %v2331_v36, %v2331_v36 }
 0x1a5   : > { %v2372_v57 = vadd.f32 %v2371_v9, %v2370_v32  ;;  %v2105_v13 = vpop.f32.mrf.mxu3  ;;  %v1666_v39 = vpop.f32.mrf.mxu1 }
 0x1a6   : > { %v2424_v24 = vsel %vm687_vm3, %v2400_v47, 0.0  ;;  %v2130_v23 = vadd.f32 %v2105_v13, %v1820_v56  ;;  %v1688_v26 = vadd.f32 %v1666_v39, %v3817_v14 }
 0x1a7   : > { %v2425_v12 = vadd.f32 %v2424_v24, %v2423_v50 }
 0x1a8   : > { %v2312_v41 = vadd.f32 %v2287_v62, %v2130_v23 }
 0x1a9   : > { %v1797_v31 = vpop.f32.mrf.mxu2 }
 0x1aa   : > { %v2332_v63 = vadd.f32 %v3844_v61, %v2312_v41  ;;  %v1821_v53 = vadd.f32 %v1797_v31, %v1687_v44 }
 0x1ab   : > { %v2289_v33 = vpop.f32.mrf.mxu0 }
 0x1ac   : > { %2348 = vst.msk [vmem:[%s3850_s8 + $0x50] sm:$0xff] %vm687_vm3, %v2332_v63  ;;  %v2373_v11 = vsel %vm687_vm3, %v2332_v63, 0.0  ;;  %v2401_v60 = vmul.f32 %v2332_v63, %v2332_v63 }
 0x1ad   : > { %v2374_v16 = vadd.f32 %v2373_v11, %v2372_v57  ;;  %v2107_v55 = vpop.f32.mrf.mxu3  ;;  %v1668_v43 = vpop.f32.mrf.mxu1 }
 0x1ae   : > { %v2426_v6 = vsel %vm687_vm3, %v2401_v60, 0.0  ;;  %v2131_v48 = vadd.f32 %v2107_v55, %v1821_v53  ;;  %v1689_v14 = vadd.f32 %v1668_v43, %v3826_v17 }
 0x1af   : > { %v2427_v46 = vadd.f32 %v2426_v6, %v2425_v12 }
 0x1b0   : > { %v2313_v51 = vadd.f32 %v2289_v33, %v2131_v48 }
 0x1b1   : > { %v1800_v34 = vpop.f32.mrf.mxu2 }
 0x1b2   : > { %v2333_v22 = vadd.f32 %v3844_v61, %v2313_v51  ;;  %v1822_v21 = vadd.f32 %v1800_v34, %v1688_v26 }
 0x1b3   : > { %v2292_v2 = vpop.f32.mrf.mxu0 }
 0x1b4   : > { %2349 = vst.msk [vmem:[%s3850_s8 + $0x58] sm:$0xff] %vm687_vm3, %v2333_v22  ;;  %v2375_v38 = vsel %vm687_vm3, %v2333_v22, 0.0  ;;  %v2402_v18 = vmul.f32 %v2333_v22, %v2333_v22 }
 0x1b5   : > { %v2376_v40 = vadd.f32 %v2375_v38, %v2374_v16  ;;  %v2110_v29 = vpop.f32.mrf.mxu3  ;;  %v1671_v35 = vpop.f32.mrf.mxu1 }
 0x1b6   : > { %v2428_v42 = vsel %vm687_vm3, %v2402_v18, 0.0  ;;  %v2132_v37 = vadd.f32 %v2110_v29, %v1822_v21  ;;  %v1690_v17 = vadd.f32 %v1671_v35, %v3832_v30 }
 0x1b7   : > { %v2429_v27 = vadd.f32 %v2428_v42, %v2427_v46 }
 0x1b8   : > { %v2314_v7 = vadd.f32 %v2292_v2, %v2132_v37 }
 0x1b9   : > { %v1802_v25 = vpop.f32.mrf.mxu2 }
 0x1ba   : > { %v2334_v54 = vadd.f32 %v3844_v61, %v2314_v7  ;;  %v1823_v1 = vadd.f32 %v1802_v25, %v1689_v14 }
 0x1bb   : > { %v2294_v20 = vpop.f32.mrf.mxu0 }
 0x1bc   : > { %2350 = vst.msk [vmem:[%s3850_s8 + $0x60] sm:$0xff] %vm687_vm3, %v2334_v54  ;;  %v2377_v52 = vsel %vm687_vm3, %v2334_v54, 0.0  ;;  %v2403_v58 = vmul.f32 %v2334_v54, %v2334_v54 }
 0x1bd   : > { %v2378_v5 = vadd.f32 %v2377_v52, %v2376_v40  ;;  %v2112_v3 = vpop.f32.mrf.mxu3  ;;  %v1673_v28 = vpop.f32.mrf.mxu1 }
 0x1be   : > { %v2430_v15 = vsel %vm687_vm3, %v2403_v58, 0.0  ;;  %v2133_v8 = vadd.f32 %v2112_v3, %v1823_v1  ;;  %v1691_v30 = vadd.f32 %v1673_v28, %v3836_v45 }
 0x1bf   : > { %v2431_v32 = vadd.f32 %v2430_v15, %v2429_v27 }
 0x1c0   : > { %v2315_v4 = vadd.f32 %v2294_v20, %v2133_v8 }
 0x1c1   : > { %v1805_v19 = vpop.f32.mrf.mxu2 }
 0x1c2   : > { %v2335_v49 = vadd.f32 %v3844_v61, %v2315_v4  ;;  %v1824_v10 = vadd.f32 %v1805_v19, %v1690_v17 }
 0x1c3   : > { %v2297_v36 = vpop.f32.mrf.mxu0 }
 0x1c4   : > { %2351 = vst.msk [vmem:[%s3850_s8 + $0x68] sm:$0xff] %vm687_vm3, %v2335_v49  ;;  %v2379_v50 = vsel %vm687_vm3, %v2335_v49, 0.0  ;;  %v2404_v0 = vmul.f32 %v2335_v49, %v2335_v49 }
 0x1c5   : > { %v2380_v59 = vadd.f32 %v2379_v50, %v2378_v5  ;;  %v2115_v56 = vpop.f32.mrf.mxu3 }
 0x1c6   : > { %v2432_v62 = vsel %vm687_vm3, %v2404_v0, 0.0  ;;  %v2134_v9 = vadd.f32 %v2115_v56, %v1824_v10 }
 0x1c7   : > { %v2433_v47 = vadd.f32 %v2432_v62, %v2431_v32 }
 0x1c8   : > { %v2316_v57 = vadd.f32 %v2297_v36, %v2134_v9 }
 0x1c9   : > { %v1807_v13 = vpop.f32.mrf.mxu2 }
 0x1ca   : > { %v2336_v24 = vadd.f32 %v3844_v61, %v2316_v57  ;;  %v1825_v23 = vadd.f32 %v1807_v13, %v1691_v30 }
 0x1cb   : > { %v2299_v33 = vpop.f32.mrf.mxu0 }
 0x1cc   : > { %2352 = vst.msk [vmem:[%s3850_s8 + $0x70] sm:$0xff] %vm687_vm3, %v2336_v24  ;;  %v2381_v39 = vsel %vm687_vm3, %v2336_v24, 0.0  ;;  %v2405_v12 = vmul.f32 %v2336_v24, %v2336_v24 }
 0x1cd   : > { %v2382_v41 = vadd.f32 %v2381_v39, %v2380_v59  ;;  %v2117_v44 = vpop.f32.mrf.mxu3 }
 0x1ce   : > { %v2434_v31 = vsel %vm687_vm3, %v2405_v12, 0.0  ;;  %v2135_v63 = vadd.f32 %v2117_v44, %v1825_v23 }
 0x1cf   : > { %v2435_v53 = vadd.f32 %v2434_v31, %v2433_v47 }
 0x1d0   : > { %v2317_v11 = vadd.f32 %v2299_v33, %v2135_v63 }
 0x1d2   : > { %v2337_v60 = vadd.f32 %v3844_v61, %v2317_v11 }
 0x1d4   : > { %2353 = vst.msk [vmem:[%s3850_s8 + $0x78] sm:$0xff] %vm687_vm3, %v2337_v60  ;;  %v2383_v45 = vsel %vm687_vm3, %v2337_v60, 0.0  ;;  %v2406_v16 = vmul.f32 %v2337_v60, %v2337_v60 }
 0x1d5   : > { %v2384_v55 = vadd.f32 %v2383_v45, %v2382_v41 }
 0x1d6   : > { %v2436_v6 = vsel %vm687_vm3, %v2406_v16, 0.0 }
 0x1d7   : > { %v2385_v48 = vrot.slane %v2384_v55, 4  ;;  %v2437_v46 = vadd.f32 %v2436_v6, %v2435_v53 }
 0x1d9   : > { %v2386_v51 = vadd.f32 %v2385_v48, %v2384_v55  ;;  %v2438_v26 = vrot.slane %v2437_v46, 4 }
 0x1db   : > { %v2387_v43 = vrot.slane %v2386_v51, 2  ;;  %v2439_v34 = vadd.f32 %v2438_v26, %v2437_v46 }
 0x1dd   : > { %v2388_v22 = vadd.f32 %v2387_v43, %v2386_v51  ;;  %v2440_v21 = vrot.slane %v2439_v34, 2 }
 0x1df   : > { %v2389_v2 = vrot.slane %v2388_v22, 1  ;;  %v2441_v38 = vadd.f32 %v2440_v21, %v2439_v34 }
 0x1e1   : > { %v2442_v61 = vrot.slane %v2441_v38, 1  ;;  %v2390_v18 = vadd.f32 %v2389_v2, %v2388_v22 }
 0x1e3   : > { %v2443_v40 = vadd.f32 %v2442_v61, %v2441_v38 }
 0x1e5   : > { %v2445_v29 = vsel %vm2444_vm8, %v2390_v18, %v2443_v40 }
 0x1e6   : > { %2447 = vst.msk [vmem:[%s389_s12] sm:$0x3] %vm2446_vm9, %v2445_v29 }
 0x1e7 PF: > { %s17_s25 = sadd.s32 1, %s2940_s25   ;;  %s3980_s21 = smov %s2932_s23 }
 0x1e8   : > { %p14_p8 = scmp.ge.s32.totalorder %s17_s25, 6   ;;  %s3981_s22 = smov %s2936_s24 }
 0x1e9   : > { %s3982_s23 = smov %s3985_s26  ;;  %s3983_s24 = smov %s3989_s27 }
 0x1ea   :  { %16 = sbr.rel (!%p14_p8) target bundleno = 3 (0x3), region = 96 }

</bundles_post_ra>
